<compile_context>
chip_gen: v5e
topology: v5e:2x2
jax: 0.10.0
libtpu: 0.0.40
codegen_flags: <defaults>
</compile_context>

<pallas_src>
import jax
import jax.numpy as jnp
from jax import lax
from jax.experimental import pallas as pl
from jax.experimental.pallas import tpu as pltpu

# Small synthetic dims consistent with the module:
#   LSTM hidden_size = 128 (as in the module), num_labels = 2, bidirectional LSTM.
VOCAB = 100
E = 128          # synthetic "ERNIE" hidden size (stand-in for ernie-3.0-mini-zh)
H = 128          # LSTM hidden size (module: hidden_size = 128)
NUM_LABELS = 2
LPAD = 128       # labels padded to a full lane width for a lane-dense kernel output


# ----------------------------------------------------------------------------
# Pallas kernel: bidirectional LSTM + (dropout=identity at inference) + fc
# ----------------------------------------------------------------------------
def bilstm_fc_kernel(x_ref, wih_ref, whh_f_ref, whh_b_ref, b_ref,
                     wfc_f_ref, wfc_b_ref, bfc_ref,
                     emis_ref, gx_ref, hf_ref, hb_ref):
    """Fused BiLSTM + Linear producing CRF emissions.

    x_ref:      (T, BP, E)   bf16 time-major sequence features
    wih_ref:    (E, 8H)      bf16 input->gates weights, [fwd 4H | bwd 4H], PyTorch gate order
    whh_f/b:    (H, 4H)      bf16 hidden->gates weights per direction
    b_ref:      (1, 8H)      f32  (bias_ih + bias_hh), [fwd | bwd]
    wfc_f/b:    (H, LPAD)    bf16 fc weight split into forward/backward halves (zero-padded)
    bfc_ref:    (1, LPAD)    f32
    emis_ref:   (T, BP, LPAD) f32 output emissions (first NUM_LABELS columns valid)
    gx_ref:     (T, BP, 8H)  f32 scratch — hoisted input projection (bias folded in)
    hf/hb_ref:  (T, BP, H)   f32 scratch — per-timestep hidden states of each direction
    """
    T, BP, E_ = x_ref.shape

    # (1) Hoisted input projection for BOTH directions as one well-shaped bf16 matmul,
    #     with the gate biases folded in (nothing bias-related left in the loop).
    x_flat = x_ref[...].reshape(T * BP, E_)                               # bf16 (T*BP, E)
    gx = jnp.dot(x_flat, wih_ref[...], preferred_element_type=jnp.float32)
    gx = gx + b_ref[...]                                                  # f32 (T*BP, 8H)
    gx_ref[...] = gx.reshape(T, BP, 8 * H)

    whh_f = whh_f_ref[...]                                                # bf16 (H, 4H)
    whh_b = whh_b_ref[...]

    def gate_act(gates, c):
        # PyTorch gate order: i, f, g, o — all elementwise math in f32.
        i_g = jax.nn.sigmoid(gates[:, 0 * H:1 * H])
        f_g = jax.nn.sigmoid(gates[:, 1 * H:2 * H])
        g_g = jnp.tanh(gates[:, 2 * H:3 * H])
        o_g = jax.nn.sigmoid(gates[:, 3 * H:4 * H])
        c_new = f_g * c + i_g * g_g
        h_new = o_g * jnp.tanh(c_new)
        return h_new, c_new

    h0 = jnp.zeros((BP, H), jnp.float32)
    c0 = jnp.zeros((BP, H), jnp.float32)

    # (2) Forward (t = s) and backward (t = T-1-s) recurrences fused into ONE fully
    #     unrolled loop: the two independent chains interleave on MXU/VPU/EUP slots.
    #     Only the h @ W_hh dot remains inside the serial dependence chain.
    def body(s, carry):
        h_f, c_f, h_b, c_b = carry
        t_b = T - 1 - s
        gx_f = gx_ref[s]                                                  # (BP, 8H)
        gx_b = gx_ref[t_b]
        gates_f = gx_f[:, :4 * H] + jnp.dot(
            h_f.astype(jnp.bfloat16), whh_f, preferred_element_type=jnp.float32)
        gates_b = gx_b[:, 4 * H:] + jnp.dot(
            h_b.astype(jnp.bfloat16), whh_b, preferred_element_type=jnp.float32)
        h_f, c_f = gate_act(gates_f, c_f)
        h_b, c_b = gate_act(gates_b, c_b)
        hf_ref[s] = h_f
        hb_ref[t_b] = h_b
        return (h_f, c_f, h_b, c_b)

    lax.fori_loop(0, T, body, (h0, c0, h0, c0), unroll=True)

    # (3) FC hoisted out of the loop (dropout is identity at inference): one lane-dense
    #     matmul pair over all timesteps, single unmasked store of the whole output block.
    hf_flat = hf_ref[...].reshape(T * BP, H).astype(jnp.bfloat16)
    hb_flat = hb_ref[...].reshape(T * BP, H).astype(jnp.bfloat16)
    emis = (jnp.dot(hf_flat, wfc_f_ref[...], preferred_element_type=jnp.float32)
            + jnp.dot(hb_flat, wfc_b_ref[...], preferred_element_type=jnp.float32)
            + bfc_ref[...])
    emis_ref[...] = emis.reshape(T, BP, LPAD)


def bilstm_emissions(ids_time_major, params):
    """ids_time_major: (T, BP) int32 (batch already padded to a sublane multiple).

    Returns padded emissions (T, BP, LPAD) f32.
    """
    T, BP = ids_time_major.shape
    # Gather directly time-major (no (B,T,E) activation transpose in HBM) and cast to bf16.
    x = params["embedding"][ids_time_major].astype(jnp.bfloat16)          # (T, BP, E)
    wih = jnp.concatenate([params["wih_f"], params["wih_b"]],
                          axis=1).astype(jnp.bfloat16)                    # (E, 8H)
    b = jnp.concatenate([params["b_f"], params["b_b"]], axis=1)           # (1, 8H) f32
    args = (x, wih,
            params["whh_f"].astype(jnp.bfloat16),
            params["whh_b"].astype(jnp.bfloat16),
            b,
            params["wfc_f"].astype(jnp.bfloat16),
            params["wfc_b"].astype(jnp.bfloat16),
            params["bfc"])
    # TODO(synk): at realistic (T, B) add a batch-tile grid with
    # dimension_semantics=("parallel",) (second v7x TensorCore) and tiled BlockSpecs
    # instead of whole-array VMEM residency; unnecessary at these toy sizes.
    emis_pad = pl.pallas_call(
        bilstm_fc_kernel,
        out_shape=jax.ShapeDtypeStruct((T, BP, LPAD), jnp.float32),
        in_specs=[pl.BlockSpec(memory_space=pltpu.MemorySpace.VMEM)] * len(args),
        out_specs=pl.BlockSpec(memory_space=pltpu.MemorySpace.VMEM),
        scratch_shapes=[pltpu.VMEM((T, BP, 8 * H), jnp.float32),
                        pltpu.VMEM((T, BP, H), jnp.float32),
                        pltpu.VMEM((T, BP, H), jnp.float32)],
    )(*args)
    return emis_pad


# ----------------------------------------------------------------------------
# CRF Viterbi decode (plain-JAX glue: num_labels=2 is scalar-sized control flow,
# not a vector hot path).  Emissions treated batch-first, mask semantics as torchcrf.
# ----------------------------------------------------------------------------
def viterbi_decode(emissions, mask, start_trans, end_trans, trans):
    B, T, L = emissions.shape
    em = jnp.transpose(emissions, (1, 0, 2)).astype(jnp.float32)   # (T, B, L)
    msk = jnp.transpose(mask.astype(bool), (1, 0))                 # (T, B)

    score = start_trans[None, :] + em[0]                           # (B, L)

    def fwd(score, xs):
        em_t, m_t = xs
        ns = score[:, :, None] + trans[None, :, :] + em_t[:, None, :]  # (B, Lprev, Lcur)
        best_score = jnp.max(ns, axis=1)
        best_prev = jnp.argmax(ns, axis=1).astype(jnp.int32)
        new_score = jnp.where(m_t[:, None], best_score, score)
        return new_score, best_prev

    score, history = lax.scan(fwd, score, (em[1:], msk[1:]))       # history: (T-1, B, L)
    score = score + end_trans[None, :]

    seq_len = jnp.sum(mask.astype(jnp.int32), axis=1)              # (B,)
    last_tag = jnp.argmax(score, axis=1).astype(jnp.int32)         # tag at position seq_len-1
    batch_idx = jnp.arange(B)

    def bwd(cur, t):
        prev = history[t - 1, batch_idx, cur]
        valid = t < seq_len                 # transition into position t was inside the sequence
        new_cur = jnp.where(valid, prev, cur)
        return new_cur, new_cur             # tag at position t-1

    ts = jnp.arange(T - 1, 0, -1)
    _, rev_tags = lax.scan(bwd, last_tag, ts)                      # positions T-2 .. 0
    tags_tm = jnp.concatenate([rev_tags[::-1], last_tag[None, :]], axis=0)   # (T, B)
    tags = jnp.transpose(tags_tm)                                  # (B, T)
    # TODO(synk): torchcrf returns variable-length Python lists; here padded positions are 0.
    return jnp.where(mask.astype(bool), tags, 0)


# ----------------------------------------------------------------------------
# Full forward (labels=None path of TextClassifier.forward)
# ----------------------------------------------------------------------------
def text_classifier_forward(input_ids, attention_mask, params):
    # TODO(synk): frozen pretrained ERNIE encoder replaced by a deterministic embedding
    # lookup producing last_hidden_state; attention_mask is still honored by the CRF decode.
    B, T = input_ids.shape
    BP = ((B + 7) // 8) * 8                                        # pad batch to f32 sublane tile
    ids_tm = jnp.zeros((T, BP), jnp.int32).at[:, :B].set(input_ids.T)
    # Note: like the PyTorch module (no pack_padded_sequence), the LSTM runs over padded
    # timesteps too; the CRF decode masks them out.
    emis_pad = bilstm_emissions(ids_tm, params)                    # (T, BP, LPAD)
    emissions = jnp.transpose(emis_pad[:, :B, :NUM_LABELS], (1, 0, 2))   # (B, T, L)
    preds = viterbi_decode(emissions, attention_mask,
                           params["crf_start"], params["crf_end"], params["crf_trans"])
    return preds


# ----------------------------------------------------------------------------
# Deterministic parameter construction (shapes implied by the module __init__)
# ----------------------------------------------------------------------------
def init_params(key):
    ks = jax.random.split(key, 14)
    s = 1.0 / jnp.sqrt(jnp.float32(H))
    u = lambda k, shape, lo, hi: jax.random.uniform(k, shape, jnp.float32, lo, hi)

    wih_f = u(ks[0], (E, 4 * H), -s, s)
    whh_f = u(ks[1], (H, 4 * H), -s, s)
    b_f = u(ks[2], (1, 4 * H), -s, s) + u(ks[3], (1, 4 * H), -s, s)   # bias_ih + bias_hh
    wih_b = u(ks[4], (E, 4 * H), -s, s)
    whh_b = u(ks[5], (H, 4 * H), -s, s)
    b_b = u(ks[6], (1, 4 * H), -s, s) + u(ks[7], (1, 4 * H), -s, s)

    s_fc = 1.0 / jnp.sqrt(jnp.float32(2 * H))
    wfc = u(ks[8], (2 * H, NUM_LABELS), -s_fc, s_fc)
    bfc = u(ks[9], (NUM_LABELS,), -s_fc, s_fc)
    wfc_pad = jnp.zeros((2 * H, LPAD), jnp.float32).at[:, :NUM_LABELS].set(wfc)
    bfc_pad = jnp.zeros((1, LPAD), jnp.float32).at[0, :NUM_LABELS].set(bfc)

    crf_start = u(ks[10], (NUM_LABELS,), -0.1, 0.1)
    crf_end = u(ks[11], (NUM_LABELS,), -0.1, 0.1)
    crf_trans = u(ks[12], (NUM_LABELS, NUM_LABELS), -0.1, 0.1)

    emb = jax.random.normal(ks[13], (VOCAB, E), jnp.float32) * 0.02

    return dict(
        embedding=emb,
        wih_f=wih_f, whh_f=whh_f, b_f=b_f,
        wih_b=wih_b, whh_b=whh_b, b_b=b_b,
        wfc_f=wfc_pad[:H], wfc_b=wfc_pad[H:], bfc=bfc_pad,
        crf_start=crf_start, crf_end=crf_end, crf_trans=crf_trans,
    )


if __name__ == "__main__":
    B, T = 2, 8
    key = jax.random.PRNGKey(0)
    k_ids, _ = jax.random.split(key)
    input_ids = jax.random.randint(k_ids, (B, T), 0, VOCAB, dtype=jnp.int32)
    lengths = jnp.array([T, 5], dtype=jnp.int32)          # second sequence is padded
    attention_mask = (jnp.arange(T)[None, :] < lengths[:, None]).astype(jnp.int32)

    params = init_params(jax.random.PRNGKey(42))

    fwd = jax.jit(text_classifier_forward)
    preds = fwd(input_ids, attention_mask, params)
    preds = jax.block_until_ready(preds)
    assert preds.shape == (B, T)
    print("KERNEL_OK")
</pallas_src>

<mosaic_0001>
module attributes {stable_mosaic.version = 11 : i64} {
  func.func @bilstm_fc_kernel(%arg0: memref<8x8x128xbf16, #tpu.memory_space<vmem>>, %arg1: memref<128x1024xbf16, #tpu.memory_space<vmem>>, %arg2: memref<128x512xbf16, #tpu.memory_space<vmem>>, %arg3: memref<128x512xbf16, #tpu.memory_space<vmem>>, %arg4: memref<1x1024xf32, #tpu.memory_space<vmem>>, %arg5: memref<128x128xbf16, #tpu.memory_space<vmem>>, %arg6: memref<128x128xbf16, #tpu.memory_space<vmem>>, %arg7: memref<1x128xf32, #tpu.memory_space<vmem>>, %arg8: memref<8x8x128xf32, #tpu.memory_space<vmem>>, %arg9: memref<8x8x1024xf32, #tpu.memory_space<vmem>>, %arg10: memref<8x8x128xf32, #tpu.memory_space<vmem>>, %arg11: memref<8x8x128xf32, #tpu.memory_space<vmem>>) attributes {dimension_semantics = [], scalar_prefetch = 0 : i64, scratch_operands = 3 : i64, tpu.core_type = #tpu.core_type<tc>} {
    %c0 = arith.constant 0 : index
    %c0_0 = arith.constant 0 : index
    %c0_1 = arith.constant 0 : index
    %0 = vector.load %arg0[%c0, %c0_0, %c0_1] : memref<8x8x128xbf16, #tpu.memory_space<vmem>>, vector<8x8x128xbf16>
    %1 = vector.shape_cast %0 : vector<8x8x128xbf16> to vector<64x128xbf16>
    %c0_2 = arith.constant 0 : index
    %c0_3 = arith.constant 0 : index
    %2 = vector.load %arg1[%c0_2, %c0_3] : memref<128x1024xbf16, #tpu.memory_space<vmem>>, vector<128x1024xbf16>
    %cst = arith.constant dense<0.000000e+00> : vector<64x1024xf32>
    %3 = tpu.matmul %1, %2, %cst {dimension_numbers = #tpu.dot_dimension_numbers<[1], [0], [0], [1], [0, 0, 1, 1], [], []>} : vector<64x128xbf16>, vector<128x1024xbf16>, vector<64x1024xf32> -> vector<64x1024xf32>
    %c0_4 = arith.constant 0 : index
    %c0_5 = arith.constant 0 : index
    %4 = vector.load %arg4[%c0_4, %c0_5] : memref<1x1024xf32, #tpu.memory_space<vmem>>, vector<1x1024xf32>
    %5 = vector.broadcast %4 : vector<1x1024xf32> to vector<64x1024xf32>
    %6 = arith.addf %3, %5 : vector<64x1024xf32>
    %7 = vector.shape_cast %6 : vector<64x1024xf32> to vector<8x8x1024xf32>
    %c0_6 = arith.constant 0 : index
    %c0_7 = arith.constant 0 : index
    %c0_8 = arith.constant 0 : index
    %8 = vector.load %arg9[%c0_6, %c0_7, %c0_8] : memref<8x8x1024xf32, #tpu.memory_space<vmem>>, vector<8x8x1024xf32>
    tpu.vector_store %arg9[%c0_6, %c0_7, %c0_8], %7 {strides = array<i32>} : memref<8x8x1024xf32, #tpu.memory_space<vmem>>, vector<8x8x1024xf32>,
    %c0_9 = arith.constant 0 : index
    %c0_10 = arith.constant 0 : index
    %9 = vector.load %arg2[%c0_9, %c0_10] : memref<128x512xbf16, #tpu.memory_space<vmem>>, vector<128x512xbf16>
    %c0_11 = arith.constant 0 : index
    %c0_12 = arith.constant 0 : index
    %10 = vector.load %arg3[%c0_11, %c0_12] : memref<128x512xbf16, #tpu.memory_space<vmem>>, vector<128x512xbf16>
    %cst_13 = arith.constant 0.000000e+00 : f32
    %11 = vector.broadcast %cst_13 : f32 to vector<8x128xf32>
    %cst_14 = arith.constant 0.000000e+00 : f32
    %12 = vector.broadcast %cst_14 : f32 to vector<8x128xf32>
    %c0_i32 = arith.constant 0 : i32
    %c7_i32 = arith.constant 7 : i32
    %13 = arith.subi %c7_i32, %c0_i32 : i32
    %14 = arith.index_cast %c0_i32 : i32 to index
    %c0_15 = arith.constant 0 : index
    %c0_16 = arith.constant 0 : index
    %15 = vector.load %arg9[%14, %c0_15, %c0_16] : memref<8x8x1024xf32, #tpu.memory_space<vmem>>, vector<1x8x1024xf32>
    %16 = vector.shape_cast %15 : vector<1x8x1024xf32> to vector<8x1024xf32>
    %17 = arith.index_cast %13 : i32 to index
    %c0_17 = arith.constant 0 : index
    %c0_18 = arith.constant 0 : index
    %18 = vector.load %arg9[%17, %c0_17, %c0_18] : memref<8x8x1024xf32, #tpu.memory_space<vmem>>, vector<1x8x1024xf32>
    %19 = vector.shape_cast %18 : vector<1x8x1024xf32> to vector<8x1024xf32>
    %20 = vector.extract_strided_slice %16 {offsets = [0, 0], sizes = [8, 512], strides = [1, 1]} : vector<8x1024xf32> to vector<8x512xf32>
    %21 = arith.truncf %11 : vector<8x128xf32> to vector<8x128xbf16>
    %cst_19 = arith.constant dense<0.000000e+00> : vector<8x512xf32>
    %22 = tpu.matmul %21, %9, %cst_19 {dimension_numbers = #tpu.dot_dimension_numbers<[1], [0], [0], [1], [0, 0, 1, 1], [], []>} : vector<8x128xbf16>, vector<128x512xbf16>, vector<8x512xf32> -> vector<8x512xf32>
    %23 = arith.addf %20, %22 : vector<8x512xf32>
    %24 = vector.extract_strided_slice %19 {offsets = [0, 512], sizes = [8, 512], strides = [1, 1]} : vector<8x1024xf32> to vector<8x512xf32>
    %25 = arith.truncf %11 : vector<8x128xf32> to vector<8x128xbf16>
    %cst_20 = arith.constant dense<0.000000e+00> : vector<8x512xf32>
    %26 = tpu.matmul %25, %10, %cst_20 {dimension_numbers = #tpu.dot_dimension_numbers<[1], [0], [0], [1], [0, 0, 1, 1], [], []>} : vector<8x128xbf16>, vector<128x512xbf16>, vector<8x512xf32> -> vector<8x512xf32>
    %27 = arith.addf %24, %26 : vector<8x512xf32>
    %28 = vector.extract_strided_slice %23 {offsets = [0, 0], sizes = [8, 128], strides = [1, 1]} : vector<8x512xf32> to vector<8x128xf32>
    %29 = arith.negf %28 : vector<8x128xf32>
    %30 = math.exp %29 : vector<8x128xf32>
    %cst_21 = arith.constant 1.000000e+00 : f32
    %31 = vector.broadcast %cst_21 : f32 to vector<8x128xf32>
    %32 = arith.addf %31, %30 : vector<8x128xf32>
    %33 = arith.divf %31, %32 : vector<8x128xf32>
    %34 = vector.extract_strided_slice %23 {offsets = [0, 128], sizes = [8, 128], strides = [1, 1]} : vector<8x512xf32> to vector<8x128xf32>
    %35 = arith.negf %34 : vector<8x128xf32>
    %36 = math.exp %35 : vector<8x128xf32>
    %cst_22 = arith.constant 1.000000e+00 : f32
    %37 = vector.broadcast %cst_22 : f32 to vector<8x128xf32>
    %38 = arith.addf %37, %36 : vector<8x128xf32>
    %39 = arith.divf %37, %38 : vector<8x128xf32>
    %40 = vector.extract_strided_slice %23 {offsets = [0, 256], sizes = [8, 128], strides = [1, 1]} : vector<8x512xf32> to vector<8x128xf32>
    %41 = math.tanh %40 : vector<8x128xf32>
    %42 = vector.extract_strided_slice %23 {offsets = [0, 384], sizes = [8, 128], strides = [1, 1]} : vector<8x512xf32> to vector<8x128xf32>
    %43 = arith.negf %42 : vector<8x128xf32>
    %44 = math.exp %43 : vector<8x128xf32>
    %cst_23 = arith.constant 1.000000e+00 : f32
    %45 = vector.broadcast %cst_23 : f32 to vector<8x128xf32>
    %46 = arith.addf %45, %44 : vector<8x128xf32>
    %47 = arith.divf %45, %46 : vector<8x128xf32>
    %48 = arith.mulf %39, %12 : vector<8x128xf32>
    %49 = arith.mulf %33, %41 : vector<8x128xf32>
    %50 = arith.addf %48, %49 : vector<8x128xf32>
    %51 = math.tanh %50 : vector<8x128xf32>
    %52 = arith.mulf %47, %51 : vector<8x128xf32>
    %53 = vector.extract_strided_slice %27 {offsets = [0, 0], sizes = [8, 128], strides = [1, 1]} : vector<8x512xf32> to vector<8x128xf32>
    %54 = arith.negf %53 : vector<8x128xf32>
    %55 = math.exp %54 : vector<8x128xf32>
    %cst_24 = arith.constant 1.000000e+00 : f32
    %56 = vector.broadcast %cst_24 : f32 to vector<8x128xf32>
    %57 = arith.addf %56, %55 : vector<8x128xf32>
    %58 = arith.divf %56, %57 : vector<8x128xf32>
    %59 = vector.extract_strided_slice %27 {offsets = [0, 128], sizes = [8, 128], strides = [1, 1]} : vector<8x512xf32> to vector<8x128xf32>
    %60 = arith.negf %59 : vector<8x128xf32>
    %61 = math.exp %60 : vector<8x128xf32>
    %cst_25 = arith.constant 1.000000e+00 : f32
    %62 = vector.broadcast %cst_25 : f32 to vector<8x128xf32>
    %63 = arith.addf %62, %61 : vector<8x128xf32>
    %64 = arith.divf %62, %63 : vector<8x128xf32>
    %65 = vector.extract_strided_slice %27 {offsets = [0, 256], sizes = [8, 128], strides = [1, 1]} : vector<8x512xf32> to vector<8x128xf32>
    %66 = math.tanh %65 : vector<8x128xf32>
    %67 = vector.extract_strided_slice %27 {offsets = [0, 384], sizes = [8, 128], strides = [1, 1]} : vector<8x512xf32> to vector<8x128xf32>
    %68 = arith.negf %67 : vector<8x128xf32>
    %69 = math.exp %68 : vector<8x128xf32>
    %cst_26 = arith.constant 1.000000e+00 : f32
    %70 = vector.broadcast %cst_26 : f32 to vector<8x128xf32>
    %71 = arith.addf %70, %69 : vector<8x128xf32>
    %72 = arith.divf %70, %71 : vector<8x128xf32>
    %73 = arith.mulf %64, %12 : vector<8x128xf32>
    %74 = arith.mulf %58, %66 : vector<8x128xf32>
    %75 = arith.addf %73, %74 : vector<8x128xf32>
    %76 = math.tanh %75 : vector<8x128xf32>
    %77 = arith.mulf %72, %76 : vector<8x128xf32>
    %78 = arith.index_cast %c0_i32 : i32 to index
    %c0_27 = arith.constant 0 : index
    %c0_28 = arith.constant 0 : index
    %79 = vector.load %arg10[%78, %c0_27, %c0_28] : memref<8x8x128xf32, #tpu.memory_space<vmem>>, vector<1x8x128xf32>
    %80 = vector.shape_cast %79 : vector<1x8x128xf32> to vector<8x128xf32>
    %81 = vector.shape_cast %52 : vector<8x128xf32> to vector<1x8x128xf32>
    tpu.vector_store %arg10[%78, %c0_27, %c0_28], %81 {strides = array<i32>} : memref<8x8x128xf32, #tpu.memory_space<vmem>>, vector<1x8x128xf32>,
    %82 = arith.index_cast %13 : i32 to index
    %c0_29 = arith.constant 0 : index
    %c0_30 = arith.constant 0 : index
    %83 = vector.load %arg11[%82, %c0_29, %c0_30] : memref<8x8x128xf32, #tpu.memory_space<vmem>>, vector<1x8x128xf32>
    %84 = vector.shape_cast %83 : vector<1x8x128xf32> to vector<8x128xf32>
    %85 = vector.shape_cast %77 : vector<8x128xf32> to vector<1x8x128xf32>
    tpu.vector_store %arg11[%82, %c0_29, %c0_30], %85 {strides = array<i32>} : memref<8x8x128xf32, #tpu.memory_space<vmem>>, vector<1x8x128xf32>,
    %c1_i32 = arith.constant 1 : i32
    %c7_i32_31 = arith.constant 7 : i32
    %86 = arith.subi %c7_i32_31, %c1_i32 : i32
    %87 = arith.index_cast %c1_i32 : i32 to index
    %c0_32 = arith.constant 0 : index
    %c0_33 = arith.constant 0 : index
    %88 = vector.load %arg9[%87, %c0_32, %c0_33] : memref<8x8x1024xf32, #tpu.memory_space<vmem>>, vector<1x8x1024xf32>
    %89 = vector.shape_cast %88 : vector<1x8x1024xf32> to vector<8x1024xf32>
    %90 = arith.index_cast %86 : i32 to index
    %c0_34 = arith.constant 0 : index
    %c0_35 = arith.constant 0 : index
    %91 = vector.load %arg9[%90, %c0_34, %c0_35] : memref<8x8x1024xf32, #tpu.memory_space<vmem>>, vector<1x8x1024xf32>
    %92 = vector.shape_cast %91 : vector<1x8x1024xf32> to vector<8x1024xf32>
    %93 = vector.extract_strided_slice %89 {offsets = [0, 0], sizes = [8, 512], strides = [1, 1]} : vector<8x1024xf32> to vector<8x512xf32>
    %94 = arith.truncf %52 : vector<8x128xf32> to vector<8x128xbf16>
    %cst_36 = arith.constant dense<0.000000e+00> : vector<8x512xf32>
    %95 = tpu.matmul %94, %9, %cst_36 {dimension_numbers = #tpu.dot_dimension_numbers<[1], [0], [0], [1], [0, 0, 1, 1], [], []>} : vector<8x128xbf16>, vector<128x512xbf16>, vector<8x512xf32> -> vector<8x512xf32>
    %96 = arith.addf %93, %95 : vector<8x512xf32>
    %97 = vector.extract_strided_slice %92 {offsets = [0, 512], sizes = [8, 512], strides = [1, 1]} : vector<8x1024xf32> to vector<8x512xf32>
    %98 = arith.truncf %77 : vector<8x128xf32> to vector<8x128xbf16>
    %cst_37 = arith.constant dense<0.000000e+00> : vector<8x512xf32>
    %99 = tpu.matmul %98, %10, %cst_37 {dimension_numbers = #tpu.dot_dimension_numbers<[1], [0], [0], [1], [0, 0, 1, 1], [], []>} : vector<8x128xbf16>, vector<128x512xbf16>, vector<8x512xf32> -> vector<8x512xf32>
    %100 = arith.addf %97, %99 : vector<8x512xf32>
    %101 = vector.extract_strided_slice %96 {offsets = [0, 0], sizes = [8, 128], strides = [1, 1]} : vector<8x512xf32> to vector<8x128xf32>
    %102 = arith.negf %101 : vector<8x128xf32>
    %103 = math.exp %102 : vector<8x128xf32>
    %cst_38 = arith.constant 1.000000e+00 : f32
    %104 = vector.broadcast %cst_38 : f32 to vector<8x128xf32>
    %105 = arith.addf %104, %103 : vector<8x128xf32>
    %106 = arith.divf %104, %105 : vector<8x128xf32>
    %107 = vector.extract_strided_slice %96 {offsets = [0, 128], sizes = [8, 128], strides = [1, 1]} : vector<8x512xf32> to vector<8x128xf32>
    %108 = arith.negf %107 : vector<8x128xf32>
    %109 = math.exp %108 : vector<8x128xf32>
    %cst_39 = arith.constant 1.000000e+00 : f32
    %110 = vector.broadcast %cst_39 : f32 to vector<8x128xf32>
    %111 = arith.addf %110, %109 : vector<8x128xf32>
    %112 = arith.divf %110, %111 : vector<8x128xf32>
    %113 = vector.extract_strided_slice %96 {offsets = [0, 256], sizes = [8, 128], strides = [1, 1]} : vector<8x512xf32> to vector<8x128xf32>
    %114 = math.tanh %113 : vector<8x128xf32>
    %115 = vector.extract_strided_slice %96 {offsets = [0, 384], sizes = [8, 128], strides = [1, 1]} : vector<8x512xf32> to vector<8x128xf32>
    %116 = arith.negf %115 : vector<8x128xf32>
    %117 = math.exp %116 : vector<8x128xf32>
    %cst_40 = arith.constant 1.000000e+00 : f32
    %118 = vector.broadcast %cst_40 : f32 to vector<8x128xf32>
    %119 = arith.addf %118, %117 : vector<8x128xf32>
    %120 = arith.divf %118, %119 : vector<8x128xf32>
    %121 = arith.mulf %112, %50 : vector<8x128xf32>
    %122 = arith.mulf %106, %114 : vector<8x128xf32>
    %123 = arith.addf %121, %122 : vector<8x128xf32>
    %124 = math.tanh %123 : vector<8x128xf32>
    %125 = arith.mulf %120, %124 : vector<8x128xf32>
    %126 = vector.extract_strided_slice %100 {offsets = [0, 0], sizes = [8, 128], strides = [1, 1]} : vector<8x512xf32> to vector<8x128xf32>
    %127 = arith.negf %126 : vector<8x128xf32>
    %128 = math.exp %127 : vector<8x128xf32>
    %cst_41 = arith.constant 1.000000e+00 : f32
    %129 = vector.broadcast %cst_41 : f32 to vector<8x128xf32>
    %130 = arith.addf %129, %128 : vector<8x128xf32>
    %131 = arith.divf %129, %130 : vector<8x128xf32>
    %132 = vector.extract_strided_slice %100 {offsets = [0, 128], sizes = [8, 128], strides = [1, 1]} : vector<8x512xf32> to vector<8x128xf32>
    %133 = arith.negf %132 : vector<8x128xf32>
    %134 = math.exp %133 : vector<8x128xf32>
    %cst_42 = arith.constant 1.000000e+00 : f32
    %135 = vector.broadcast %cst_42 : f32 to vector<8x128xf32>
    %136 = arith.addf %135, %134 : vector<8x128xf32>
    %137 = arith.divf %135, %136 : vector<8x128xf32>
    %138 = vector.extract_strided_slice %100 {offsets = [0, 256], sizes = [8, 128], strides = [1, 1]} : vector<8x512xf32> to vector<8x128xf32>
    %139 = math.tanh %138 : vector<8x128xf32>
    %140 = vector.extract_strided_slice %100 {offsets = [0, 384], sizes = [8, 128], strides = [1, 1]} : vector<8x512xf32> to vector<8x128xf32>
    %141 = arith.negf %140 : vector<8x128xf32>
    %142 = math.exp %141 : vector<8x128xf32>
    %cst_43 = arith.constant 1.000000e+00 : f32
    %143 = vector.broadcast %cst_43 : f32 to vector<8x128xf32>
    %144 = arith.addf %143, %142 : vector<8x128xf32>
    %145 = arith.divf %143, %144 : vector<8x128xf32>
    %146 = arith.mulf %137, %75 : vector<8x128xf32>
    %147 = arith.mulf %131, %139 : vector<8x128xf32>
    %148 = arith.addf %146, %147 : vector<8x128xf32>
    %149 = math.tanh %148 : vector<8x128xf32>
    %150 = arith.mulf %145, %149 : vector<8x128xf32>
    %151 = arith.index_cast %c1_i32 : i32 to index
    %c0_44 = arith.constant 0 : index
    %c0_45 = arith.constant 0 : index
    %152 = vector.load %arg10[%151, %c0_44, %c0_45] : memref<8x8x128xf32, #tpu.memory_space<vmem>>, vector<1x8x128xf32>
    %153 = vector.shape_cast %152 : vector<1x8x128xf32> to vector<8x128xf32>
    %154 = vector.shape_cast %125 : vector<8x128xf32> to vector<1x8x128xf32>
    tpu.vector_store %arg10[%151, %c0_44, %c0_45], %154 {strides = array<i32>} : memref<8x8x128xf32, #tpu.memory_space<vmem>>, vector<1x8x128xf32>,
    %155 = arith.index_cast %86 : i32 to index
    %c0_46 = arith.constant 0 : index
    %c0_47 = arith.constant 0 : index
    %156 = vector.load %arg11[%155, %c0_46, %c0_47] : memref<8x8x128xf32, #tpu.memory_space<vmem>>, vector<1x8x128xf32>
    %157 = vector.shape_cast %156 : vector<1x8x128xf32> to vector<8x128xf32>
    %158 = vector.shape_cast %150 : vector<8x128xf32> to vector<1x8x128xf32>
    tpu.vector_store %arg11[%155, %c0_46, %c0_47], %158 {strides = array<i32>} : memref<8x8x128xf32, #tpu.memory_space<vmem>>, vector<1x8x128xf32>,
    %c2_i32 = arith.constant 2 : i32
    %c7_i32_48 = arith.constant 7 : i32
    %159 = arith.subi %c7_i32_48, %c2_i32 : i32
    %160 = arith.index_cast %c2_i32 : i32 to index
    %c0_49 = arith.constant 0 : index
    %c0_50 = arith.constant 0 : index
    %161 = vector.load %arg9[%160, %c0_49, %c0_50] : memref<8x8x1024xf32, #tpu.memory_space<vmem>>, vector<1x8x1024xf32>
    %162 = vector.shape_cast %161 : vector<1x8x1024xf32> to vector<8x1024xf32>
    %163 = arith.index_cast %159 : i32 to index
    %c0_51 = arith.constant 0 : index
    %c0_52 = arith.constant 0 : index
    %164 = vector.load %arg9[%163, %c0_51, %c0_52] : memref<8x8x1024xf32, #tpu.memory_space<vmem>>, vector<1x8x1024xf32>
    %165 = vector.shape_cast %164 : vector<1x8x1024xf32> to vector<8x1024xf32>
    %166 = vector.extract_strided_slice %162 {offsets = [0, 0], sizes = [8, 512], strides = [1, 1]} : vector<8x1024xf32> to vector<8x512xf32>
    %167 = arith.truncf %125 : vector<8x128xf32> to vector<8x128xbf16>
    %cst_53 = arith.constant dense<0.000000e+00> : vector<8x512xf32>
    %168 = tpu.matmul %167, %9, %cst_53 {dimension_numbers = #tpu.dot_dimension_numbers<[1], [0], [0], [1], [0, 0, 1, 1], [], []>} : vector<8x128xbf16>, vector<128x512xbf16>, vector<8x512xf32> -> vector<8x512xf32>
    %169 = arith.addf %166, %168 : vector<8x512xf32>
    %170 = vector.extract_strided_slice %165 {offsets = [0, 512], sizes = [8, 512], strides = [1, 1]} : vector<8x1024xf32> to vector<8x512xf32>
    %171 = arith.truncf %150 : vector<8x128xf32> to vector<8x128xbf16>
    %cst_54 = arith.constant dense<0.000000e+00> : vector<8x512xf32>
    %172 = tpu.matmul %171, %10, %cst_54 {dimension_numbers = #tpu.dot_dimension_numbers<[1], [0], [0], [1], [0, 0, 1, 1], [], []>} : vector<8x128xbf16>, vector<128x512xbf16>, vector<8x512xf32> -> vector<8x512xf32>
    %173 = arith.addf %170, %172 : vector<8x512xf32>
    %174 = vector.extract_strided_slice %169 {offsets = [0, 0], sizes = [8, 128], strides = [1, 1]} : vector<8x512xf32> to vector<8x128xf32>
    %175 = arith.negf %174 : vector<8x128xf32>
    %176 = math.exp %175 : vector<8x128xf32>
    %cst_55 = arith.constant 1.000000e+00 : f32
    %177 = vector.broadcast %cst_55 : f32 to vector<8x128xf32>
    %178 = arith.addf %177, %176 : vector<8x128xf32>
    %179 = arith.divf %177, %178 : vector<8x128xf32>
    %180 = vector.extract_strided_slice %169 {offsets = [0, 128], sizes = [8, 128], strides = [1, 1]} : vector<8x512xf32> to vector<8x128xf32>
    %181 = arith.negf %180 : vector<8x128xf32>
    %182 = math.exp %181 : vector<8x128xf32>
    %cst_56 = arith.constant 1.000000e+00 : f32
    %183 = vector.broadcast %cst_56 : f32 to vector<8x128xf32>
    %184 = arith.addf %183, %182 : vector<8x128xf32>
    %185 = arith.divf %183, %184 : vector<8x128xf32>
    %186 = vector.extract_strided_slice %169 {offsets = [0, 256], sizes = [8, 128], strides = [1, 1]} : vector<8x512xf32> to vector<8x128xf32>
    %187 = math.tanh %186 : vector<8x128xf32>
    %188 = vector.extract_strided_slice %169 {offsets = [0, 384], sizes = [8, 128], strides = [1, 1]} : vector<8x512xf32> to vector<8x128xf32>
    %189 = arith.negf %188 : vector<8x128xf32>
    %190 = math.exp %189 : vector<8x128xf32>
    %cst_57 = arith.constant 1.000000e+00 : f32
    %191 = vector.broadcast %cst_57 : f32 to vector<8x128xf32>
    %192 = arith.addf %191, %190 : vector<8x128xf32>
    %193 = arith.divf %191, %192 : vector<8x128xf32>
    %194 = arith.mulf %185, %123 : vector<8x128xf32>
    %195 = arith.mulf %179, %187 : vector<8x128xf32>
    %196 = arith.addf %194, %195 : vector<8x128xf32>
    %197 = math.tanh %196 : vector<8x128xf32>
    %198 = arith.mulf %193, %197 : vector<8x128xf32>
    %199 = vector.extract_strided_slice %173 {offsets = [0, 0], sizes = [8, 128], strides = [1, 1]} : vector<8x512xf32> to vector<8x128xf32>
    %200 = arith.negf %199 : vector<8x128xf32>
    %201 = math.exp %200 : vector<8x128xf32>
    %cst_58 = arith.constant 1.000000e+00 : f32
    %202 = vector.broadcast %cst_58 : f32 to vector<8x128xf32>
    %203 = arith.addf %202, %201 : vector<8x128xf32>
    %204 = arith.divf %202, %203 : vector<8x128xf32>
    %205 = vector.extract_strided_slice %173 {offsets = [0, 128], sizes = [8, 128], strides = [1, 1]} : vector<8x512xf32> to vector<8x128xf32>
    %206 = arith.negf %205 : vector<8x128xf32>
    %207 = math.exp %206 : vector<8x128xf32>
    %cst_59 = arith.constant 1.000000e+00 : f32
    %208 = vector.broadcast %cst_59 : f32 to vector<8x128xf32>
    %209 = arith.addf %208, %207 : vector<8x128xf32>
    %210 = arith.divf %208, %209 : vector<8x128xf32>
    %211 = vector.extract_strided_slice %173 {offsets = [0, 256], sizes = [8, 128], strides = [1, 1]} : vector<8x512xf32> to vector<8x128xf32>
    %212 = math.tanh %211 : vector<8x128xf32>
    %213 = vector.extract_strided_slice %173 {offsets = [0, 384], sizes = [8, 128], strides = [1, 1]} : vector<8x512xf32> to vector<8x128xf32>
    %214 = arith.negf %213 : vector<8x128xf32>
    %215 = math.exp %214 : vector<8x128xf32>
    %cst_60 = arith.constant 1.000000e+00 : f32
    %216 = vector.broadcast %cst_60 : f32 to vector<8x128xf32>
    %217 = arith.addf %216, %215 : vector<8x128xf32>
    %218 = arith.divf %216, %217 : vector<8x128xf32>
    %219 = arith.mulf %210, %148 : vector<8x128xf32>
    %220 = arith.mulf %204, %212 : vector<8x128xf32>
    %221 = arith.addf %219, %220 : vector<8x128xf32>
    %222 = math.tanh %221 : vector<8x128xf32>
    %223 = arith.mulf %218, %222 : vector<8x128xf32>
    %224 = arith.index_cast %c2_i32 : i32 to index
    %c0_61 = arith.constant 0 : index
    %c0_62 = arith.constant 0 : index
    %225 = vector.load %arg10[%224, %c0_61, %c0_62] : memref<8x8x128xf32, #tpu.memory_space<vmem>>, vector<1x8x128xf32>
    %226 = vector.shape_cast %225 : vector<1x8x128xf32> to vector<8x128xf32>
    %227 = vector.shape_cast %198 : vector<8x128xf32> to vector<1x8x128xf32>
    tpu.vector_store %arg10[%224, %c0_61, %c0_62], %227 {strides = array<i32>} : memref<8x8x128xf32, #tpu.memory_space<vmem>>, vector<1x8x128xf32>,
    %228 = arith.index_cast %159 : i32 to index
    %c0_63 = arith.constant 0 : index
    %c0_64 = arith.constant 0 : index
    %229 = vector.load %arg11[%228, %c0_63, %c0_64] : memref<8x8x128xf32, #tpu.memory_space<vmem>>, vector<1x8x128xf32>
    %230 = vector.shape_cast %229 : vector<1x8x128xf32> to vector<8x128xf32>
    %231 = vector.shape_cast %223 : vector<8x128xf32> to vector<1x8x128xf32>
    tpu.vector_store %arg11[%228, %c0_63, %c0_64], %231 {strides = array<i32>} : memref<8x8x128xf32, #tpu.memory_space<vmem>>, vector<1x8x128xf32>,
    %c3_i32 = arith.constant 3 : i32
    %c7_i32_65 = arith.constant 7 : i32
    %232 = arith.subi %c7_i32_65, %c3_i32 : i32
    %233 = arith.index_cast %c3_i32 : i32 to index
    %c0_66 = arith.constant 0 : index
    %c0_67 = arith.constant 0 : index
    %234 = vector.load %arg9[%233, %c0_66, %c0_67] : memref<8x8x1024xf32, #tpu.memory_space<vmem>>, vector<1x8x1024xf32>
    %235 = vector.shape_cast %234 : vector<1x8x1024xf32> to vector<8x1024xf32>
    %236 = arith.index_cast %232 : i32 to index
    %c0_68 = arith.constant 0 : index
    %c0_69 = arith.constant 0 : index
    %237 = vector.load %arg9[%236, %c0_68, %c0_69] : memref<8x8x1024xf32, #tpu.memory_space<vmem>>, vector<1x8x1024xf32>
    %238 = vector.shape_cast %237 : vector<1x8x1024xf32> to vector<8x1024xf32>
    %239 = vector.extract_strided_slice %235 {offsets = [0, 0], sizes = [8, 512], strides = [1, 1]} : vector<8x1024xf32> to vector<8x512xf32>
    %240 = arith.truncf %198 : vector<8x128xf32> to vector<8x128xbf16>
    %cst_70 = arith.constant dense<0.000000e+00> : vector<8x512xf32>
    %241 = tpu.matmul %240, %9, %cst_70 {dimension_numbers = #tpu.dot_dimension_numbers<[1], [0], [0], [1], [0, 0, 1, 1], [], []>} : vector<8x128xbf16>, vector<128x512xbf16>, vector<8x512xf32> -> vector<8x512xf32>
    %242 = arith.addf %239, %241 : vector<8x512xf32>
    %243 = vector.extract_strided_slice %238 {offsets = [0, 512], sizes = [8, 512], strides = [1, 1]} : vector<8x1024xf32> to vector<8x512xf32>
    %244 = arith.truncf %223 : vector<8x128xf32> to vector<8x128xbf16>
    %cst_71 = arith.constant dense<0.000000e+00> : vector<8x512xf32>
    %245 = tpu.matmul %244, %10, %cst_71 {dimension_numbers = #tpu.dot_dimension_numbers<[1], [0], [0], [1], [0, 0, 1, 1], [], []>} : vector<8x128xbf16>, vector<128x512xbf16>, vector<8x512xf32> -> vector<8x512xf32>
    %246 = arith.addf %243, %245 : vector<8x512xf32>
    %247 = vector.extract_strided_slice %242 {offsets = [0, 0], sizes = [8, 128], strides = [1, 1]} : vector<8x512xf32> to vector<8x128xf32>
    %248 = arith.negf %247 : vector<8x128xf32>
    %249 = math.exp %248 : vector<8x128xf32>
    %cst_72 = arith.constant 1.000000e+00 : f32
    %250 = vector.broadcast %cst_72 : f32 to vector<8x128xf32>
    %251 = arith.addf %250, %249 : vector<8x128xf32>
    %252 = arith.divf %250, %251 : vector<8x128xf32>
    %253 = vector.extract_strided_slice %242 {offsets = [0, 128], sizes = [8, 128], strides = [1, 1]} : vector<8x512xf32> to vector<8x128xf32>
    %254 = arith.negf %253 : vector<8x128xf32>
    %255 = math.exp %254 : vector<8x128xf32>
    %cst_73 = arith.constant 1.000000e+00 : f32
    %256 = vector.broadcast %cst_73 : f32 to vector<8x128xf32>
    %257 = arith.addf %256, %255 : vector<8x128xf32>
    %258 = arith.divf %256, %257 : vector<8x128xf32>
    %259 = vector.extract_strided_slice %242 {offsets = [0, 256], sizes = [8, 128], strides = [1, 1]} : vector<8x512xf32> to vector<8x128xf32>
    %260 = math.tanh %259 : vector<8x128xf32>
    %261 = vector.extract_strided_slice %242 {offsets = [0, 384], sizes = [8, 128], strides = [1, 1]} : vector<8x512xf32> to vector<8x128xf32>
    %262 = arith.negf %261 : vector<8x128xf32>
    %263 = math.exp %262 : vector<8x128xf32>
    %cst_74 = arith.constant 1.000000e+00 : f32
    %264 = vector.broadcast %cst_74 : f32 to vector<8x128xf32>
    %265 = arith.addf %264, %263 : vector<8x128xf32>
    %266 = arith.divf %264, %265 : vector<8x128xf32>
    %267 = arith.mulf %258, %196 : vector<8x128xf32>
    %268 = arith.mulf %252, %260 : vector<8x128xf32>
    %269 = arith.addf %267, %268 : vector<8x128xf32>
    %270 = math.tanh %269 : vector<8x128xf32>
    %271 = arith.mulf %266, %270 : vector<8x128xf32>
    %272 = vector.extract_strided_slice %246 {offsets = [0, 0], sizes = [8, 128], strides = [1, 1]} : vector<8x512xf32> to vector<8x128xf32>
    %273 = arith.negf %272 : vector<8x128xf32>
    %274 = math.exp %273 : vector<8x128xf32>
    %cst_75 = arith.constant 1.000000e+00 : f32
    %275 = vector.broadcast %cst_75 : f32 to vector<8x128xf32>
    %276 = arith.addf %275, %274 : vector<8x128xf32>
    %277 = arith.divf %275, %276 : vector<8x128xf32>
    %278 = vector.extract_strided_slice %246 {offsets = [0, 128], sizes = [8, 128], strides = [1, 1]} : vector<8x512xf32> to vector<8x128xf32>
    %279 = arith.negf %278 : vector<8x128xf32>
    %280 = math.exp %279 : vector<8x128xf32>
    %cst_76 = arith.constant 1.000000e+00 : f32
    %281 = vector.broadcast %cst_76 : f32 to vector<8x128xf32>
    %282 = arith.addf %281, %280 : vector<8x128xf32>
    %283 = arith.divf %281, %282 : vector<8x128xf32>
    %284 = vector.extract_strided_slice %246 {offsets = [0, 256], sizes = [8, 128], strides = [1, 1]} : vector<8x512xf32> to vector<8x128xf32>
    %285 = math.tanh %284 : vector<8x128xf32>
    %286 = vector.extract_strided_slice %246 {offsets = [0, 384], sizes = [8, 128], strides = [1, 1]} : vector<8x512xf32> to vector<8x128xf32>
    %287 = arith.negf %286 : vector<8x128xf32>
    %288 = math.exp %287 : vector<8x128xf32>
    %cst_77 = arith.constant 1.000000e+00 : f32
    %289 = vector.broadcast %cst_77 : f32 to vector<8x128xf32>
    %290 = arith.addf %289, %288 : vector<8x128xf32>
    %291 = arith.divf %289, %290 : vector<8x128xf32>
    %292 = arith.mulf %283, %221 : vector<8x128xf32>
    %293 = arith.mulf %277, %285 : vector<8x128xf32>
    %294 = arith.addf %292, %293 : vector<8x128xf32>
    %295 = math.tanh %294 : vector<8x128xf32>
    %296 = arith.mulf %291, %295 : vector<8x128xf32>
    %297 = arith.index_cast %c3_i32 : i32 to index
    %c0_78 = arith.constant 0 : index
    %c0_79 = arith.constant 0 : index
    %298 = vector.load %arg10[%297, %c0_78, %c0_79] : memref<8x8x128xf32, #tpu.memory_space<vmem>>, vector<1x8x128xf32>
    %299 = vector.shape_cast %298 : vector<1x8x128xf32> to vector<8x128xf32>
    %300 = vector.shape_cast %271 : vector<8x128xf32> to vector<1x8x128xf32>
    tpu.vector_store %arg10[%297, %c0_78, %c0_79], %300 {strides = array<i32>} : memref<8x8x128xf32, #tpu.memory_space<vmem>>, vector<1x8x128xf32>,
    %301 = arith.index_cast %232 : i32 to index
    %c0_80 = arith.constant 0 : index
    %c0_81 = arith.constant 0 : index
    %302 = vector.load %arg11[%301, %c0_80, %c0_81] : memref<8x8x128xf32, #tpu.memory_space<vmem>>, vector<1x8x128xf32>
    %303 = vector.shape_cast %302 : vector<1x8x128xf32> to vector<8x128xf32>
    %304 = vector.shape_cast %296 : vector<8x128xf32> to vector<1x8x128xf32>
    tpu.vector_store %arg11[%301, %c0_80, %c0_81], %304 {strides = array<i32>} : memref<8x8x128xf32, #tpu.memory_space<vmem>>, vector<1x8x128xf32>,
    %c4_i32 = arith.constant 4 : i32
    %c7_i32_82 = arith.constant 7 : i32
    %305 = arith.subi %c7_i32_82, %c4_i32 : i32
    %306 = arith.index_cast %c4_i32 : i32 to index
    %c0_83 = arith.constant 0 : index
    %c0_84 = arith.constant 0 : index
    %307 = vector.load %arg9[%306, %c0_83, %c0_84] : memref<8x8x1024xf32, #tpu.memory_space<vmem>>, vector<1x8x1024xf32>
    %308 = vector.shape_cast %307 : vector<1x8x1024xf32> to vector<8x1024xf32>
    %309 = arith.index_cast %305 : i32 to index
    %c0_85 = arith.constant 0 : index
    %c0_86 = arith.constant 0 : index
    %310 = vector.load %arg9[%309, %c0_85, %c0_86] : memref<8x8x1024xf32, #tpu.memory_space<vmem>>, vector<1x8x1024xf32>
    %311 = vector.shape_cast %310 : vector<1x8x1024xf32> to vector<8x1024xf32>
    %312 = vector.extract_strided_slice %308 {offsets = [0, 0], sizes = [8, 512], strides = [1, 1]} : vector<8x1024xf32> to vector<8x512xf32>
    %313 = arith.truncf %271 : vector<8x128xf32> to vector<8x128xbf16>
    %cst_87 = arith.constant dense<0.000000e+00> : vector<8x512xf32>
    %314 = tpu.matmul %313, %9, %cst_87 {dimension_numbers = #tpu.dot_dimension_numbers<[1], [0], [0], [1], [0, 0, 1, 1], [], []>} : vector<8x128xbf16>, vector<128x512xbf16>, vector<8x512xf32> -> vector<8x512xf32>
    %315 = arith.addf %312, %314 : vector<8x512xf32>
    %316 = vector.extract_strided_slice %311 {offsets = [0, 512], sizes = [8, 512], strides = [1, 1]} : vector<8x1024xf32> to vector<8x512xf32>
    %317 = arith.truncf %296 : vector<8x128xf32> to vector<8x128xbf16>
    %cst_88 = arith.constant dense<0.000000e+00> : vector<8x512xf32>
    %318 = tpu.matmul %317, %10, %cst_88 {dimension_numbers = #tpu.dot_dimension_numbers<[1], [0], [0], [1], [0, 0, 1, 1], [], []>} : vector<8x128xbf16>, vector<128x512xbf16>, vector<8x512xf32> -> vector<8x512xf32>
    %319 = arith.addf %316, %318 : vector<8x512xf32>
    %320 = vector.extract_strided_slice %315 {offsets = [0, 0], sizes = [8, 128], strides = [1, 1]} : vector<8x512xf32> to vector<8x128xf32>
    %321 = arith.negf %320 : vector<8x128xf32>
    %322 = math.exp %321 : vector<8x128xf32>
    %cst_89 = arith.constant 1.000000e+00 : f32
    %323 = vector.broadcast %cst_89 : f32 to vector<8x128xf32>
    %324 = arith.addf %323, %322 : vector<8x128xf32>
    %325 = arith.divf %323, %324 : vector<8x128xf32>
    %326 = vector.extract_strided_slice %315 {offsets = [0, 128], sizes = [8, 128], strides = [1, 1]} : vector<8x512xf32> to vector<8x128xf32>
    %327 = arith.negf %326 : vector<8x128xf32>
    %328 = math.exp %327 : vector<8x128xf32>
    %cst_90 = arith.constant 1.000000e+00 : f32
    %329 = vector.broadcast %cst_90 : f32 to vector<8x128xf32>
    %330 = arith.addf %329, %328 : vector<8x128xf32>
    %331 = arith.divf %329, %330 : vector<8x128xf32>
    %332 = vector.extract_strided_slice %315 {offsets = [0, 256], sizes = [8, 128], strides = [1, 1]} : vector<8x512xf32> to vector<8x128xf32>
    %333 = math.tanh %332 : vector<8x128xf32>
    %334 = vector.extract_strided_slice %315 {offsets = [0, 384], sizes = [8, 128], strides = [1, 1]} : vector<8x512xf32> to vector<8x128xf32>
    %335 = arith.negf %334 : vector<8x128xf32>
    %336 = math.exp %335 : vector<8x128xf32>
    %cst_91 = arith.constant 1.000000e+00 : f32
    %337 = vector.broadcast %cst_91 : f32 to vector<8x128xf32>
    %338 = arith.addf %337, %336 : vector<8x128xf32>
    %339 = arith.divf %337, %338 : vector<8x128xf32>
    %340 = arith.mulf %331, %269 : vector<8x128xf32>
    %341 = arith.mulf %325, %333 : vector<8x128xf32>
    %342 = arith.addf %340, %341 : vector<8x128xf32>
    %343 = math.tanh %342 : vector<8x128xf32>
    %344 = arith.mulf %339, %343 : vector<8x128xf32>
    %345 = vector.extract_strided_slice %319 {offsets = [0, 0], sizes = [8, 128], strides = [1, 1]} : vector<8x512xf32> to vector<8x128xf32>
    %346 = arith.negf %345 : vector<8x128xf32>
    %347 = math.exp %346 : vector<8x128xf32>
    %cst_92 = arith.constant 1.000000e+00 : f32
    %348 = vector.broadcast %cst_92 : f32 to vector<8x128xf32>
    %349 = arith.addf %348, %347 : vector<8x128xf32>
    %350 = arith.divf %348, %349 : vector<8x128xf32>
    %351 = vector.extract_strided_slice %319 {offsets = [0, 128], sizes = [8, 128], strides = [1, 1]} : vector<8x512xf32> to vector<8x128xf32>
    %352 = arith.negf %351 : vector<8x128xf32>
    %353 = math.exp %352 : vector<8x128xf32>
    %cst_93 = arith.constant 1.000000e+00 : f32
    %354 = vector.broadcast %cst_93 : f32 to vector<8x128xf32>
    %355 = arith.addf %354, %353 : vector<8x128xf32>
    %356 = arith.divf %354, %355 : vector<8x128xf32>
    %357 = vector.extract_strided_slice %319 {offsets = [0, 256], sizes = [8, 128], strides = [1, 1]} : vector<8x512xf32> to vector<8x128xf32>
    %358 = math.tanh %357 : vector<8x128xf32>
    %359 = vector.extract_strided_slice %319 {offsets = [0, 384], sizes = [8, 128], strides = [1, 1]} : vector<8x512xf32> to vector<8x128xf32>
    %360 = arith.negf %359 : vector<8x128xf32>
    %361 = math.exp %360 : vector<8x128xf32>
    %cst_94 = arith.constant 1.000000e+00 : f32
    %362 = vector.broadcast %cst_94 : f32 to vector<8x128xf32>
    %363 = arith.addf %362, %361 : vector<8x128xf32>
    %364 = arith.divf %362, %363 : vector<8x128xf32>
    %365 = arith.mulf %356, %294 : vector<8x128xf32>
    %366 = arith.mulf %350, %358 : vector<8x128xf32>
    %367 = arith.addf %365, %366 : vector<8x128xf32>
    %368 = math.tanh %367 : vector<8x128xf32>
    %369 = arith.mulf %364, %368 : vector<8x128xf32>
    %370 = arith.index_cast %c4_i32 : i32 to index
    %c0_95 = arith.constant 0 : index
    %c0_96 = arith.constant 0 : index
    %371 = vector.load %arg10[%370, %c0_95, %c0_96] : memref<8x8x128xf32, #tpu.memory_space<vmem>>, vector<1x8x128xf32>
    %372 = vector.shape_cast %371 : vector<1x8x128xf32> to vector<8x128xf32>
    %373 = vector.shape_cast %344 : vector<8x128xf32> to vector<1x8x128xf32>
    tpu.vector_store %arg10[%370, %c0_95, %c0_96], %373 {strides = array<i32>} : memref<8x8x128xf32, #tpu.memory_space<vmem>>, vector<1x8x128xf32>,
    %374 = arith.index_cast %305 : i32 to index
    %c0_97 = arith.constant 0 : index
    %c0_98 = arith.constant 0 : index
    %375 = vector.load %arg11[%374, %c0_97, %c0_98] : memref<8x8x128xf32, #tpu.memory_space<vmem>>, vector<1x8x128xf32>
    %376 = vector.shape_cast %375 : vector<1x8x128xf32> to vector<8x128xf32>
    %377 = vector.shape_cast %369 : vector<8x128xf32> to vector<1x8x128xf32>
    tpu.vector_store %arg11[%374, %c0_97, %c0_98], %377 {strides = array<i32>} : memref<8x8x128xf32, #tpu.memory_space<vmem>>, vector<1x8x128xf32>,
    %c5_i32 = arith.constant 5 : i32
    %c7_i32_99 = arith.constant 7 : i32
    %378 = arith.subi %c7_i32_99, %c5_i32 : i32
    %379 = arith.index_cast %c5_i32 : i32 to index
    %c0_100 = arith.constant 0 : index
    %c0_101 = arith.constant 0 : index
    %380 = vector.load %arg9[%379, %c0_100, %c0_101] : memref<8x8x1024xf32, #tpu.memory_space<vmem>>, vector<1x8x1024xf32>
    %381 = vector.shape_cast %380 : vector<1x8x1024xf32> to vector<8x1024xf32>
    %382 = arith.index_cast %378 : i32 to index
    %c0_102 = arith.constant 0 : index
    %c0_103 = arith.constant 0 : index
    %383 = vector.load %arg9[%382, %c0_102, %c0_103] : memref<8x8x1024xf32, #tpu.memory_space<vmem>>, vector<1x8x1024xf32>
    %384 = vector.shape_cast %383 : vector<1x8x1024xf32> to vector<8x1024xf32>
    %385 = vector.extract_strided_slice %381 {offsets = [0, 0], sizes = [8, 512], strides = [1, 1]} : vector<8x1024xf32> to vector<8x512xf32>
    %386 = arith.truncf %344 : vector<8x128xf32> to vector<8x128xbf16>
    %cst_104 = arith.constant dense<0.000000e+00> : vector<8x512xf32>
    %387 = tpu.matmul %386, %9, %cst_104 {dimension_numbers = #tpu.dot_dimension_numbers<[1], [0], [0], [1], [0, 0, 1, 1], [], []>} : vector<8x128xbf16>, vector<128x512xbf16>, vector<8x512xf32> -> vector<8x512xf32>
    %388 = arith.addf %385, %387 : vector<8x512xf32>
    %389 = vector.extract_strided_slice %384 {offsets = [0, 512], sizes = [8, 512], strides = [1, 1]} : vector<8x1024xf32> to vector<8x512xf32>
    %390 = arith.truncf %369 : vector<8x128xf32> to vector<8x128xbf16>
    %cst_105 = arith.constant dense<0.000000e+00> : vector<8x512xf32>
    %391 = tpu.matmul %390, %10, %cst_105 {dimension_numbers = #tpu.dot_dimension_numbers<[1], [0], [0], [1], [0, 0, 1, 1], [], []>} : vector<8x128xbf16>, vector<128x512xbf16>, vector<8x512xf32> -> vector<8x512xf32>
    %392 = arith.addf %389, %391 : vector<8x512xf32>
    %393 = vector.extract_strided_slice %388 {offsets = [0, 0], sizes = [8, 128], strides = [1, 1]} : vector<8x512xf32> to vector<8x128xf32>
    %394 = arith.negf %393 : vector<8x128xf32>
    %395 = math.exp %394 : vector<8x128xf32>
    %cst_106 = arith.constant 1.000000e+00 : f32
    %396 = vector.broadcast %cst_106 : f32 to vector<8x128xf32>
    %397 = arith.addf %396, %395 : vector<8x128xf32>
    %398 = arith.divf %396, %397 : vector<8x128xf32>
    %399 = vector.extract_strided_slice %388 {offsets = [0, 128], sizes = [8, 128], strides = [1, 1]} : vector<8x512xf32> to vector<8x128xf32>
    %400 = arith.negf %399 : vector<8x128xf32>
    %401 = math.exp %400 : vector<8x128xf32>
    %cst_107 = arith.constant 1.000000e+00 : f32
    %402 = vector.broadcast %cst_107 : f32 to vector<8x128xf32>
    %403 = arith.addf %402, %401 : vector<8x128xf32>
    %404 = arith.divf %402, %403 : vector<8x128xf32>
    %405 = vector.extract_strided_slice %388 {offsets = [0, 256], sizes = [8, 128], strides = [1, 1]} : vector<8x512xf32> to vector<8x128xf32>
    %406 = math.tanh %405 : vector<8x128xf32>
    %407 = vector.extract_strided_slice %388 {offsets = [0, 384], sizes = [8, 128], strides = [1, 1]} : vector<8x512xf32> to vector<8x128xf32>
    %408 = arith.negf %407 : vector<8x128xf32>
    %409 = math.exp %408 : vector<8x128xf32>
    %cst_108 = arith.constant 1.000000e+00 : f32
    %410 = vector.broadcast %cst_108 : f32 to vector<8x128xf32>
    %411 = arith.addf %410, %409 : vector<8x128xf32>
    %412 = arith.divf %410, %411 : vector<8x128xf32>
    %413 = arith.mulf %404, %342 : vector<8x128xf32>
    %414 = arith.mulf %398, %406 : vector<8x128xf32>
    %415 = arith.addf %413, %414 : vector<8x128xf32>
    %416 = math.tanh %415 : vector<8x128xf32>
    %417 = arith.mulf %412, %416 : vector<8x128xf32>
    %418 = vector.extract_strided_slice %392 {offsets = [0, 0], sizes = [8, 128], strides = [1, 1]} : vector<8x512xf32> to vector<8x128xf32>
    %419 = arith.negf %418 : vector<8x128xf32>
    %420 = math.exp %419 : vector<8x128xf32>
    %cst_109 = arith.constant 1.000000e+00 : f32
    %421 = vector.broadcast %cst_109 : f32 to vector<8x128xf32>
    %422 = arith.addf %421, %420 : vector<8x128xf32>
    %423 = arith.divf %421, %422 : vector<8x128xf32>
    %424 = vector.extract_strided_slice %392 {offsets = [0, 128], sizes = [8, 128], strides = [1, 1]} : vector<8x512xf32> to vector<8x128xf32>
    %425 = arith.negf %424 : vector<8x128xf32>
    %426 = math.exp %425 : vector<8x128xf32>
    %cst_110 = arith.constant 1.000000e+00 : f32
    %427 = vector.broadcast %cst_110 : f32 to vector<8x128xf32>
    %428 = arith.addf %427, %426 : vector<8x128xf32>
    %429 = arith.divf %427, %428 : vector<8x128xf32>
    %430 = vector.extract_strided_slice %392 {offsets = [0, 256], sizes = [8, 128], strides = [1, 1]} : vector<8x512xf32> to vector<8x128xf32>
    %431 = math.tanh %430 : vector<8x128xf32>
    %432 = vector.extract_strided_slice %392 {offsets = [0, 384], sizes = [8, 128], strides = [1, 1]} : vector<8x512xf32> to vector<8x128xf32>
    %433 = arith.negf %432 : vector<8x128xf32>
    %434 = math.exp %433 : vector<8x128xf32>
    %cst_111 = arith.constant 1.000000e+00 : f32
    %435 = vector.broadcast %cst_111 : f32 to vector<8x128xf32>
    %436 = arith.addf %435, %434 : vector<8x128xf32>
    %437 = arith.divf %435, %436 : vector<8x128xf32>
    %438 = arith.mulf %429, %367 : vector<8x128xf32>
    %439 = arith.mulf %423, %431 : vector<8x128xf32>
    %440 = arith.addf %438, %439 : vector<8x128xf32>
    %441 = math.tanh %440 : vector<8x128xf32>
    %442 = arith.mulf %437, %441 : vector<8x128xf32>
    %443 = arith.index_cast %c5_i32 : i32 to index
    %c0_112 = arith.constant 0 : index
    %c0_113 = arith.constant 0 : index
    %444 = vector.load %arg10[%443, %c0_112, %c0_113] : memref<8x8x128xf32, #tpu.memory_space<vmem>>, vector<1x8x128xf32>
    %445 = vector.shape_cast %444 : vector<1x8x128xf32> to vector<8x128xf32>
    %446 = vector.shape_cast %417 : vector<8x128xf32> to vector<1x8x128xf32>
    tpu.vector_store %arg10[%443, %c0_112, %c0_113], %446 {strides = array<i32>} : memref<8x8x128xf32, #tpu.memory_space<vmem>>, vector<1x8x128xf32>,
    %447 = arith.index_cast %378 : i32 to index
    %c0_114 = arith.constant 0 : index
    %c0_115 = arith.constant 0 : index
    %448 = vector.load %arg11[%447, %c0_114, %c0_115] : memref<8x8x128xf32, #tpu.memory_space<vmem>>, vector<1x8x128xf32>
    %449 = vector.shape_cast %448 : vector<1x8x128xf32> to vector<8x128xf32>
    %450 = vector.shape_cast %442 : vector<8x128xf32> to vector<1x8x128xf32>
    tpu.vector_store %arg11[%447, %c0_114, %c0_115], %450 {strides = array<i32>} : memref<8x8x128xf32, #tpu.memory_space<vmem>>, vector<1x8x128xf32>,
    %c6_i32 = arith.constant 6 : i32
    %c7_i32_116 = arith.constant 7 : i32
    %451 = arith.subi %c7_i32_116, %c6_i32 : i32
    %452 = arith.index_cast %c6_i32 : i32 to index
    %c0_117 = arith.constant 0 : index
    %c0_118 = arith.constant 0 : index
    %453 = vector.load %arg9[%452, %c0_117, %c0_118] : memref<8x8x1024xf32, #tpu.memory_space<vmem>>, vector<1x8x1024xf32>
    %454 = vector.shape_cast %453 : vector<1x8x1024xf32> to vector<8x1024xf32>
    %455 = arith.index_cast %451 : i32 to index
    %c0_119 = arith.constant 0 : index
    %c0_120 = arith.constant 0 : index
    %456 = vector.load %arg9[%455, %c0_119, %c0_120] : memref<8x8x1024xf32, #tpu.memory_space<vmem>>, vector<1x8x1024xf32>
    %457 = vector.shape_cast %456 : vector<1x8x1024xf32> to vector<8x1024xf32>
    %458 = vector.extract_strided_slice %454 {offsets = [0, 0], sizes = [8, 512], strides = [1, 1]} : vector<8x1024xf32> to vector<8x512xf32>
    %459 = arith.truncf %417 : vector<8x128xf32> to vector<8x128xbf16>
    %cst_121 = arith.constant dense<0.000000e+00> : vector<8x512xf32>
    %460 = tpu.matmul %459, %9, %cst_121 {dimension_numbers = #tpu.dot_dimension_numbers<[1], [0], [0], [1], [0, 0, 1, 1], [], []>} : vector<8x128xbf16>, vector<128x512xbf16>, vector<8x512xf32> -> vector<8x512xf32>
    %461 = arith.addf %458, %460 : vector<8x512xf32>
    %462 = vector.extract_strided_slice %457 {offsets = [0, 512], sizes = [8, 512], strides = [1, 1]} : vector<8x1024xf32> to vector<8x512xf32>
    %463 = arith.truncf %442 : vector<8x128xf32> to vector<8x128xbf16>
    %cst_122 = arith.constant dense<0.000000e+00> : vector<8x512xf32>
    %464 = tpu.matmul %463, %10, %cst_122 {dimension_numbers = #tpu.dot_dimension_numbers<[1], [0], [0], [1], [0, 0, 1, 1], [], []>} : vector<8x128xbf16>, vector<128x512xbf16>, vector<8x512xf32> -> vector<8x512xf32>
    %465 = arith.addf %462, %464 : vector<8x512xf32>
    %466 = vector.extract_strided_slice %461 {offsets = [0, 0], sizes = [8, 128], strides = [1, 1]} : vector<8x512xf32> to vector<8x128xf32>
    %467 = arith.negf %466 : vector<8x128xf32>
    %468 = math.exp %467 : vector<8x128xf32>
    %cst_123 = arith.constant 1.000000e+00 : f32
    %469 = vector.broadcast %cst_123 : f32 to vector<8x128xf32>
    %470 = arith.addf %469, %468 : vector<8x128xf32>
    %471 = arith.divf %469, %470 : vector<8x128xf32>
    %472 = vector.extract_strided_slice %461 {offsets = [0, 128], sizes = [8, 128], strides = [1, 1]} : vector<8x512xf32> to vector<8x128xf32>
    %473 = arith.negf %472 : vector<8x128xf32>
    %474 = math.exp %473 : vector<8x128xf32>
    %cst_124 = arith.constant 1.000000e+00 : f32
    %475 = vector.broadcast %cst_124 : f32 to vector<8x128xf32>
    %476 = arith.addf %475, %474 : vector<8x128xf32>
    %477 = arith.divf %475, %476 : vector<8x128xf32>
    %478 = vector.extract_strided_slice %461 {offsets = [0, 256], sizes = [8, 128], strides = [1, 1]} : vector<8x512xf32> to vector<8x128xf32>
    %479 = math.tanh %478 : vector<8x128xf32>
    %480 = vector.extract_strided_slice %461 {offsets = [0, 384], sizes = [8, 128], strides = [1, 1]} : vector<8x512xf32> to vector<8x128xf32>
    %481 = arith.negf %480 : vector<8x128xf32>
    %482 = math.exp %481 : vector<8x128xf32>
    %cst_125 = arith.constant 1.000000e+00 : f32
    %483 = vector.broadcast %cst_125 : f32 to vector<8x128xf32>
    %484 = arith.addf %483, %482 : vector<8x128xf32>
    %485 = arith.divf %483, %484 : vector<8x128xf32>
    %486 = arith.mulf %477, %415 : vector<8x128xf32>
    %487 = arith.mulf %471, %479 : vector<8x128xf32>
    %488 = arith.addf %486, %487 : vector<8x128xf32>
    %489 = math.tanh %488 : vector<8x128xf32>
    %490 = arith.mulf %485, %489 : vector<8x128xf32>
    %491 = vector.extract_strided_slice %465 {offsets = [0, 0], sizes = [8, 128], strides = [1, 1]} : vector<8x512xf32> to vector<8x128xf32>
    %492 = arith.negf %491 : vector<8x128xf32>
    %493 = math.exp %492 : vector<8x128xf32>
    %cst_126 = arith.constant 1.000000e+00 : f32
    %494 = vector.broadcast %cst_126 : f32 to vector<8x128xf32>
    %495 = arith.addf %494, %493 : vector<8x128xf32>
    %496 = arith.divf %494, %495 : vector<8x128xf32>
    %497 = vector.extract_strided_slice %465 {offsets = [0, 128], sizes = [8, 128], strides = [1, 1]} : vector<8x512xf32> to vector<8x128xf32>
    %498 = arith.negf %497 : vector<8x128xf32>
    %499 = math.exp %498 : vector<8x128xf32>
    %cst_127 = arith.constant 1.000000e+00 : f32
    %500 = vector.broadcast %cst_127 : f32 to vector<8x128xf32>
    %501 = arith.addf %500, %499 : vector<8x128xf32>
    %502 = arith.divf %500, %501 : vector<8x128xf32>
    %503 = vector.extract_strided_slice %465 {offsets = [0, 256], sizes = [8, 128], strides = [1, 1]} : vector<8x512xf32> to vector<8x128xf32>
    %504 = math.tanh %503 : vector<8x128xf32>
    %505 = vector.extract_strided_slice %465 {offsets = [0, 384], sizes = [8, 128], strides = [1, 1]} : vector<8x512xf32> to vector<8x128xf32>
    %506 = arith.negf %505 : vector<8x128xf32>
    %507 = math.exp %506 : vector<8x128xf32>
    %cst_128 = arith.constant 1.000000e+00 : f32
    %508 = vector.broadcast %cst_128 : f32 to vector<8x128xf32>
    %509 = arith.addf %508, %507 : vector<8x128xf32>
    %510 = arith.divf %508, %509 : vector<8x128xf32>
    %511 = arith.mulf %502, %440 : vector<8x128xf32>
    %512 = arith.mulf %496, %504 : vector<8x128xf32>
    %513 = arith.addf %511, %512 : vector<8x128xf32>
    %514 = math.tanh %513 : vector<8x128xf32>
    %515 = arith.mulf %510, %514 : vector<8x128xf32>
    %516 = arith.index_cast %c6_i32 : i32 to index
    %c0_129 = arith.constant 0 : index
    %c0_130 = arith.constant 0 : index
    %517 = vector.load %arg10[%516, %c0_129, %c0_130] : memref<8x8x128xf32, #tpu.memory_space<vmem>>, vector<1x8x128xf32>
    %518 = vector.shape_cast %517 : vector<1x8x128xf32> to vector<8x128xf32>
    %519 = vector.shape_cast %490 : vector<8x128xf32> to vector<1x8x128xf32>
    tpu.vector_store %arg10[%516, %c0_129, %c0_130], %519 {strides = array<i32>} : memref<8x8x128xf32, #tpu.memory_space<vmem>>, vector<1x8x128xf32>,
    %520 = arith.index_cast %451 : i32 to index
    %c0_131 = arith.constant 0 : index
    %c0_132 = arith.constant 0 : index
    %521 = vector.load %arg11[%520, %c0_131, %c0_132] : memref<8x8x128xf32, #tpu.memory_space<vmem>>, vector<1x8x128xf32>
    %522 = vector.shape_cast %521 : vector<1x8x128xf32> to vector<8x128xf32>
    %523 = vector.shape_cast %515 : vector<8x128xf32> to vector<1x8x128xf32>
    tpu.vector_store %arg11[%520, %c0_131, %c0_132], %523 {strides = array<i32>} : memref<8x8x128xf32, #tpu.memory_space<vmem>>, vector<1x8x128xf32>,
    %c7_i32_133 = arith.constant 7 : i32
    %c7_i32_134 = arith.constant 7 : i32
    %524 = arith.subi %c7_i32_134, %c7_i32_133 : i32
    %525 = arith.index_cast %c7_i32_133 : i32 to index
    %c0_135 = arith.constant 0 : index
    %c0_136 = arith.constant 0 : index
    %526 = vector.load %arg9[%525, %c0_135, %c0_136] : memref<8x8x1024xf32, #tpu.memory_space<vmem>>, vector<1x8x1024xf32>
    %527 = vector.shape_cast %526 : vector<1x8x1024xf32> to vector<8x1024xf32>
    %528 = arith.index_cast %524 : i32 to index
    %c0_137 = arith.constant 0 : index
    %c0_138 = arith.constant 0 : index
    %529 = vector.load %arg9[%528, %c0_137, %c0_138] : memref<8x8x1024xf32, #tpu.memory_space<vmem>>, vector<1x8x1024xf32>
    %530 = vector.shape_cast %529 : vector<1x8x1024xf32> to vector<8x1024xf32>
    %531 = vector.extract_strided_slice %527 {offsets = [0, 0], sizes = [8, 512], strides = [1, 1]} : vector<8x1024xf32> to vector<8x512xf32>
    %532 = arith.truncf %490 : vector<8x128xf32> to vector<8x128xbf16>
    %cst_139 = arith.constant dense<0.000000e+00> : vector<8x512xf32>
    %533 = tpu.matmul %532, %9, %cst_139 {dimension_numbers = #tpu.dot_dimension_numbers<[1], [0], [0], [1], [0, 0, 1, 1], [], []>} : vector<8x128xbf16>, vector<128x512xbf16>, vector<8x512xf32> -> vector<8x512xf32>
    %534 = arith.addf %531, %533 : vector<8x512xf32>
    %535 = vector.extract_strided_slice %530 {offsets = [0, 512], sizes = [8, 512], strides = [1, 1]} : vector<8x1024xf32> to vector<8x512xf32>
    %536 = arith.truncf %515 : vector<8x128xf32> to vector<8x128xbf16>
    %cst_140 = arith.constant dense<0.000000e+00> : vector<8x512xf32>
    %537 = tpu.matmul %536, %10, %cst_140 {dimension_numbers = #tpu.dot_dimension_numbers<[1], [0], [0], [1], [0, 0, 1, 1], [], []>} : vector<8x128xbf16>, vector<128x512xbf16>, vector<8x512xf32> -> vector<8x512xf32>
    %538 = arith.addf %535, %537 : vector<8x512xf32>
    %539 = vector.extract_strided_slice %534 {offsets = [0, 0], sizes = [8, 128], strides = [1, 1]} : vector<8x512xf32> to vector<8x128xf32>
    %540 = arith.negf %539 : vector<8x128xf32>
    %541 = math.exp %540 : vector<8x128xf32>
    %cst_141 = arith.constant 1.000000e+00 : f32
    %542 = vector.broadcast %cst_141 : f32 to vector<8x128xf32>
    %543 = arith.addf %542, %541 : vector<8x128xf32>
    %544 = arith.divf %542, %543 : vector<8x128xf32>
    %545 = vector.extract_strided_slice %534 {offsets = [0, 128], sizes = [8, 128], strides = [1, 1]} : vector<8x512xf32> to vector<8x128xf32>
    %546 = arith.negf %545 : vector<8x128xf32>
    %547 = math.exp %546 : vector<8x128xf32>
    %cst_142 = arith.constant 1.000000e+00 : f32
    %548 = vector.broadcast %cst_142 : f32 to vector<8x128xf32>
    %549 = arith.addf %548, %547 : vector<8x128xf32>
    %550 = arith.divf %548, %549 : vector<8x128xf32>
    %551 = vector.extract_strided_slice %534 {offsets = [0, 256], sizes = [8, 128], strides = [1, 1]} : vector<8x512xf32> to vector<8x128xf32>
    %552 = math.tanh %551 : vector<8x128xf32>
    %553 = vector.extract_strided_slice %534 {offsets = [0, 384], sizes = [8, 128], strides = [1, 1]} : vector<8x512xf32> to vector<8x128xf32>
    %554 = arith.negf %553 : vector<8x128xf32>
    %555 = math.exp %554 : vector<8x128xf32>
    %cst_143 = arith.constant 1.000000e+00 : f32
    %556 = vector.broadcast %cst_143 : f32 to vector<8x128xf32>
    %557 = arith.addf %556, %555 : vector<8x128xf32>
    %558 = arith.divf %556, %557 : vector<8x128xf32>
    %559 = arith.mulf %550, %488 : vector<8x128xf32>
    %560 = arith.mulf %544, %552 : vector<8x128xf32>
    %561 = arith.addf %559, %560 : vector<8x128xf32>
    %562 = math.tanh %561 : vector<8x128xf32>
    %563 = arith.mulf %558, %562 : vector<8x128xf32>
    %564 = vector.extract_strided_slice %538 {offsets = [0, 0], sizes = [8, 128], strides = [1, 1]} : vector<8x512xf32> to vector<8x128xf32>
    %565 = arith.negf %564 : vector<8x128xf32>
    %566 = math.exp %565 : vector<8x128xf32>
    %cst_144 = arith.constant 1.000000e+00 : f32
    %567 = vector.broadcast %cst_144 : f32 to vector<8x128xf32>
    %568 = arith.addf %567, %566 : vector<8x128xf32>
    %569 = arith.divf %567, %568 : vector<8x128xf32>
    %570 = vector.extract_strided_slice %538 {offsets = [0, 128], sizes = [8, 128], strides = [1, 1]} : vector<8x512xf32> to vector<8x128xf32>
    %571 = arith.negf %570 : vector<8x128xf32>
    %572 = math.exp %571 : vector<8x128xf32>
    %cst_145 = arith.constant 1.000000e+00 : f32
    %573 = vector.broadcast %cst_145 : f32 to vector<8x128xf32>
    %574 = arith.addf %573, %572 : vector<8x128xf32>
    %575 = arith.divf %573, %574 : vector<8x128xf32>
    %576 = vector.extract_strided_slice %538 {offsets = [0, 256], sizes = [8, 128], strides = [1, 1]} : vector<8x512xf32> to vector<8x128xf32>
    %577 = math.tanh %576 : vector<8x128xf32>
    %578 = vector.extract_strided_slice %538 {offsets = [0, 384], sizes = [8, 128], strides = [1, 1]} : vector<8x512xf32> to vector<8x128xf32>
    %579 = arith.negf %578 : vector<8x128xf32>
    %580 = math.exp %579 : vector<8x128xf32>
    %cst_146 = arith.constant 1.000000e+00 : f32
    %581 = vector.broadcast %cst_146 : f32 to vector<8x128xf32>
    %582 = arith.addf %581, %580 : vector<8x128xf32>
    %583 = arith.divf %581, %582 : vector<8x128xf32>
    %584 = arith.mulf %575, %513 : vector<8x128xf32>
    %585 = arith.mulf %569, %577 : vector<8x128xf32>
    %586 = arith.addf %584, %585 : vector<8x128xf32>
    %587 = math.tanh %586 : vector<8x128xf32>
    %588 = arith.mulf %583, %587 : vector<8x128xf32>
    %589 = arith.index_cast %c7_i32_133 : i32 to index
    %c0_147 = arith.constant 0 : index
    %c0_148 = arith.constant 0 : index
    %590 = vector.load %arg10[%589, %c0_147, %c0_148] : memref<8x8x128xf32, #tpu.memory_space<vmem>>, vector<1x8x128xf32>
    %591 = vector.shape_cast %590 : vector<1x8x128xf32> to vector<8x128xf32>
    %592 = vector.shape_cast %563 : vector<8x128xf32> to vector<1x8x128xf32>
    tpu.vector_store %arg10[%589, %c0_147, %c0_148], %592 {strides = array<i32>} : memref<8x8x128xf32, #tpu.memory_space<vmem>>, vector<1x8x128xf32>,
    %593 = arith.index_cast %524 : i32 to index
    %c0_149 = arith.constant 0 : index
    %c0_150 = arith.constant 0 : index
    %594 = vector.load %arg11[%593, %c0_149, %c0_150] : memref<8x8x128xf32, #tpu.memory_space<vmem>>, vector<1x8x128xf32>
    %595 = vector.shape_cast %594 : vector<1x8x128xf32> to vector<8x128xf32>
    %596 = vector.shape_cast %588 : vector<8x128xf32> to vector<1x8x128xf32>
    tpu.vector_store %arg11[%593, %c0_149, %c0_150], %596 {strides = array<i32>} : memref<8x8x128xf32, #tpu.memory_space<vmem>>, vector<1x8x128xf32>,
    %c8_i32 = arith.constant 8 : i32
    %c0_151 = arith.constant 0 : index
    %c0_152 = arith.constant 0 : index
    %c0_153 = arith.constant 0 : index
    %597 = vector.load %arg10[%c0_151, %c0_152, %c0_153] : memref<8x8x128xf32, #tpu.memory_space<vmem>>, vector<8x8x128xf32>
    %598 = vector.shape_cast %597 : vector<8x8x128xf32> to vector<64x128xf32>
    %599 = arith.truncf %598 : vector<64x128xf32> to vector<64x128xbf16>
    %c0_154 = arith.constant 0 : index
    %c0_155 = arith.constant 0 : index
    %c0_156 = arith.constant 0 : index
    %600 = vector.load %arg11[%c0_154, %c0_155, %c0_156] : memref<8x8x128xf32, #tpu.memory_space<vmem>>, vector<8x8x128xf32>
    %601 = vector.shape_cast %600 : vector<8x8x128xf32> to vector<64x128xf32>
    %602 = arith.truncf %601 : vector<64x128xf32> to vector<64x128xbf16>
    %c0_157 = arith.constant 0 : index
    %c0_158 = arith.constant 0 : index
    %603 = vector.load %arg5[%c0_157, %c0_158] : memref<128x128xbf16, #tpu.memory_space<vmem>>, vector<128x128xbf16>
    %cst_159 = arith.constant dense<0.000000e+00> : vector<64x128xf32>
    %604 = tpu.matmul %599, %603, %cst_159 {dimension_numbers = #tpu.dot_dimension_numbers<[1], [0], [0], [1], [0, 0, 1, 1], [], []>} : vector<64x128xbf16>, vector<128x128xbf16>, vector<64x128xf32> -> vector<64x128xf32>
    %c0_160 = arith.constant 0 : index
    %c0_161 = arith.constant 0 : index
    %605 = vector.load %arg6[%c0_160, %c0_161] : memref<128x128xbf16, #tpu.memory_space<vmem>>, vector<128x128xbf16>
    %cst_162 = arith.constant dense<0.000000e+00> : vector<64x128xf32>
    %606 = tpu.matmul %602, %605, %cst_162 {dimension_numbers = #tpu.dot_dimension_numbers<[1], [0], [0], [1], [0, 0, 1, 1], [], []>} : vector<64x128xbf16>, vector<128x128xbf16>, vector<64x128xf32> -> vector<64x128xf32>
    %607 = arith.addf %604, %606 : vector<64x128xf32>
    %c0_163 = arith.constant 0 : index
    %c0_164 = arith.constant 0 : index
    %608 = vector.load %arg7[%c0_163, %c0_164] : memref<1x128xf32, #tpu.memory_space<vmem>>, vector<1x128xf32>
    %609 = vector.broadcast %608 : vector<1x128xf32> to vector<64x128xf32>
    %610 = arith.addf %607, %609 : vector<64x128xf32>
    %611 = vector.shape_cast %610 : vector<64x128xf32> to vector<8x8x128xf32>
    %c0_165 = arith.constant 0 : index
    %c0_166 = arith.constant 0 : index
    %c0_167 = arith.constant 0 : index
    %612 = vector.load %arg8[%c0_165, %c0_166, %c0_167] : memref<8x8x128xf32, #tpu.memory_space<vmem>>, vector<8x8x128xf32>
    tpu.vector_store %arg8[%c0_165, %c0_166, %c0_167], %611 {strides = array<i32>} : memref<8x8x128xf32, #tpu.memory_space<vmem>>, vector<8x8x128xf32>,
    return
  }
}

</mosaic_0001>

<bundles_post_ra>
// kernel: custom-call.5
= control target key start
LH: loop header
LB: loop body
LE: loop exit
PB: predicated region body
PF: predicated region fallthrough
CT: control target
= control target key end

     0   :  { %s6_s0 = inlined_call_operand.vmem [shape: s32[7,2,2], index: 0, kind: output, shape index: {}]  }

// kernel: custom-call.6
= control target key start
LH: loop header
LB: loop body
LE: loop exit
PB: predicated region body
PF: predicated region fallthrough
CT: control target
= control target key end

     0   :  { %s6_s0 = inlined_call_operand.vmem [shape: s32[7,2], index: 0, kind: output, shape index: {}]  }

// kernel: text_classifier_forward.1
= control target key start
LH: loop header
LB: loop body
LE: loop exit
PB: predicated region body
PF: predicated region fallthrough
CT: control target
= control target key end

     0   :  { %s6593_s1 = inlined_call_operand.vmem [shape: bf16[128,1024], index: 1, kind: input, shape index: {}]   ;;  %s6594_s0 = inlined_call_operand.vmem [shape: bf16[8,8,128], index: 0, kind: input, shape index: {}]   ;;  %s6595_s2 = inlined_call_operand.vmem [shape: bf16[128,512], index: 2, kind: input, shape index: {}]   ;;  %s6596_s3 = inlined_call_operand.vmem [shape: bf16[128,512], index: 3, kind: input, shape index: {}]   ;;  %s6597_s4 = inlined_call_operand.vmem [shape: f32[1,1024], index: 4, kind: input, shape index: {}]   ;;  %s6598_s5 = inlined_call_operand.vmem [shape: bf16[128,128], index: 5, kind: input, shape index: {}]   ;;  %s6599_s6 = inlined_call_operand.vmem [shape: bf16[128,128], index: 6, kind: input, shape index: {}]   ;;  %s6600_s7 = inlined_call_operand.vmem [shape: f32[1,128], index: 7, kind: input, shape index: {}]   ;;  %s6601_s8 = inlined_call_operand.vmem [shape: f32[8,8,128], index: 8, kind: output, shape index: {}]  }
   0x1   :  { %v3639_v0 = vld [vmem:[%s6593_s1 + $0x1c0] sm:$0xf]  ;;  %v4097_v2 = vld [vmem:[%s6593_s1 + $0x1c4] sm:$0xf]  ;;  %v4098_v46 = vld [vmem:[%s6593_s1 + $0x1cc] sm:$0xf] }
   0x2   :  { %v4101_v1 = vld [vmem:[%s6593_s1 + $0x1dc] sm:$0xf0]  ;;  %v3641_v4 = vld [vmem:[%s6593_s1 + $0x1e0] sm:$0xf0]  ;;  %v3649_v47 = vld [vmem:[%s6593_s1 + $0x1e8] sm:$0xf0] }
   0x3   :  { %v3640_v3 = vor.u32 %v4101_v1, %v3639_v0  ;;  %v3607_v5 = vld [vmem:[%s6593_s1 + $0x180] sm:$0xf]  ;;  %v3644_v7 = vor.u32 %v4097_v2, %v3641_v4  ;;  %v4089_v8 = vld [vmem:[%s6593_s1 + $0x184] sm:$0xf]  ;;  %v3647_v48 = vld [vmem:[%s6593_s1 + $0x1c8] sm:$0xf]  ;;  %v3652_v56 = vor.u32 %v4098_v46, %v3649_v47 }
   0x4   :  { %v4093_v6 = vld [vmem:[%s6593_s1 + $0x19c] sm:$0xf0]  ;;  %v3609_v9 = vld [vmem:[%s6593_s1 + $0x1a0] sm:$0xf0]  ;;  %v4102_v49 = vld [vmem:[%s6593_s1 + $0x1e4] sm:$0xf0] }
   0x5   :  { %464 = vmatpush.bf16.msra.mxu0 %v3640_v3  ;;  %4185 = vmatpush.bf16.msra.mxu2 %v3640_v3  ;;  %v3608_v10 = vor.u32 %v4093_v6, %v3607_v5  ;;  %v3612_v11 = vor.u32 %v4089_v8, %v3609_v9  ;;  %v3575_v12 = vld [vmem:[%s6593_s1 + $0x140] sm:$0xf]  ;;  %v4081_v14 = vld [vmem:[%s6593_s1 + $0x144] sm:$0xf]  ;;  %v4621_v53 = vld [vmem:[%s6594_s0 + $0x10] sm:$0xff]  ;;  %v3648_v57 = vor.u32 %v4102_v49, %v3647_v48 }
   0x6   :  { %493 = vmatpush.bf16.msra.mxu1 %v3644_v7  ;;  %4193 = vmatpush.bf16.msra.mxu3 %v3644_v7  ;;  %v4085_v13 = vld [vmem:[%s6593_s1 + $0x15c] sm:$0xf0]  ;;  %v3577_v15 = vld [vmem:[%s6593_s1 + $0x160] sm:$0xf0]  ;;  %v3655_v54 = vld [vmem:[%s6593_s1 + $0x1d0] sm:$0xf] }
   0x7   :  { %v3576_v16 = vor.u32 %v4085_v13, %v3575_v12  ;;  %v3580_v17 = vor.u32 %v4081_v14, %v3577_v15  ;;  %v3543_v18 = vld [vmem:[%s6593_s1 + $0x100] sm:$0xf]  ;;  %v4073_v20 = vld [vmem:[%s6593_s1 + $0x104] sm:$0xf]  ;;  %v4103_v55 = vld [vmem:[%s6593_s1 + $0x1ec] sm:$0xf0] }
   0x8   :  { %v4077_v19 = vld [vmem:[%s6593_s1 + $0x11c] sm:$0xf0]  ;;  %v3545_v21 = vld [vmem:[%s6593_s1 + $0x120] sm:$0xf0]  ;;  %v4099_v58 = vld [vmem:[%s6593_s1 + $0x1d4] sm:$0xf]  ;;  %v3656_v0 = vor.u32 %v4103_v55, %v3655_v54 }
   0x9   :  { %465 = vmatpush.bf16.msra.mxu0 %v3608_v10  ;;  %4186 = vmatpush.bf16.msra.mxu2 %v3608_v10  ;;  %v3544_v22 = vor.u32 %v4077_v19, %v3543_v18  ;;  %v3548_v23 = vor.u32 %v4073_v20, %v3545_v21  ;;  %v3511_v24 = vld [vmem:[%s6593_s1 + $0xc0] sm:$0xf]  ;;  %v4065_v26 = vld [vmem:[%s6593_s1 + $0xc4] sm:$0xf]  ;;  %v3657_v59 = vld [vmem:[%s6593_s1 + $0x1f0] sm:$0xf0] }
   0xa   :  { %494 = vmatpush.bf16.msra.mxu1 %v3612_v11  ;;  %4194 = vmatpush.bf16.msra.mxu3 %v3612_v11  ;;  %v4069_v25 = vld [vmem:[%s6593_s1 + $0xdc] sm:$0xf0]  ;;  %v3513_v27 = vld [vmem:[%s6593_s1 + $0xe0] sm:$0xf0]  ;;  %v4090_v60 = vld [vmem:[%s6593_s1 + $0x18c] sm:$0xf]  ;;  %v3660_v1 = vor.u32 %v4099_v58, %v3657_v59 }
   0xb   :  { %v3512_v28 = vor.u32 %v4069_v25, %v3511_v24  ;;  %v3516_v29 = vor.u32 %v4065_v26, %v3513_v27  ;;  %v3479_v30 = vld [vmem:[%s6593_s1 + $0x80] sm:$0xf]  ;;  %v4057_v32 = vld [vmem:[%s6593_s1 + $0x84] sm:$0xf]  ;;  %v3617_v61 = vld [vmem:[%s6593_s1 + $0x1a8] sm:$0xf0] }
   0xc   :  { %v4061_v31 = vld [vmem:[%s6593_s1 + $0x9c] sm:$0xf0]  ;;  %v3481_v33 = vld [vmem:[%s6593_s1 + $0xa0] sm:$0xf0]  ;;  %v3615_v62 = vld [vmem:[%s6593_s1 + $0x188] sm:$0xf]  ;;  %v3620_v4 = vor.u32 %v4090_v60, %v3617_v61 }
   0xd   :  { %466 = vmatpush.bf16.msra.mxu0 %v3576_v16  ;;  %4187 = vmatpush.bf16.msra.mxu2 %v3576_v16  ;;  %v3480_v34 = vor.u32 %v4061_v31, %v3479_v30  ;;  %v3484_v35 = vor.u32 %v4057_v32, %v3481_v33  ;;  %v3447_v36 = vld [vmem:[%s6593_s1 + $0x40] sm:$0xf]  ;;  %v4049_v38 = vld [vmem:[%s6593_s1 + $0x44] sm:$0xf]  ;;  %v4094_v63 = vld [vmem:[%s6593_s1 + $0x1a4] sm:$0xf0] }
   0xe   :  { %495 = vmatpush.bf16.msra.mxu1 %v3580_v17  ;;  %4195 = vmatpush.bf16.msra.mxu3 %v3580_v17  ;;  %v4053_v37 = vld [vmem:[%s6593_s1 + $0x5c] sm:$0xf0]  ;;  %v3449_v39 = vld [vmem:[%s6593_s1 + $0x60] sm:$0xf0]  ;;  %v3623_v2 = vld [vmem:[%s6593_s1 + $0x190] sm:$0xf]  ;;  %v3616_v5 = vor.u32 %v4094_v63, %v3615_v62 }
   0xf   :  { %v3448_v40 = vor.u32 %v4053_v37, %v3447_v36  ;;  %v3452_v41 = vor.u32 %v4049_v38, %v3449_v39  ;;  %v3415_v42 = vld [vmem:[%s6593_s1] sm:$0xf]  ;;  %v4041_v44 = vld [vmem:[%s6593_s1 + $0x4] sm:$0xf]  ;;  %v4095_v3 = vld [vmem:[%s6593_s1 + $0x1ac] sm:$0xf0] }
  0x10   :  { %v4045_v43 = vld [vmem:[%s6593_s1 + $0x1c] sm:$0xf0]  ;;  %v3417_v45 = vld [vmem:[%s6593_s1 + $0x20] sm:$0xf0]  ;;  %v4091_v6 = vld [vmem:[%s6593_s1 + $0x194] sm:$0xf]  ;;  %v3624_v12 = vor.u32 %v4095_v3, %v3623_v2 }
  0x11   :  { %467 = vmatpush.bf16.msra.mxu0 %v3544_v22  ;;  %4188 = vmatpush.bf16.msra.mxu2 %v3544_v22  ;;  %v3416_v50 = vor.u32 %v4045_v43, %v3415_v42  ;;  %v3420_v51 = vor.u32 %v4041_v44, %v3417_v45  ;;  %v4616_v52 = vld [vmem:[%s6594_s0] sm:$0xff]  ;;  %v3625_v7 = vld [vmem:[%s6593_s1 + $0x1b0] sm:$0xf0]  ;;  %v4082_v8 = vld [vmem:[%s6593_s1 + $0x14c] sm:$0xf] }
  0x12   :  { %496 = vmatpush.bf16.msra.mxu1 %v3548_v23  ;;  %4196 = vmatpush.bf16.msra.mxu3 %v3548_v23  ;;  %v3585_v9 = vld [vmem:[%s6593_s1 + $0x168] sm:$0xf0]  ;;  %v3583_v10 = vld [vmem:[%s6593_s1 + $0x148] sm:$0xf]  ;;  %v3628_v13 = vor.u32 %v4091_v6, %v3625_v7  ;;  %v3591_v14 = vld [vmem:[%s6593_s1 + $0x150] sm:$0xf] }
  0x13   :  { %v4086_v11 = vld [vmem:[%s6593_s1 + $0x164] sm:$0xf0]  ;;  %v4087_v15 = vld [vmem:[%s6593_s1 + $0x16c] sm:$0xf0]  ;;  %v3588_v16 = vor.u32 %v4082_v8, %v3585_v9  ;;  %v4083_v18 = vld [vmem:[%s6593_s1 + $0x154] sm:$0xf] }
  0x14   :  { %v3584_v17 = vor.u32 %v4086_v11, %v3583_v10  ;;  %v3593_v19 = vld [vmem:[%s6593_s1 + $0x170] sm:$0xf0]  ;;  %v4074_v20 = vld [vmem:[%s6593_s1 + $0x10c] sm:$0xf]  ;;  %v3551_v22 = vld [vmem:[%s6593_s1 + $0x108] sm:$0xf]  ;;  %v3592_v24 = vor.u32 %v4087_v15, %v3591_v14 }
  0x15   :  { %468 = vmatpush.bf16.msra.mxu0 %v3512_v28  ;;  %4189 = vmatpush.bf16.msra.mxu2 %v3512_v28  ;;  %v3553_v21 = vld [vmem:[%s6593_s1 + $0x128] sm:$0xf0]  ;;  %v4078_v23 = vld [vmem:[%s6593_s1 + $0x124] sm:$0xf0]  ;;  %v3596_v25 = vor.u32 %v4083_v18, %v3593_v19  ;;  %v3559_v26 = vld [vmem:[%s6593_s1 + $0x110] sm:$0xf] }
  0x16   :  { %497 = vmatpush.bf16.msra.mxu1 %v3516_v29  ;;  %4197 = vmatpush.bf16.msra.mxu3 %v3516_v29  ;;  %v4079_v27 = vld [vmem:[%s6593_s1 + $0x12c] sm:$0xf0]  ;;  %v3556_v28 = vor.u32 %v4074_v20, %v3553_v21  ;;  %v3552_v29 = vor.u32 %v4078_v23, %v3551_v22  ;;  %v4075_v30 = vld [vmem:[%s6593_s1 + $0x114] sm:$0xf]  ;;  %v4066_v32 = vld [vmem:[%s6593_s1 + $0xcc] sm:$0xf] }
  0x17   :  { %v3561_v31 = vld [vmem:[%s6593_s1 + $0x130] sm:$0xf0]  ;;  %v3521_v33 = vld [vmem:[%s6593_s1 + $0xe8] sm:$0xf0]  ;;  %v3560_v36 = vor.u32 %v4079_v27, %v3559_v26  ;;  %v4731_v39 = vld [vmem:[%s6594_s0 + $0x18] sm:$0xff] }
  0x18   :  { %v3564_v37 = vor.u32 %v4075_v30, %v3561_v31  ;;  %v4726_v38 = vld [vmem:[%s6594_s0 + $0x8] sm:$0xff]  ;;  %v3524_v42 = vor.u32 %v4066_v32, %v3521_v33  ;;  %v4067_v44 = vld [vmem:[%s6593_s1 + $0xd4] sm:$0xf]  ;;  %v3495_v54 = vld [vmem:[%s6593_s1 + $0x90] sm:$0xf] }
  0x19   :  { %469 = vmatpush.bf16.msra.mxu0 %v3480_v34  ;;  %4190 = vmatpush.bf16.msra.mxu2 %v3480_v34  ;;  %v3519_v34 = vld [vmem:[%s6593_s1 + $0xc8] sm:$0xf]  ;;  %v3529_v45 = vld [vmem:[%s6593_s1 + $0xf0] sm:$0xf0]  ;;  %v4058_v46 = vld [vmem:[%s6593_s1 + $0x8c] sm:$0xf] }
  0x1a   :  { %498 = vmatpush.bf16.msra.mxu1 %v3484_v35  ;;  %4198 = vmatpush.bf16.msra.mxu3 %v3484_v35  ;;  %v4070_v35 = vld [vmem:[%s6593_s1 + $0xe4] sm:$0xf0]  ;;  %v3489_v47 = vld [vmem:[%s6593_s1 + $0xa8] sm:$0xf0]  ;;  %v4063_v55 = vld [vmem:[%s6593_s1 + $0xac] sm:$0xf0] }
  0x1b   :  { %v3520_v43 = vor.u32 %v4070_v35, %v3519_v34  ;;  %v3487_v48 = vld [vmem:[%s6593_s1 + $0x88] sm:$0xf]  ;;  %v4059_v58 = vld [vmem:[%s6593_s1 + $0x94] sm:$0xf]  ;;  %v4050_v60 = vld [vmem:[%s6593_s1 + $0x4c] sm:$0xf] }
  0x1c   :  { %v4062_v49 = vld [vmem:[%s6593_s1 + $0xa4] sm:$0xf0]  ;;  %v3497_v59 = vld [vmem:[%s6593_s1 + $0xb0] sm:$0xf0]  ;;  %v3457_v61 = vld [vmem:[%s6593_s1 + $0x68] sm:$0xf0] }
  0x1d   :  { %470 = vmatpush.bf16.msra.mxu0 %v3448_v40  ;;  %4191 = vmatpush.bf16.msra.mxu2 %v3448_v40  ;;  %v3527_v40 = vld [vmem:[%s6593_s1 + $0xd0] sm:$0xf]  ;;  %v3455_v62 = vld [vmem:[%s6593_s1 + $0x48] sm:$0xf]  ;;  %v3465_v7 = vld [vmem:[%s6593_s1 + $0x70] sm:$0xf0] }
  0x1e   :  { %499 = vmatpush.bf16.msra.mxu1 %v3452_v41  ;;  %4199 = vmatpush.bf16.msra.mxu3 %v3452_v41  ;;  %v4071_v41 = vld [vmem:[%s6593_s1 + $0xec] sm:$0xf0]  ;;  %v4054_v63 = vld [vmem:[%s6593_s1 + $0x64] sm:$0xf0]  ;;  %v4042_v8 = vld [vmem:[%s6593_s1 + $0xc] sm:$0xf] }
  0x1f   :  { %v3463_v2 = vld [vmem:[%s6593_s1 + $0x50] sm:$0xf]  ;;  %v3456_v6 = vor.u32 %v4054_v63, %v3455_v62  ;;  %v3425_v9 = vld [vmem:[%s6593_s1 + $0x28] sm:$0xf0]  ;;  %v3423_v10 = vld [vmem:[%s6593_s1 + $0x8] sm:$0xf] }
  0x20   :  { %v4055_v3 = vld [vmem:[%s6593_s1 + $0x6c] sm:$0xf0]  ;;  %v4046_v11 = vld [vmem:[%s6593_s1 + $0x24] sm:$0xf0]  ;;  %v3663_v14 = vld [vmem:[%s6593_s1 + $0x1d8] sm:$0xf]  ;;  %v3428_v19 = vor.u32 %v4042_v8, %v3425_v9 }
  0x21   :  { %471 = vmatpush.bf16.msra.mxu0 %v3416_v50  ;;  %4192 = vmatpush.bf16.msra.mxu2 %v3416_v50  ;;  %v3528_v50 = vor.u32 %v4071_v41, %v3527_v40  ;;  %v4104_v15 = vld [vmem:[%s6593_s1 + $0x1f4] sm:$0xf0]  ;;  %v3431_v18 = vld [vmem:[%s6593_s1 + $0x10] sm:$0xf]  ;;  %v3424_v20 = vor.u32 %v4046_v11, %v3423_v10  ;;  %v4043_v22 = vld [vmem:[%s6593_s1 + $0x14] sm:$0xf] }
  0x22   :  { %500 = vmatpush.bf16.msra.mxu1 %v3420_v51  ;;  %4200 = vmatpush.bf16.msra.mxu3 %v3420_v51  ;;  %v3532_v51 = vor.u32 %v4067_v44, %v3529_v45  ;;  %v4047_v21 = vld [vmem:[%s6593_s1 + $0x2c] sm:$0xf0]  ;;  %v3433_v23 = vld [vmem:[%s6593_s1 + $0x30] sm:$0xf0]  ;;  %v4092_v26 = vld [vmem:[%s6593_s1 + $0x19c] sm:$0xf] }
  0x23   :  { %v3633_v27 = vld [vmem:[%s6593_s1 + $0x1b8] sm:$0xf0]  ;;  %v3631_v30 = vld [vmem:[%s6593_s1 + $0x198] sm:$0xf]  ;;  %v3783_v41 = vld [vmem:[%s6595_s2 + $0xe0] sm:$0xf] }
  0x24   :  { %472 = vmatmul.bf16.vlgmr.msra.gmra.mxu0 %v4616_v52  ;;  %482 = vmatmul.bf16.vlgmr.msra.gmra.mxu2 %v4621_v53  ;;  %v4096_v31 = vld [vmem:[%s6593_s1 + $0x1b4] sm:$0xf0]  ;;  %v3636_v32 = vor.u32 %v4092_v26, %v3633_v27  ;;  %v4084_v33 = vld [vmem:[%s6593_s1 + $0x15c] sm:$0xf]  ;;  %v3751_v63 = vld [vmem:[%s6595_s2 + $0xa0] sm:$0xf] }
  0x25   :  { %522 = vmatpush.bf16.msrb.mxu2 %v3648_v57  ;;  %501 = vmatmul.bf16.vlgmr.msra.gmra.mxu1 %v4616_v52  ;;  %v3488_v57 = vor.u32 %v4062_v49, %v3487_v48  ;;  %v3601_v34 = vld [vmem:[%s6593_s1 + $0x178] sm:$0xf0]  ;;  %v3632_v35 = vor.u32 %v4096_v31, %v3631_v30  ;;  %v3735_v9 = vld [vmem:[%s6595_s2 + $0x80] sm:$0xf]  ;;  %v4123_v10 = vld [vmem:[%s6595_s2 + $0x8c] sm:$0xf0] }
  0x26   :  { %551 = vmatpush.bf16.msrb.mxu3 %v3652_v56  ;;  %580 = vmatpush.bf16.msrb.mxu0 %v3656_v0  ;;  %v3492_v56 = vor.u32 %v4058_v46, %v3489_v47  ;;  %v3496_v0 = vor.u32 %v4063_v55, %v3495_v54  ;;  %v3604_v40 = vor.u32 %v4084_v33, %v3601_v34  ;;  %v4076_v44 = vld [vmem:[%s6593_s1 + $0x11c] sm:$0xf]  ;;  %v3785_v47 = vld [vmem:[%s6595_s2 + $0xf0] sm:$0xf0]  ;;  %v3767_v54 = vld [vmem:[%s6595_s2 + $0xc0] sm:$0xf] }
  0x27   :  { %511 = vmatmul.bf16.vlgmr.msra.gmra.mxu3 %v4621_v53  ;;  %609 = vmatpush.bf16.msrb.mxu1 %v3660_v1  ;;  %v3500_v1 = vor.u32 %v4059_v58, %v3497_v59  ;;  %v3569_v45 = vld [vmem:[%s6593_s1 + $0x138] sm:$0xf0]  ;;  %v4131_v55 = vld [vmem:[%s6595_s2 + $0xcc] sm:$0xf0]  ;;  %v4129_v59 = vld [vmem:[%s6595_s2 + $0xc4] sm:$0xf] }
  0x28   :  { %v4900_v58 = vor.u32 %v4131_v55, %v3767_v54  ;;  %v4060_v11 = vld [vmem:[%s6593_s1 + $0x9c] sm:$0xf]  ;;  %v3503_v26 = vld [vmem:[%s6593_s1 + $0x98] sm:$0xf]  ;;  %v3703_v30 = vld [vmem:[%s6595_s2 + $0x40] sm:$0xf] }
  0x29   :  { %523 = vmatpush.bf16.msrb.mxu2 %v3616_v5  ;;  %v3460_v5 = vor.u32 %v4050_v60, %v3457_v61  ;;  %v3769_v60 = vld [vmem:[%s6595_s2 + $0xd0] sm:$0xf0]  ;;  %v3537_v61 = vld [vmem:[%s6593_s1 + $0xf8] sm:$0xf0]  ;;  %v4115_v31 = vld [vmem:[%s6595_s2 + $0x4c] sm:$0xf0] }
  0x2a   :  { %552 = vmatpush.bf16.msrb.mxu3 %v3620_v4  ;;  %581 = vmatpush.bf16.msrb.mxu0 %v3624_v12  ;;  %v4051_v4 = vld [vmem:[%s6593_s1 + $0x54] sm:$0xf]  ;;  %v4100_v12 = vld [vmem:[%s6593_s1 + $0x1dc] sm:$0xf]  ;;  %v4911_v62 = vor.u32 %v4129_v59, %v3769_v60  ;;  %v5002_v33 = vor.u32 %v4115_v31, %v3703_v30  ;;  %v4113_v34 = vld [vmem:[%s6595_s2 + $0x44] sm:$0xf] }
  0x2b   :  { %610 = vmatpush.bf16.msrb.mxu1 %v3628_v13  ;;  %v3665_v13 = vld [vmem:[%s6593_s1 + $0x1f8] sm:$0xf0]  ;;  %v4048_v54 = vld [vmem:[%s6593_s1 + $0x34] sm:$0xf0]  ;;  %v3689_v55 = vld [vmem:[%s6595_s2 + $0x30] sm:$0xf0] }
  0x2c   :  { %6718 = vst [vmem:[#allocation7_spill] sm:$0xff] %v5002_v33  ;;  %v3791_v30 = vld [vmem:[%s6595_s2 + $0xe8] sm:$0xf]  ;;  %v4136_v31 = vld [vmem:[%s6595_s2 + $0xf4] sm:$0xf0] }
  0x2d   :  { %524 = vmatpush.bf16.msrb.mxu2 %v3584_v17  ;;  %v3468_v17 = vor.u32 %v4051_v4, %v3465_v7 }
  0x2e   :  { %553 = vmatpush.bf16.msrb.mxu3 %v3588_v16  ;;  %582 = vmatpush.bf16.msrb.mxu0 %v3592_v24  ;;  %v3464_v16 = vor.u32 %v4055_v3, %v3463_v2  ;;  %v3668_v24 = vor.u32 %v4100_v12, %v3665_v13  ;;  %v4125_v2 = vld [vmem:[%s6595_s2 + $0xa4] sm:$0xf]  ;;  %v3753_v3 = vld [vmem:[%s6595_s2 + $0xb0] sm:$0xf0]  ;;  %v3505_v12 = vld [vmem:[%s6593_s1 + $0xb8] sm:$0xf0] }
  0x2f   :  { %611 = vmatpush.bf16.msrb.mxu1 %v3596_v25  ;;  %v3664_v25 = vor.u32 %v4104_v15, %v3663_v14  ;;  %v4935_v8 = vor.u32 %v4125_v2, %v3753_v3  ;;  %v4950_v14 = vor.u32 %v4123_v10, %v3735_v9  ;;  %v3508_v15 = vor.u32 %v4060_v11, %v3505_v12  ;;  %v3911_v2 = vld [vmem:[%s6596_s3 + $0xe0] sm:$0xf]  ;;  %v4167_v3 = vld [vmem:[%s6596_s3 + $0xec] sm:$0xf0]  ;;  %v4134_v9 = vld [vmem:[%s6595_s2 + $0xec] sm:$0xf] }
  0x30   :  { %v3793_v10 = vld [vmem:[%s6595_s2 + $0xf8] sm:$0xf0]  ;;  %v3895_v12 = vld [vmem:[%s6596_s3 + $0xc0] sm:$0xf] }
  0x31   :  { %525 = vmatpush.bf16.msrb.mxu2 %v3552_v29  ;;  %v3436_v29 = vor.u32 %v4043_v22, %v3433_v23  ;;  %v3721_v23 = vld [vmem:[%s6595_s2 + $0x70] sm:$0xf0] }
  0x32   :  { %554 = vmatpush.bf16.msrb.mxu3 %v3556_v28  ;;  %583 = vmatpush.bf16.msrb.mxu0 %v3560_v36  ;;  %v3432_v28 = vor.u32 %v4047_v21, %v3431_v18  ;;  %v3599_v36 = vld [vmem:[%s6593_s1 + $0x158] sm:$0xf]  ;;  %v4117_v21 = vld [vmem:[%s6595_s2 + $0x64] sm:$0xf] }
  0x33   :  { %612 = vmatpush.bf16.msrb.mxu1 %v3564_v37  ;;  %v4088_v37 = vld [vmem:[%s6593_s1 + $0x174] sm:$0xf0] }
  0x34   :  { %477 = vmatmul.bf16.gmra.mxu0 %v4726_v38  ;;  %487 = vmatmul.bf16.gmra.mxu2 %v4731_v39  ;;  %v3600_v48 = vor.u32 %v4088_v37, %v3599_v36  ;;  %v4044_v36 = vld [vmem:[%s6593_s1 + $0x1c] sm:$0xf] }
  0x35   :  { %526 = vmatpush.bf16.msrb.mxu2 %v3520_v43  ;;  %506 = vmatmul.bf16.gmra.mxu1 %v4726_v38  ;;  %v4133_v43 = vld [vmem:[%s6595_s2 + $0xe4] sm:$0xf]  ;;  %v3441_v37 = vld [vmem:[%s6593_s1 + $0x38] sm:$0xf0] }
  0x36   :  { %555 = vmatpush.bf16.msrb.mxu3 %v3524_v42  ;;  %584 = vmatpush.bf16.msrb.mxu0 %v3528_v50  ;;  %v4135_v42 = vld [vmem:[%s6595_s2 + $0xec] sm:$0xf0]  ;;  %v4881_v49 = vor.u32 %v4133_v43, %v3785_v47  ;;  %v3567_v50 = vld [vmem:[%s6593_s1 + $0x118] sm:$0xf] }
  0x37   :  { %516 = vmatmul.bf16.gmra.mxu3 %v4731_v39  ;;  %613 = vmatpush.bf16.msrb.mxu1 %v3532_v51  ;;  %v4875_v46 = vor.u32 %v4135_v42, %v3783_v41  ;;  %v4080_v51 = vld [vmem:[%s6593_s1 + $0x134] sm:$0xf0]  ;;  %v3444_v42 = vor.u32 %v4044_v36, %v3441_v37  ;;  %v3863_v36 = vld [vmem:[%s6596_s3 + $0x80] sm:$0xf]  ;;  %v4155_v37 = vld [vmem:[%s6596_s3 + $0x8c] sm:$0xf0] }
  0x38   :  { %v4056_v41 = vld [vmem:[%s6593_s1 + $0x74] sm:$0xf0] }
  0x39   :  { %527 = vmatpush.bf16.msrb.mxu2 %v3488_v57  ;;  %v4068_v57 = vld [vmem:[%s6593_s1 + $0xdc] sm:$0xf] }
  0x3a   :  { %556 = vmatpush.bf16.msrb.mxu3 %v3492_v56  ;;  %585 = vmatpush.bf16.msrb.mxu0 %v3496_v0  ;;  %v3572_v56 = vor.u32 %v4076_v44, %v3569_v45  ;;  %v4127_v0 = vld [vmem:[%s6595_s2 + $0xac] sm:$0xf0]  ;;  %v3540_v7 = vor.u32 %v4068_v57, %v3537_v61  ;;  %v3687_v44 = vld [vmem:[%s6595_s2 + $0x20] sm:$0xf] }
  0x3b   :  { %614 = vmatpush.bf16.msrb.mxu1 %v3500_v1  ;;  %v3568_v1 = vor.u32 %v4080_v51, %v3567_v50  ;;  %v4926_v4 = vor.u32 %v4127_v0, %v3751_v63  ;;  %v4111_v45 = vld [vmem:[%s6595_s2 + $0x2c] sm:$0xf0]  ;;  %v4109_v50 = vld [vmem:[%s6595_s2 + $0x24] sm:$0xf]  ;;  %v3439_v51 = vld [vmem:[%s6593_s1 + $0x18] sm:$0xf] }
  0x3c   :  { %v4107_v57 = vld [vmem:[%s6595_s2 + $0xc] sm:$0xf0]  ;;  %v3440_v59 = vor.u32 %v4048_v54, %v3439_v51  ;;  %v5054_v60 = vor.u32 %v4109_v50, %v3689_v55  ;;  %v4105_v63 = vld [vmem:[%s6595_s2 + $0x4] sm:$0xf]  ;;  %v3673_v0 = vld [vmem:[%s6595_s2 + $0x10] sm:$0xf0] }
  0x3d   :  { %528 = vmatpush.bf16.msrb.mxu2 %v3456_v6  ;;  %v4072_v6 = vld [vmem:[%s6593_s1 + $0xf4] sm:$0xf0]  ;;  %v4149_v50 = vld [vmem:[%s6596_s3 + $0x64] sm:$0xf]  ;;  %v4126_v51 = vld [vmem:[%s6595_s2 + $0xac] sm:$0xf] }
  0x3e   :  { %557 = vmatpush.bf16.msrb.mxu3 %v3460_v5  ;;  %586 = vmatpush.bf16.msrb.mxu0 %v3464_v16  ;;  %v3535_v5 = vld [vmem:[%s6593_s1 + $0xd8] sm:$0xf]  ;;  %v4121_v16 = vld [vmem:[%s6595_s2 + $0x84] sm:$0xf]  ;;  %6721 = vst [vmem:[#allocation10_spill] sm:$0xff] %v5054_v60 }
  0x3f   :  { %615 = vmatpush.bf16.msrb.mxu1 %v3468_v17  ;;  %v3536_v13 = vor.u32 %v4072_v6, %v3535_v5  ;;  %v3737_v17 = vld [vmem:[%s6595_s2 + $0x90] sm:$0xf0]  ;;  %v4165_v5 = vld [vmem:[%s6596_s3 + $0xe4] sm:$0xf]  ;;  %v5080_v6 = vor.u32 %v4167_v3, %v3911_v2  ;;  %v3761_v54 = vld [vmem:[%s6595_s2 + $0xb8] sm:$0xf0] }
  0x40   :  { %v4960_v18 = vor.u32 %v4121_v16, %v3737_v17  ;;  %v4161_v16 = vld [vmem:[%s6596_s3 + $0xc4] sm:$0xf]  ;;  %v3897_v17 = vld [vmem:[%s6596_s3 + $0xd0] sm:$0xf0]  ;;  %v3831_v2 = vld [vmem:[%s6596_s3 + $0x40] sm:$0xf] }
  0x41   :  { %529 = vmatpush.bf16.msrb.mxu2 %v3424_v20  ;;  %v4119_v20 = vld [vmem:[%s6595_s2 + $0x6c] sm:$0xf0]  ;;  %6724 = vst [vmem:[#allocation13_spill] sm:$0xff] %v5080_v6 }
  0x42   :  { %558 = vmatpush.bf16.msrb.mxu3 %v3428_v19  ;;  %587 = vmatpush.bf16.msrb.mxu0 %v3432_v28  ;;  %v3719_v19 = vld [vmem:[%s6595_s2 + $0x60] sm:$0xf]  ;;  %v4991_v28 = vor.u32 %v4117_v21, %v3721_v23  ;;  %v4130_v21 = vld [vmem:[%s6595_s2 + $0xcc] sm:$0xf]  ;;  %v3777_v23 = vld [vmem:[%s6595_s2 + $0xd8] sm:$0xf0] }
  0x43   :  { %616 = vmatpush.bf16.msrb.mxu1 %v3436_v29  ;;  %v4974_v22 = vor.u32 %v4119_v20, %v3719_v19  ;;  %v4064_v29 = vld [vmem:[%s6593_s1 + $0xb4] sm:$0xf0]  ;;  %v5113_v20 = vor.u32 %v4161_v16, %v3897_v17  ;;  %v3745_v16 = vld [vmem:[%s6595_s2 + $0x98] sm:$0xf0]  ;;  %v3815_v17 = vld [vmem:[%s6596_s3 + $0x20] sm:$0xf] }
  0x44   :  { %530 = vmatmul.bf16.vlgmr.msrb.gmra.mxu2 %v4616_v52  ;;  %6717 = vst [vmem:[#allocation6_spill] sm:$0xff] %v4991_v28 }
  0x45   :  { %638 = vmatpush.bf16.msra.mxu2 %v3664_v25  ;;  %588 = vmatmul.bf16.vlgmr.msrb.gmra.mxu0 %v4616_v52  ;;  %6716 = vst [vmem:[#allocation5_spill] sm:$0xff] %v4974_v22  ;;  %v3473_v25 = vld [vmem:[%s6593_s1 + $0x78] sm:$0xf0] }
  0x46   :  { %667 = vmatpush.bf16.msra.mxu3 %v3668_v24  ;;  %617 = vmatmul.bf16.vlgmr.msrb.gmra.mxu1 %v4616_v52  ;;  %v4052_v24 = vld [vmem:[%s6593_s1 + $0x5c] sm:$0xf]  ;;  %6727 = vst [vmem:[#allocation16_spill] sm:$0xff] %v5113_v20 }
  0x47   :  { %559 = vmatmul.bf16.vlgmr.msrb.gmra.mxu3 %v4616_v52  ;;  %993 = vmatpush.bf16.msra.mxu0 %v4875_v46  ;;  %v3476_v27 = vor.u32 %v4052_v24, %v3473_v25  ;;  %v3879_v24 = vld [vmem:[%s6596_s3 + $0xa0] sm:$0xf]  ;;  %v5125_v25 = vor.u32 %v4130_v21, %v3777_v23  ;;  %v4143_v23 = vld [vmem:[%s6596_s3 + $0x2c] sm:$0xf0] }
  0x48   :  { %1006 = vmatpush.bf16.msra.mxu1 %v4881_v49 }
  0x49   :  { %639 = vmatpush.bf16.msra.mxu2 %v3632_v35  ;;  %v3705_v35 = vld [vmem:[%s6595_s2 + $0x50] sm:$0xf0] }
  0x4a   :  { %668 = vmatpush.bf16.msra.mxu3 %v3636_v32  ;;  %v3504_v32 = vor.u32 %v4064_v29, %v3503_v26  ;;  %v5030_v47 = vor.u32 %v4113_v34, %v3705_v35  ;;  %v4159_v26 = vld [vmem:[%s6596_s3 + $0xac] sm:$0xf0]  ;;  %v3881_v29 = vld [vmem:[%s6596_s3 + $0xb0] sm:$0xf0]  ;;  %v5145_v34 = vor.u32 %v4136_v31, %v3791_v30  ;;  %v5255_v30 = vor.u32 %v4143_v23, %v3815_v17  ;;  %v4114_v17 = vld [vmem:[%s6595_s2 + $0x4c] sm:$0xf] }
  0x4b   :  { %994 = vmatpush.bf16.msra.mxu0 %v4900_v58 }
  0x4c   :  { %1007 = vmatpush.bf16.msra.mxu1 %v4911_v62  ;;  %6719 = vst [vmem:[#allocation8_spill] sm:$0xff] %v5030_v47 }
  0x4d   :  { %640 = vmatpush.bf16.msra.mxu2 %v3600_v48  ;;  %v5032_v48 = vor.u32 %v4111_v45, %v3687_v44  ;;  %v3847_v44 = vld [vmem:[%s6596_s3 + $0x60] sm:$0xf]  ;;  %v4151_v45 = vld [vmem:[%s6596_s3 + $0x6c] sm:$0xf0]  ;;  %6736 = vst [vmem:[#allocation25_spill] sm:$0xff] %v5255_v30 }
  0x4e   :  { %669 = vmatpush.bf16.msra.mxu3 %v3604_v40  ;;  %v3471_v40 = vld [vmem:[%s6593_s1 + $0x58] sm:$0xf]  ;;  %v5190_v55 = vor.u32 %v4151_v45, %v3847_v44  ;;  %v3801_v45 = vld [vmem:[%s6596_s3 + $0x10] sm:$0xf0] }
  0x4f   :  { %995 = vmatpush.bf16.msra.mxu0 %v4926_v4  ;;  %v3472_v43 = vor.u32 %v4056_v41, %v3471_v40  ;;  %6720 = vst [vmem:[#allocation9_spill] sm:$0xff] %v5032_v48  ;;  %v4153_v40 = vld [vmem:[%s6596_s3 + $0x84] sm:$0xf]  ;;  %v3865_v41 = vld [vmem:[%s6596_s3 + $0x90] sm:$0xf0] }
  0x50   :  { %1008 = vmatpush.bf16.msra.mxu1 %v4935_v8  ;;  %6732 = vst [vmem:[#allocation21_spill] sm:$0xff] %v5190_v55 }
  0x51   :  { %641 = vmatpush.bf16.msra.mxu2 %v3568_v1  ;;  %v5066_v1 = vor.u32 %v4105_v63, %v3673_v0  ;;  %v3775_v63 = vld [vmem:[%s6595_s2 + $0xc8] sm:$0xf]  ;;  %v4132_v0 = vld [vmem:[%s6595_s2 + $0xd4] sm:$0xf0] }
  0x52   :  { %670 = vmatpush.bf16.msra.mxu3 %v3572_v56  ;;  %v3671_v56 = vld [vmem:[%s6595_s2] sm:$0xf]  ;;  %v5210_v3 = vor.u32 %v4132_v0, %v3775_v63  ;;  %v6602_v63 = vmov 0   ;;  %v4118_v0 = vld [vmem:[%s6595_s2 + $0x6c] sm:$0xf] }
  0x53   :  { %996 = vmatpush.bf16.msra.mxu0 %v4950_v14  ;;  %v5056_v61 = vor.u32 %v4107_v57, %v3671_v56  ;;  %6723 = vst [vmem:[#allocation12_spill] sm:$0xff] %v5066_v1  ;;  %v3849_v56 = vld [vmem:[%s6596_s3 + $0x70] sm:$0xf0]  ;;  %v5196_v57 = vor.u32 %v4126_v51, %v3761_v54  ;;  %v3743_v51 = vld [vmem:[%s6595_s2 + $0x88] sm:$0xf] }
  0x54   :  { %535 = vmatmul.bf16.gmra.mxu2 %v4726_v38  ;;  %1009 = vmatpush.bf16.msra.mxu1 %v4960_v18  ;;  %v4124_v54 = vld [vmem:[%s6595_s2 + $0x94] sm:$0xf0] }
  0x55   :  { %642 = vmatpush.bf16.msra.mxu2 %v3536_v13  ;;  %593 = vmatmul.bf16.gmra.mxu0 %v4726_v38  ;;  %6722 = vst [vmem:[#allocation11_spill] sm:$0xff] %v5056_v61  ;;  %v5098_v13 = vor.u32 %v4134_v9, %v3793_v10  ;;  %v3833_v9 = vld [vmem:[%s6596_s3 + $0x50] sm:$0xf0] }
  0x56   :  { %671 = vmatpush.bf16.msra.mxu3 %v3540_v7  ;;  %622 = vmatmul.bf16.gmra.mxu1 %v4726_v38  ;;  %v3913_v7 = vld [vmem:[%s6596_s3 + $0xf0] sm:$0xf0] }
  0x57   :  { %564 = vmatmul.bf16.gmra.mxu3 %v4726_v38  ;;  %997 = vmatpush.bf16.msra.mxu0 %v4974_v22  ;;  %v5092_v11 = vor.u32 %v4165_v5, %v3913_v7  ;;  %v4147_v5 = vld [vmem:[%s6596_s3 + $0x4c] sm:$0xf0]  ;;  %v4145_v7 = vld [vmem:[%s6596_s3 + $0x44] sm:$0xf] }
  0x58   :  { %1010 = vmatpush.bf16.msra.mxu1 %v4991_v28  ;;  %v5223_v10 = vor.u32 %v4147_v5, %v3831_v2  ;;  %v3729_v2 = vld [vmem:[%s6595_s2 + $0x78] sm:$0xf0] }
  0x59   :  { %643 = vmatpush.bf16.msra.mxu2 %v3504_v32  ;;  %6725 = vst [vmem:[#allocation14_spill] sm:$0xff] %v5092_v11  ;;  %v5143_v32 = vor.u32 %v4159_v26, %v3879_v24  ;;  %v4141_v24 = vld [vmem:[%s6596_s3 + $0x24] sm:$0xf]  ;;  %v3817_v26 = vld [vmem:[%s6596_s3 + $0x30] sm:$0xf0]  ;;  %v5303_v5 = vor.u32 %v4118_v0, %v3729_v2 }
  0x5a   :  { %672 = vmatpush.bf16.msra.mxu3 %v3508_v15  ;;  %v4163_v15 = vld [vmem:[%s6596_s3 + $0xcc] sm:$0xf0]  ;;  %6734 = vst [vmem:[#allocation23_spill] sm:$0xff] %v5223_v10  ;;  %v4106_v0 = vld [vmem:[%s6595_s2 + $0xc] sm:$0xf] }
  0x5b   :  { %998 = vmatpush.bf16.msra.mxu0 %v5002_v33  ;;  %v5111_v19 = vor.u32 %v4163_v15, %v3895_v12  ;;  %6728 = vst [vmem:[#allocation17_spill] sm:$0xff] %v5143_v32  ;;  %v5225_v12 = vor.u32 %v4145_v7, %v3833_v9  ;;  %v4122_v15 = vld [vmem:[%s6595_s2 + $0x8c] sm:$0xf]  ;;  %v4120_v7 = vld [vmem:[%s6595_s2 + $0x74] sm:$0xf0] }
  0x5c   :  { %1011 = vmatpush.bf16.msra.mxu1 %v5030_v47  ;;  %v5237_v21 = vor.u32 %v4122_v15, %v3745_v16  ;;  %v3711_v15 = vld [vmem:[%s6595_s2 + $0x48] sm:$0xf]  ;;  %v4116_v16 = vld [vmem:[%s6595_s2 + $0x54] sm:$0xf0] }
  0x5d   :  { %644 = vmatpush.bf16.msra.mxu2 %v3472_v43  ;;  %6726 = vst [vmem:[#allocation15_spill] sm:$0xff] %v5111_v19  ;;  %v5168_v43 = vor.u32 %v4153_v40, %v3865_v41  ;;  %v4139_v40 = vld [vmem:[%s6596_s3 + $0xc] sm:$0xf0]  ;;  %v4137_v41 = vld [vmem:[%s6596_s3 + $0x4] sm:$0xf]  ;;  %v5328_v23 = vor.u32 %v4116_v16, %v3711_v15 }
  0x5e   :  { %673 = vmatpush.bf16.msra.mxu3 %v3476_v27  ;;  %v4157_v27 = vld [vmem:[%s6596_s3 + $0xa4] sm:$0xf]  ;;  %6735 = vst [vmem:[#allocation24_spill] sm:$0xff] %v5225_v12  ;;  %v4168_v15 = vld [vmem:[%s6596_s3 + $0xf4] sm:$0xf0] }
  0x5f   :  { %999 = vmatpush.bf16.msra.mxu0 %v5032_v48  ;;  %v5148_v35 = vor.u32 %v4157_v27, %v3881_v29  ;;  %6731 = vst [vmem:[#allocation20_spill] sm:$0xff] %v5168_v43  ;;  %v3759_v27 = vld [vmem:[%s6595_s2 + $0xa8] sm:$0xf]  ;;  %v4128_v29 = vld [vmem:[%s6595_s2 + $0xb4] sm:$0xf0] }
  0x60   :  { %1012 = vmatpush.bf16.msra.mxu1 %v5054_v60  ;;  %v5257_v31 = vor.u32 %v4128_v29, %v3759_v27  ;;  %v3695_v27 = vld [vmem:[%s6595_s2 + $0x28] sm:$0xf]  ;;  %v4112_v29 = vld [vmem:[%s6595_s2 + $0x34] sm:$0xf0] }
  0x61   :  { %645 = vmatpush.bf16.msra.mxu2 %v3440_v59  ;;  %6729 = vst [vmem:[#allocation18_spill] sm:$0xff] %v5148_v35  ;;  %v5198_v59 = vor.u32 %v4149_v50, %v3849_v56  ;;  %v5280_v50 = vor.u32 %v4137_v41, %v3801_v45  ;;  %v5291_v56 = vor.u32 %v4124_v54, %v3743_v51  ;;  %v3697_v41 = vld [vmem:[%s6595_s2 + $0x38] sm:$0xf0]  ;;  %v3679_v51 = vld [vmem:[%s6595_s2 + $0x8] sm:$0xf] }
  0x62   :  { %674 = vmatpush.bf16.msra.mxu3 %v3444_v42  ;;  %v5165_v42 = vor.u32 %v4155_v37, %v3863_v36  ;;  %v5261_v36 = vor.u32 %v4141_v24, %v3817_v26  ;;  %v3799_v37 = vld [vmem:[%s6596_s3] sm:$0xf]  ;;  %v3713_v24 = vld [vmem:[%s6595_s2 + $0x58] sm:$0xf0]  ;;  %v4108_v54 = vld [vmem:[%s6595_s2 + $0x14] sm:$0xf0] }
  0x63   :  { %1000 = vmatpush.bf16.msra.mxu0 %v5056_v61  ;;  %6733 = vst [vmem:[#allocation22_spill] sm:$0xff] %v5198_v59  ;;  %v5275_v44 = vor.u32 %v4139_v40, %v3799_v37  ;;  %v5333_v26 = vor.u32 %v4114_v17, %v3713_v24  ;;  %v4110_v37 = vld [vmem:[%s6595_s2 + $0x2c] sm:$0xf]  ;;  %v5347_v40 = vor.u32 %v4112_v29, %v3695_v27  ;;  %v3921_v27 = vld [vmem:[%s6596_s3 + $0xf8] sm:$0xf0] }
  0x64   :  { %540 = vmatmul.bf16.gmra.mxu2 %v4621_v53  ;;  %1013 = vmatpush.bf16.msra.mxu1 %v5066_v1  ;;  %6730 = vst [vmem:[#allocation19_spill] sm:$0xff] %v5165_v42  ;;  %v5353_v45 = vor.u32 %v4110_v37, %v3697_v41  ;;  %v5368_v2 = vor.u32 %v4108_v54, %v3679_v51  ;;  %v4166_v24 = vld [vmem:[%s6596_s3 + $0xec] sm:$0xf]  ;;  %v4164_v37 = vld [vmem:[%s6596_s3 + $0xd4] sm:$0xf0] }
  0x65   :  { %598 = vmatmul.bf16.gmra.mxu0 %v4621_v53  ;;  %1019 = vmatpush.bf16.msrb.mxu2 %v5145_v34  ;;  %6737 = vst [vmem:[#allocation26_spill] sm:$0xff] %v5261_v36  ;;  %v5394_v29 = vor.u32 %v4166_v24, %v3921_v27  ;;  %v4162_v41 = vld [vmem:[%s6596_s3 + $0xcc] sm:$0xf]  ;;  %v3905_v54 = vld [vmem:[%s6596_s3 + $0xd8] sm:$0xf0] }
  0x66   :  { %627 = vmatmul.bf16.gmra.mxu1 %v4621_v53  ;;  %1032 = vmatpush.bf16.msrb.mxu3 %v5098_v13  ;;  %6738 = vst [vmem:[#allocation27_spill] sm:$0xff] %v5275_v44  ;;  %v3889_v27 = vld [vmem:[%s6596_s3 + $0xb8] sm:$0xf0] }
  0x67   :  { %569 = vmatmul.bf16.gmra.mxu3 %v4621_v53  ;;  %1209 = vmatpush.bf16.msrb.mxu0 %v5080_v6  ;;  %6739 = vst [vmem:[#allocation28_spill] sm:$0xff] %v5280_v50 }
  0x68   :  { %1222 = vmatpush.bf16.msrb.mxu1 %v5092_v11  ;;  %6740 = vst [vmem:[#allocation29_spill] sm:$0xff] %v5368_v2 }
  0x69   :  { %1020 = vmatpush.bf16.msrb.mxu2 %v5210_v3  ;;  %6743 = vst [vmem:[#allocation32_spill] sm:$0xff] %v5394_v29 }
  0x6a   :  { %1033 = vmatpush.bf16.msrb.mxu3 %v5125_v25 }
  0x6b   :  { %1210 = vmatpush.bf16.msrb.mxu0 %v5111_v19 }
  0x6c   :  { %1223 = vmatpush.bf16.msrb.mxu1 %v5113_v20 }
  0x6d   :  { %1021 = vmatpush.bf16.msrb.mxu2 %v5257_v31 }
  0x6e   :  { %1034 = vmatpush.bf16.msrb.mxu3 %v5196_v57 }
  0x6f   :  { %1211 = vmatpush.bf16.msrb.mxu0 %v5143_v32 }
  0x70   :  { %1224 = vmatpush.bf16.msrb.mxu1 %v5148_v35 }
  0x71   :  { %1022 = vmatpush.bf16.msrb.mxu2 %v5291_v56 }
  0x72   :  { %1035 = vmatpush.bf16.msrb.mxu3 %v5237_v21 }
  0x73   :  { %1212 = vmatpush.bf16.msrb.mxu0 %v5165_v42 }
  0x74   :  { %545 = vmatmul.bf16.gmra.mxu2 %v4731_v39  ;;  %1225 = vmatpush.bf16.msrb.mxu1 %v5168_v43 }
  0x75   :  { %603 = vmatmul.bf16.gmra.mxu0 %v4731_v39 }
  0x76   :  { %632 = vmatmul.bf16.gmra.mxu1 %v4731_v39  ;;  %1036 = vmatpush.bf16.msrb.mxu3 %v5303_v5 }
  0x77   :  { %574 = vmatmul.bf16.gmra.mxu3 %v4731_v39  ;;  %1213 = vmatpush.bf16.msrb.mxu0 %v5190_v55 }
  0x78   :  { %1226 = vmatpush.bf16.msrb.mxu1 %v5198_v59 }
  0x7a   :  { %1037 = vmatpush.bf16.msrb.mxu3 %v5333_v26 }
  0x7b   :  { %1214 = vmatpush.bf16.msrb.mxu0 %v5223_v10 }
  0x7c   :  { %1227 = vmatpush.bf16.msrb.mxu1 %v5225_v12 }
  0x7e   :  { %1038 = vmatpush.bf16.msrb.mxu3 %v5353_v45 }
  0x7f   :  { %1215 = vmatpush.bf16.msrb.mxu0 %v5255_v30 }
  0x80   :  { %1228 = vmatpush.bf16.msrb.mxu1 %v5261_v36 }
  0x83   :  { %1216 = vmatpush.bf16.msrb.mxu0 %v5275_v44 }
  0x84   :  { %646 = vmatmul.bf16.vlgmr.msra.gmra.mxu2 %v4616_v52  ;;  %1229 = vmatpush.bf16.msrb.mxu1 %v5280_v50 }
  0x85   :  { %1001 = vmatmul.bf16.vlgmr.msra.gmra.mxu0 %v6602_v63 }
  0x86   :  { %1014 = vmatmul.bf16.vlgmr.msra.gmra.mxu1 %v6602_v63 }
  0x87   :  { %675 = vmatmul.bf16.vlgmr.msra.gmra.mxu3 %v4616_v52  ;;  %v3727_v52 = vld [vmem:[%s6595_s2 + $0x68] sm:$0xf]  ;;  %1405 = vmatpush.bf16.msra.mxu0 %v4875_v46 }
  0x88   :  { %1418 = vmatpush.bf16.msra.mxu1 %v4881_v49  ;;  %v5314_v9 = vor.u32 %v4120_v7, %v3727_v52  ;;  %v3681_v52 = vld [vmem:[%s6595_s2 + $0x18] sm:$0xf0]  ;;  %v3919_v7 = vld [vmem:[%s6596_s3 + $0xe8] sm:$0xf] }
  0x89   :  { %v5382_v16 = vor.u32 %v4106_v0, %v3681_v52  ;;  %v5384_v17 = vor.u32 %v4168_v15, %v3919_v7  ;;  %v5415_v0 = vor.u32 %v4162_v41, %v3905_v54  ;;  %v3887_v52 = vld [vmem:[%s6596_s3 + $0xa8] sm:$0xf]  ;;  %v4160_v7 = vld [vmem:[%s6596_s3 + $0xb4] sm:$0xf0]  ;;  %v4158_v15 = vld [vmem:[%s6596_s3 + $0xac] sm:$0xf] }
  0x8a   :  { %1023 = vmatpush.bf16.msrb.mxu2 %v5314_v9  ;;  %v5428_v24 = vor.u32 %v4160_v7, %v3887_v52  ;;  %v4156_v41 = vld [vmem:[%s6596_s3 + $0x94] sm:$0xf0]  ;;  %v4154_v54 = vld [vmem:[%s6596_s3 + $0x8c] sm:$0xf] }
  0x8b   :  { %1406 = vmatpush.bf16.msra.mxu0 %v4900_v58  ;;  %6741 = vst [vmem:[#allocation30_spill] sm:$0xff] %v5382_v16  ;;  %1039 = vmatpush.bf16.msrb.mxu3 %v5382_v16 }
  0x8c   :  { %1419 = vmatpush.bf16.msra.mxu1 %v4911_v62  ;;  %6742 = vst [vmem:[#allocation31_spill] sm:$0xff] %v5384_v17 }
  0x8d   :  { %6745 = vst [vmem:[#allocation34_spill] sm:$0xff] %v5415_v0 }
  0x8e   :  { %1024 = vmatpush.bf16.msrb.mxu2 %v5328_v23  ;;  %6746 = vst [vmem:[#allocation35_spill] sm:$0xff] %v5428_v24 }
  0x8f   :  { %1407 = vmatpush.bf16.msra.mxu0 %v4926_v4  ;;  %1248 = vmatpush.bf16.msra.mxu3 %v5394_v29 }
  0x90   :  { %1420 = vmatpush.bf16.msra.mxu1 %v4935_v8 }
  0x92   :  { %1025 = vmatpush.bf16.msrb.mxu2 %v5347_v40 }
  0x93   :  { %1408 = vmatpush.bf16.msra.mxu0 %v4950_v14  ;;  %1249 = vmatpush.bf16.msra.mxu3 %v5415_v0 }
  0x94   :  { %651 = vmatmul.bf16.gmra.mxu2 %v4726_v38  ;;  %1421 = vmatpush.bf16.msra.mxu1 %v4960_v18 }
  0x95   :  { %1217 = vmatmul.bf16.vlgmr.msrb.gmra.mxu0 %v6602_v63 }
  0x96   :  { %1230 = vmatmul.bf16.vlgmr.msrb.gmra.mxu1 %v6602_v63  ;;  %1026 = vmatpush.bf16.msrb.mxu2 %v5368_v2 }
  0x97   :  { %680 = vmatmul.bf16.gmra.mxu3 %v4726_v38  ;;  %v3903_v38 = vld [vmem:[%s6596_s3 + $0xc8] sm:$0xf]  ;;  %1409 = vmatpush.bf16.msra.mxu0 %v4974_v22 }
  0x98   :  { %v5409_v51 = vor.u32 %v4164_v37, %v3903_v38  ;;  %1422 = vmatpush.bf16.msra.mxu1 %v4991_v28  ;;  %v5434_v38 = vor.u32 %v4158_v15, %v3889_v27  ;;  %v3871_v37 = vld [vmem:[%s6596_s3 + $0x88] sm:$0xf]  ;;  %v3873_v15 = vld [vmem:[%s6596_s3 + $0x98] sm:$0xf0]  ;;  %v5460_v27 = vld [vmem:[%s6597_s4] sm:$0xff] }
  0x99   :  { %v5451_v7 = vor.u32 %v4156_v41, %v3871_v37  ;;  %v3855_v37 = vld [vmem:[%s6596_s3 + $0x68] sm:$0xf]  ;;  %v4152_v41 = vld [vmem:[%s6596_s3 + $0x74] sm:$0xf0] }
  0x9a   :  { %1235 = vmatpush.bf16.msra.mxu2 %v5384_v17  ;;  %6744 = vst [vmem:[#allocation33_spill] sm:$0xff] %v5409_v51  ;;  %1250 = vmatpush.bf16.msra.mxu3 %v5434_v38 }
  0x9b   :  { %1410 = vmatpush.bf16.msra.mxu0 %v5002_v33  ;;  %6747 = vst [vmem:[#allocation36_spill] sm:$0xff] %v5434_v38  ;;  %v3857_v33 = vld [vmem:[%s6596_s3 + $0x78] sm:$0xf0] }
  0x9c   :  { %1423 = vmatpush.bf16.msra.mxu1 %v5030_v47  ;;  %6748 = vst [vmem:[#allocation37_spill] sm:$0xff] %v5451_v7  ;;  %v5464_v47 = vor.u32 %v4154_v54, %v3873_v15  ;;  %v4150_v54 = vld [vmem:[%s6596_s3 + $0x6c] sm:$0xf]  ;;  %v5482_v15 = vperm.slane %v5460_v27, 1 }
  0x9d   :  { %v5491_v28 = vor.u32 %v4150_v54, %v3857_v33  ;;  %v3839_v33 = vld [vmem:[%s6596_s3 + $0x48] sm:$0xf] }
  0x9e   :  { %1236 = vmatpush.bf16.msra.mxu2 %v5409_v51  ;;  %6749 = vst [vmem:[#allocation38_spill] sm:$0xff] %v5464_v47  ;;  %1251 = vmatpush.bf16.msra.mxu3 %v5464_v47 }
  0x9f   :  { %1411 = vmatpush.bf16.msra.mxu0 %v5032_v48  ;;  %v5467_v48 = vperm.slane %v5460_v27, 0  ;;  %6751 = vst [vmem:[#allocation40_spill] sm:$0xff] %v5482_v15 }
  0xa0   :  { %1424 = vmatpush.bf16.msra.mxu1 %v5054_v60  ;;  %v5485_v60 = vor.u32 %v4152_v41, %v3855_v37  ;;  %6753 = vst [vmem:[#allocation42_spill] sm:$0xff] %v5491_v28  ;;  %v4148_v41 = vld [vmem:[%s6596_s3 + $0x54] sm:$0xf0] }
  0xa1   :  { %v5449_v52 = vpop.f32.mrf.mxu0  ;;  %6750 = vst [vmem:[#allocation39_spill] sm:$0xff] %v5467_v48 }
  0xa2   :  { %1237 = vmatpush.bf16.msra.mxu2 %v5428_v24  ;;  %v5462_v63 = vpop.f32.mrf.mxu1  ;;  %6752 = vst [vmem:[#allocation41_spill] sm:$0xff] %v5485_v60  ;;  %1252 = vmatpush.bf16.msra.mxu3 %v5491_v28 }
  0xa3   :  { %1412 = vmatpush.bf16.msra.mxu0 %v5056_v61 }
  0xa4   :  { %656 = vmatmul.bf16.gmra.mxu2 %v4621_v53  ;;  %1425 = vmatpush.bf16.msra.mxu1 %v5066_v1 }
  0xa6   :  { %1238 = vmatpush.bf16.msra.mxu2 %v5451_v7 }
  0xa7   :  { %685 = vmatmul.bf16.gmra.mxu3 %v4621_v53  ;;  %1462 = vmatpush.bf16.msrb.mxu0 %v5080_v6  ;;  %v483_v22 = vpop.f32.mrf.mxu2 }
  0xa8   :  { %1475 = vmatpush.bf16.msrb.mxu1 %v5092_v11  ;;  %v5498_v53 = vadd.f32 %v483_v22, %v5467_v48  ;;  %v5512_v11 = vor.u32 %v4148_v41, %v3839_v33  ;;  %v4146_v22 = vld [vmem:[%s6596_s3 + $0x4c] sm:$0xf]  ;;  %v4144_v33 = vld [vmem:[%s6596_s3 + $0x34] sm:$0xf0] }
  0xa9   :  { %v5510_v6 = vpop.f32.mrf.mxu0 }
  0xaa   :  { %1239 = vmatpush.bf16.msra.mxu2 %v5485_v60  ;;  %6754 = vst [vmem:[#allocation43_spill] sm:$0xff] %v5498_v53  ;;  %v512_v37 = vpop.f32.mrf.mxu3  ;;  %v3841_v53 = vld [vmem:[%s6596_s3 + $0x58] sm:$0xf0]  ;;  %v5520_v1 = vpop.f32.mrf.mxu1 }
  0xab   :  { %v5508_v54 = vadd.f32 %v512_v37, %v5482_v15  ;;  %6756 = vst [vmem:[#allocation45_spill] sm:$0xff] %v5510_v6  ;;  %v5522_v61 = vor.u32 %v4146_v22, %v3841_v53  ;;  %1463 = vmatpush.bf16.msrb.mxu0 %v5111_v19  ;;  %v3823_v37 = vld [vmem:[%s6596_s3 + $0x28] sm:$0xf]  ;;  %v4142_v53 = vld [vmem:[%s6596_s3 + $0x2c] sm:$0xf] }
  0xac   :  { %6757 = vst [vmem:[#allocation46_spill] sm:$0xff] %v5512_v11  ;;  %1476 = vmatpush.bf16.msrb.mxu1 %v5113_v20  ;;  %v5537_v41 = vor.u32 %v4144_v33, %v3823_v37  ;;  %v3825_v22 = vld [vmem:[%s6596_s3 + $0x38] sm:$0xf0]  ;;  %v3807_v37 = vld [vmem:[%s6596_s3 + $0x8] sm:$0xf] }
  0xad   :  { %6755 = vst [vmem:[#allocation44_spill] sm:$0xff] %v5508_v54  ;;  %1253 = vmatpush.bf16.msra.mxu3 %v5522_v61  ;;  %v5542_v54 = vor.u32 %v4142_v53, %v3825_v22  ;;  %v4140_v33 = vld [vmem:[%s6596_s3 + $0x14] sm:$0xf0]  ;;  %v4138_v53 = vld [vmem:[%s6596_s3 + $0xc] sm:$0xf] }
  0xae   :  { %6758 = vst [vmem:[#allocation47_spill] sm:$0xff] %v5520_v1  ;;  %1240 = vmatpush.bf16.msra.mxu2 %v5512_v11 }
  0xaf   :  { %6759 = vst [vmem:[#allocation48_spill] sm:$0xff] %v5522_v61  ;;  %1464 = vmatpush.bf16.msrb.mxu0 %v5143_v32  ;;  %v5545_v1 = vpop.f32.mrf.mxu2 }
  0xb0   :  { %6760 = vst [vmem:[#allocation49_spill] sm:$0xff] %v5537_v41  ;;  %1477 = vmatpush.bf16.msrb.mxu1 %v5148_v35 }
  0xb1   :  { %6761 = vst [vmem:[#allocation50_spill] sm:$0xff] %v5542_v54  ;;  %1254 = vmatpush.bf16.msra.mxu3 %v5542_v54  ;;  %v478_v22 = vpop.f32.mrf.mxu0 }
  0xb2   :  { %6762 = vst [vmem:[#allocation51_spill] sm:$0xff] %v5545_v1  ;;  %1241 = vmatpush.bf16.msra.mxu2 %v5537_v41  ;;  %v5549_v6 = vpop.f32.mrf.mxu3  ;;  %v5561_v1 = vor.u32 %v4140_v33, %v3807_v37  ;;  %v5567_v35 = vadd.f32 %v478_v22, %v5467_v48  ;;  %v507_v32 = vpop.f32.mrf.mxu1 }
  0xb3   :  { %6763 = vst [vmem:[#allocation52_spill] sm:$0xff] %v5549_v6  ;;  %v3809_v6 = vld [vmem:[%s6596_s3 + $0x18] sm:$0xf0]  ;;  %1465 = vmatpush.bf16.msrb.mxu0 %v5165_v42  ;;  %v5573_v19 = vadd.f32 %v507_v32, %v5482_v15 }
  0xb4   :  { %6764 = vst [vmem:[#allocation53_spill] sm:$0xff] %v5561_v1  ;;  %v5569_v20 = vor.u32 %v4138_v53, %v3809_v6  ;;  %1478 = vmatpush.bf16.msrb.mxu1 %v5168_v43  ;;  %661 = vmatmul.bf16.gmra.mxu2 %v4731_v39 }
  0xb5   :  { %6765 = vst [vmem:[#allocation54_spill] sm:$0xff] %v5567_v35 }
  0xb6   :  { %6766 = vst [vmem:[#allocation55_spill] sm:$0xff] %v5569_v20  ;;  %1242 = vmatpush.bf16.msra.mxu2 %v5561_v1  ;;  %1255 = vmatpush.bf16.msra.mxu3 %v5569_v20 }
  0xb7   :  { %6767 = vst [vmem:[#allocation56_spill] sm:$0xff] %v5573_v19  ;;  %690 = vmatmul.bf16.gmra.mxu3 %v4731_v39  ;;  %1466 = vmatpush.bf16.msrb.mxu0 %v5190_v55  ;;  %v488_v37 = vpop.f32.mrf.mxu2  ;;  %v5598_v19 = vperm.slane %v5460_v27, 4 }
  0xb8   :  { %1479 = vmatpush.bf16.msrb.mxu1 %v5198_v59  ;;  %v5583_v6 = vadd.f32 %v488_v37, %v5467_v48 }
  0xb9   :  { %v5588_v53 = vpop.f32.mrf.mxu0  ;;  %6773 = vst [vmem:[#allocation62_spill] sm:$0xff] %v5598_v19 }
  0xba   :  { %6768 = vst [vmem:[#allocation57_spill] sm:$0xff] %v5583_v6  ;;  %v517_v32 = vpop.f32.mrf.mxu3  ;;  %v5590_v22 = vpop.f32.mrf.mxu1 }
  0xbb   :  { %v5586_v33 = vadd.f32 %v517_v32, %v5482_v15  ;;  %6770 = vst [vmem:[#allocation59_spill] sm:$0xff] %v5588_v53  ;;  %1467 = vmatpush.bf16.msrb.mxu0 %v5223_v10  ;;  %v5604_v32 = vperm.slane %v5460_v27, 5  ;;  %v6778_v53 = vmov 0  }
  0xbc   :  { %6771 = vst [vmem:[#allocation60_spill] sm:$0xff] %v5590_v22  ;;  %1480 = vmatpush.bf16.msrb.mxu1 %v5225_v12 }
  0xbd   :  { %6769 = vst [vmem:[#allocation58_spill] sm:$0xff] %v5586_v33 }
  0xbe   :  { %6775 = vst [vmem:[#allocation64_spill] sm:$0xff] %v5604_v32 }
  0xbf   :  { %1468 = vmatpush.bf16.msrb.mxu0 %v5255_v30  ;;  %v5595_v39 = vpop.f32.mrf.mxu2 }
  0xc0   :  { %6772 = vst [vmem:[#allocation61_spill] sm:$0xff] %v5595_v39  ;;  %1481 = vmatpush.bf16.msrb.mxu1 %v5261_v36 }
  0xc2   :  { %v5601_v37 = vpop.f32.mrf.mxu3  ;;  %v589_v33 = vpop.f32.mrf.mxu0 }
  0xc3   :  { %6774 = vst [vmem:[#allocation63_spill] sm:$0xff] %v5601_v37  ;;  %1469 = vmatpush.bf16.msrb.mxu0 %v5275_v44  ;;  %v5608_v6 = vadd.f32 %v589_v33, %v5598_v19  ;;  %v618_v22 = vpop.f32.mrf.mxu1 }
  0xc4   :  { %1482 = vmatpush.bf16.msrb.mxu1 %v5280_v50  ;;  %v5612_v39 = vadd.f32 %v618_v22, %v5604_v32  ;;  %1027 = vmatmul.bf16.vlgmr.msrb.gmra.mxu2 %v6778_v53 }
  0xc5   :  { %6776 = vst [vmem:[#allocation65_spill] sm:$0xff] %v5608_v6  ;;  %1431 = vmatpush.bf16.msrb.mxu2 %v5145_v34 }
  0xc6   :  { %6777 = vst [vmem:[#allocation66_spill] sm:$0xff] %v5612_v39 }
  0xc7   :  { %1040 = vmatmul.bf16.vlgmr.msrb.gmra.mxu3 %v6778_v53  ;;  %v5618_v37 = vpop.f32.mrf.mxu2 }
  0xc8   :  { %1444 = vmatpush.bf16.msrb.mxu3 %v5098_v13 }
  0xc9   :  { %1432 = vmatpush.bf16.msrb.mxu2 %v5210_v3 }
  0xca   :  { %v5620_v35 = vpop.f32.mrf.mxu3  ;;  %v5623_v33 = vpop.f32.mrf.mxu0 }
  0xcb   :  { %6779 = vst [vmem:[#allocation67_spill] sm:$0xff] %v5623_v33  ;;  %v5626_v22 = vpop.f32.mrf.mxu1 }
  0xcc   :  { %1445 = vmatpush.bf16.msrb.mxu3 %v5125_v25  ;;  %6780 = vst [vmem:[#allocation68_spill] sm:$0xff] %v5626_v22  ;;  %v5646_v22 = vperm.slane %v5460_v27, 2 }
  0xcd   :  { %1433 = vmatpush.bf16.msrb.mxu2 %v5257_v31 }
  0xce   :  { %6785 = vst [vmem:[#allocation73_spill] sm:$0xff] %v5646_v22 }
  0xcf   :  { %v5630_v39 = vpop.f32.mrf.mxu2 }
  0xd0   :  { %1446 = vmatpush.bf16.msrb.mxu3 %v5196_v57  ;;  %6781 = vst [vmem:[#allocation69_spill] sm:$0xff] %v5630_v39  ;;  %v5650_v39 = vperm.slane %v5460_v27, 3 }
  0xd1   :  { %1434 = vmatpush.bf16.msrb.mxu2 %v5291_v56 }
  0xd2   :  { %v5632_v6 = vpop.f32.mrf.mxu3  ;;  %v594_v50 = vpop.f32.mrf.mxu0  ;;  %6786 = vst [vmem:[#allocation74_spill] sm:$0xff] %v5650_v39 }
  0xd3   :  { %6782 = vst [vmem:[#allocation70_spill] sm:$0xff] %v5632_v6  ;;  %v5637_v44 = vadd.f32 %v594_v50, %v5598_v19  ;;  %v623_v33 = vpop.f32.mrf.mxu1 }
  0xd4   :  { %1447 = vmatpush.bf16.msrb.mxu3 %v5237_v21  ;;  %v5640_v36 = vadd.f32 %v623_v33, %v5604_v32  ;;  %1243 = vmatmul.bf16.vlgmr.msra.gmra.mxu2 %v6778_v53 }
  0xd5   :  { %6783 = vst [vmem:[#allocation71_spill] sm:$0xff] %v5637_v44  ;;  %1435 = vmatpush.bf16.msrb.mxu2 %v5314_v9 }
  0xd6   :  { %6784 = vst [vmem:[#allocation72_spill] sm:$0xff] %v5640_v36 }
  0xd7   :  { %1256 = vmatmul.bf16.vlgmr.msra.gmra.mxu3 %v6778_v53  ;;  %v536_v50 = vpop.f32.mrf.mxu2 }
  0xd8   :  { %1448 = vmatpush.bf16.msrb.mxu3 %v5303_v5  ;;  %v5653_v44 = vadd.f32 %v536_v50, %v5646_v22 }
  0xd9   :  { %1436 = vmatpush.bf16.msrb.mxu2 %v5328_v23 }
  0xda   :  { %6787 = vst [vmem:[#allocation75_spill] sm:$0xff] %v5653_v44  ;;  %v565_v33 = vpop.f32.mrf.mxu3  ;;  %v5659_v53 = vpop.f32.mrf.mxu0 }
  0xdb   :  { %v5656_v36 = vadd.f32 %v565_v33, %v5650_v39  ;;  %6789 = vst [vmem:[#allocation77_spill] sm:$0xff] %v5659_v53  ;;  %v5662_v6 = vpop.f32.mrf.mxu1 }
  0xdc   :  { %1449 = vmatpush.bf16.msrb.mxu3 %v5333_v26  ;;  %6790 = vst [vmem:[#allocation78_spill] sm:$0xff] %v5662_v6 }
  0xdd   :  { %6788 = vst [vmem:[#allocation76_spill] sm:$0xff] %v5656_v36  ;;  %1437 = vmatpush.bf16.msrb.mxu2 %v5347_v40 }
  0xdf   :  { %v5666_v30 = vpop.f32.mrf.mxu2 }
  0xe0   :  { %1450 = vmatpush.bf16.msrb.mxu3 %v5353_v45  ;;  %6791 = vst [vmem:[#allocation79_spill] sm:$0xff] %v5666_v30 }
  0xe1   :  { %1438 = vmatpush.bf16.msrb.mxu2 %v5368_v2 }
  0xe2   :  { %v5668_v50 = vpop.f32.mrf.mxu3  ;;  %v599_v33 = vpop.f32.mrf.mxu0 }
  0xe3   :  { %6792 = vst [vmem:[#allocation80_spill] sm:$0xff] %v5668_v50  ;;  %v5674_v53 = vadd.f32 %v599_v33, %v5598_v19  ;;  %v628_v44 = vpop.f32.mrf.mxu1 }
  0xe4   :  { %1451 = vmatpush.bf16.msrb.mxu3 %v5382_v16  ;;  %v5678_v6 = vadd.f32 %v628_v44, %v5604_v32 }
  0xe5   :  { %1488 = vmatpush.bf16.msra.mxu2 %v5384_v17  ;;  %6793 = vst [vmem:[#allocation81_spill] sm:$0xff] %v5674_v53 }
  0xe6   :  { %6794 = vst [vmem:[#allocation82_spill] sm:$0xff] %v5678_v6 }
  0xe7   :  { %v541_v30 = vpop.f32.mrf.mxu2 }
  0xe8   :  { %1501 = vmatpush.bf16.msra.mxu3 %v5394_v29  ;;  %v5683_v50 = vadd.f32 %v541_v30, %v5646_v22 }
  0xe9   :  { %1489 = vmatpush.bf16.msra.mxu2 %v5409_v51 }
  0xea   :  { %6795 = vst [vmem:[#allocation83_spill] sm:$0xff] %v5683_v50  ;;  %v570_v36 = vpop.f32.mrf.mxu3  ;;  %v5688_v33 = vpop.f32.mrf.mxu0 }
  0xeb   :  { %v5686_v12 = vadd.f32 %v570_v36, %v5650_v39  ;;  %6797 = vst [vmem:[#allocation85_spill] sm:$0xff] %v5688_v33  ;;  %v5691_v53 = vpop.f32.mrf.mxu1 }
  0xec   :  { %1502 = vmatpush.bf16.msra.mxu3 %v5415_v0  ;;  %6798 = vst [vmem:[#allocation86_spill] sm:$0xff] %v5691_v53 }
  0xed   :  { %6796 = vst [vmem:[#allocation84_spill] sm:$0xff] %v5686_v12  ;;  %1490 = vmatpush.bf16.msra.mxu2 %v5428_v24 }
  0xef   :  { %v5695_v44 = vpop.f32.mrf.mxu2 }
  0xf0   :  { %1503 = vmatpush.bf16.msra.mxu3 %v5434_v38  ;;  %6799 = vst [vmem:[#allocation87_spill] sm:$0xff] %v5695_v44 }
  0xf1   :  { %1491 = vmatpush.bf16.msra.mxu2 %v5451_v7 }
  0xf2   :  { %v5698_v30 = vpop.f32.mrf.mxu3  ;;  %v604_v50 = vpop.f32.mrf.mxu0 }
  0xf3   :  { %6800 = vst [vmem:[#allocation88_spill] sm:$0xff] %v5698_v30  ;;  %v5702_v36 = vadd.f32 %v604_v50, %v5598_v19  ;;  %v633_v12 = vpop.f32.mrf.mxu1 }
  0xf4   :  { %1504 = vmatpush.bf16.msra.mxu3 %v5464_v47  ;;  %v5706_v6 = vadd.f32 %v633_v12, %v5604_v32 }
  0xf5   :  { %1492 = vmatpush.bf16.msra.mxu2 %v5485_v60  ;;  %6801 = vst [vmem:[#allocation89_spill] sm:$0xff] %v5702_v36 }
  0xf6   :  { %6802 = vst [vmem:[#allocation90_spill] sm:$0xff] %v5706_v6 }
  0xf7   :  { %v546_v53 = vpop.f32.mrf.mxu2 }
  0xf8   :  { %1505 = vmatpush.bf16.msra.mxu3 %v5491_v28  ;;  %v5711_v44 = vadd.f32 %v546_v53, %v5646_v22 }
  0xf9   :  { %1493 = vmatpush.bf16.msra.mxu2 %v5512_v11 }
  0xfa   :  { %6803 = vst [vmem:[#allocation91_spill] sm:$0xff] %v5711_v44  ;;  %v575_v30 = vpop.f32.mrf.mxu3  ;;  %v606_v50 = vpop.f32.mrf.mxu0 }
  0xfb   :  { %v5714_v33 = vadd.f32 %v575_v30, %v5650_v39  ;;  %v635_v36 = vpop.f32.mrf.mxu1  ;;  %v5728_v30 = vperm.slane %v5460_v27, 7 }
  0xfc   :  { %1506 = vmatpush.bf16.msra.mxu3 %v5522_v61  ;;  %v5725_v61 = vperm.slane %v5460_v27, 6 }
  0xfd   :  { %6804 = vst [vmem:[#allocation92_spill] sm:$0xff] %v5714_v33  ;;  %1494 = vmatpush.bf16.msra.mxu2 %v5537_v41 }
  0xfe   :  { %6807 = vst [vmem:[#allocation95_spill] sm:$0xff] %v5725_v61 }
  0xff   :  { %v5719_v12 = vpop.f32.mrf.mxu2  ;;  %6808 = vst [vmem:[#allocation96_spill] sm:$0xff] %v5728_v30 }
 0x100   :  { %1507 = vmatpush.bf16.msra.mxu3 %v5542_v54  ;;  %6805 = vst [vmem:[#allocation93_spill] sm:$0xff] %v5719_v12 }
 0x101   :  { %1495 = vmatpush.bf16.msra.mxu2 %v5561_v1 }
 0x102   :  { %v5722_v6 = vpop.f32.mrf.mxu3  ;;  %v1002_v53 = vpop.f32.mrf.mxu0 }
 0x103   :  { %6806 = vst [vmem:[#allocation94_spill] sm:$0xff] %v5722_v6  ;;  %v1015_v44 = vpop.f32.mrf.mxu1 }
 0x104   :  { %1508 = vmatpush.bf16.msra.mxu3 %v5569_v20 }
 0x107   :  { %v647_v33 = vpop.f32.mrf.mxu2 }
 0x108   :  { %v5731_v41 = vadd.f32 %v647_v33, %v5725_v61 }
 0x10a   :  { %6809 = vst [vmem:[#allocation97_spill] sm:$0xff] %v5731_v41  ;;  %v676_v54 = vpop.f32.mrf.mxu3  ;;  %v1004_v12 = vpop.f32.mrf.mxu0 }
 0x10b   :  { %v5734_v1 = vadd.f32 %v676_v54, %v5728_v30  ;;  %v1017_v20 = vpop.f32.mrf.mxu1  ;;  %v503_v54 = vadd.f32 %v5462_v63, %v5482_v15 }
 0x10c   :  { %v474_v20 = vadd.f32 %v5449_v52, %v5467_v48 }
 0x10d   :  { %6810 = vst [vmem:[#allocation98_spill] sm:$0xff] %v5734_v1  ;;  %v1046_v1 = vadd.f32 %v1015_v44, %v503_v54  ;;  %v607_v54 = vadd.f32 %v606_v50, %v5598_v19 }
 0x10f   :  { %v5736_v11 = vpop.f32.mrf.mxu2 }
 0x110   :  { %6811 = vst [vmem:[#allocation99_spill] sm:$0xff] %v5736_v11  ;;  %v1045_v11 = vadd.f32 %v1002_v53, %v474_v20 }
 0x112   :  { %v5738_v6 = vpop.f32.mrf.mxu3  ;;  %v1218_v10 = vpop.f32.mrf.mxu0 }
 0x113   :  { %6812 = vst [vmem:[#allocation100_spill] sm:$0xff] %v5738_v6  ;;  %v1231_v28 = vpop.f32.mrf.mxu1 }
 0x117   :  { %v652_v60 = vpop.f32.mrf.mxu2 }
 0x118   :  { %v5741_v27 = vadd.f32 %v652_v60, %v5725_v61  ;;  %v3926_v60 = vmul.f32 -1.442695, %v1046_v1 }
 0x11a   :  { %6813 = vst [vmem:[#allocation101_spill] sm:$0xff] %v5741_v27  ;;  %v681_v59 = vpop.f32.mrf.mxu3  ;;  %v1220_v41 = vpop.f32.mrf.mxu0  ;;  %v3925_v27 = vmul.f32 -1.442695, %v1045_v11  ;;  %4203 = vpow2.f32 %v3926_v60  ;;  %v636_v11 = vadd.f32 %v635_v36, %v5604_v32 }
 0x11b   :  { %v5744_v33 = vadd.f32 %v681_v59, %v5728_v30  ;;  %v1233_v12 = vpop.f32.mrf.mxu1 }
 0x11c   :  { %4205 = vpow2.f32 %v3925_v27  ;;  %v1261_v27 = vadd.f32 %v1218_v10, %v607_v54  ;;  %v1262_v60 = vadd.f32 %v1231_v28, %v636_v11 }
 0x11d   :  { %6814 = vst [vmem:[#allocation102_spill] sm:$0xff] %v5744_v33 }
 0x11f   :  { %v5750_v6 = vpop.f32.mrf.mxu2 }
 0x120   :  { %6815 = vst [vmem:[#allocation103_spill] sm:$0xff] %v5750_v6  ;;  %v4204_v12 = vpop.eup %4203 }
 0x121   :  { %v1287_v44 = vadd.f32 1.0, %v4204_v12 }
 0x122   :  { %v5752_v55 = vpop.f32.mrf.mxu3  ;;  %v4206_v52 = vpop.eup %4205 }
 0x123   :  { %6816 = vst [vmem:[#allocation104_spill] sm:$0xff] %v5752_v55  ;;  %v1268_v20 = vadd.f32 1.0, %v4206_v52  ;;  %4207 = vrcp.f32 %v1287_v44  ;;  %v3929_v52 = vmul.f32 -1.442695, %v1262_v60  ;;  %v561_v60 = vadd.f32 %v5620_v35, %v5650_v39 }
 0x124   :  { %vm1293_vm1 = vweird.f32 %v1287_v44 }
 0x125   :  { %4209 = vrcp.f32 %v1268_v20  ;;  %vm1274_vm3 = vweird.f32 %v1268_v20  ;;  %v1278_v35 = vand.u32 2147483647, %v1268_v20 }
 0x127   :  { %v657_v59 = vpop.f32.mrf.mxu2  ;;  %vm1279_vm7 = vcmp.eq.f32.partialorder %v1278_v35, 8.507059e+37 }
 0x128   :  { %v5755_v41 = vadd.f32 %v657_v59, %v5725_v61 }
 0x129   :  { %v4208_v6 = vpop.eup %4207 }
 0x12a   :  { %6817 = vst [vmem:[#allocation105_spill] sm:$0xff] %v5755_v41  ;;  %v686_v33 = vpop.f32.mrf.mxu3  ;;  %vm1294_vm0 = vweird.f32 %v4208_v6 }
 0x12b   :  { %v5758_v63 = vadd.f32 %v686_v33, %v5728_v30  ;;  %v3928_v33 = vmul.f32 -1.442695, %v1261_v27  ;;  %v4210_v50 = vpop.eup %4209  ;;  %vm1295_vm4 = vmor %vm1293_vm1, %vm1294_vm0 }
 0x12c   :  { %vm1275_vm2 = vweird.f32 %v4210_v50 }
 0x12d   :  { %6818 = vst [vmem:[#allocation106_spill] sm:$0xff] %v5758_v63  ;;  %v1289_v63 = vmul.f32 %v4208_v6, %v1287_v44  ;;  %4211 = vpow2.f32 %v3928_v33  ;;  %vm1276_vm5 = vmor %vm1274_vm3, %vm1275_vm2 }
 0x12e   :  { %4213 = vpow2.f32 %v3929_v52 }
 0x12f   :  { %v5760_v53 = vpop.f32.mrf.mxu2  ;;  %v1290_v36 = vsub.f32 1.0, %v1289_v63  ;;  %v1299_v63 = vand.u32 2147483648, %v1287_v44 }
 0x130   :  { %6819 = vst [vmem:[#allocation107_spill] sm:$0xff] %v5760_v53  ;;  %v1270_v53 = vmul.f32 %v4210_v50, %v1268_v20 }
 0x131   :  { %v1291_v11 = vmul.f32 %v4208_v6, %v1290_v36 }
 0x132   :  { %v5763_v1 = vpop.f32.mrf.mxu3  ;;  %v1271_v28 = vsub.f32 1.0, %v1270_v53 }
 0x133   :  { %6820 = vst [vmem:[#allocation108_spill] sm:$0xff] %v5763_v1  ;;  %v4212_v54 = vpop.eup %4211  ;;  %v1292_v52 = vadd.f32 %v4208_v6, %v1291_v11 }
 0x134   :  { %v4214_v27 = vpop.eup %4213  ;;  %v5772_v32 = vadd.f32 1.0, %v4212_v54 }
 0x135   :  { %v5778_v19 = vadd.f32 1.0, %v4214_v27  ;;  %v1296_v27 = vsel %vm1295_vm4, %v4208_v6, %v1292_v52 }
 0x136   :  { %4215 = vrcp.f32 %v5772_v32  ;;  %vm1337_vm8 = vweird.f32 %v5772_v32 }
 0x137   :  { %v662_v59 = vpop.f32.mrf.mxu2  ;;  %vm1356_vm10 = vweird.f32 %v5778_v19 }
 0x138   :  { %v5767_v55 = vadd.f32 %v662_v59, %v5725_v61  ;;  %v1272_v59 = vmul.f32 %v4210_v50, %v1271_v28 }
 0x13a   :  { %6821 = vst [vmem:[#allocation109_spill] sm:$0xff] %v5767_v55  ;;  %v691_v12 = vpop.f32.mrf.mxu3  ;;  %v1297_v55 = vand.u32 2147483647, %v1287_v44  ;;  %v1273_v54 = vadd.f32 %v4210_v50, %v1272_v59 }
 0x13b   :  { %v5770_v41 = vadd.f32 %v691_v12, %v5728_v30  ;;  %v532_v12 = vadd.f32 %v5618_v37, %v5646_v22  ;;  %v1280_v37 = vand.u32 2147483648, %v1268_v20 }
 0x13c   :  { %v1277_v22 = vsel %vm1276_vm5, %v4210_v50, %v1273_v54  ;;  %vm1298_vm6 = vcmp.eq.f32.partialorder %v1297_v55, 8.507059e+37 }
 0x13d   :  { %6822 = vst [vmem:[#allocation110_spill] sm:$0xff] %v5770_v41  ;;  %v1300_v41 = vor.u32 1.1754944e-38, %v1299_v63  ;;  %v1281_v44 = vor.u32 1.1754944e-38, %v1280_v37 }
 0x13f   :  { %v664_v1 = vpop.f32.mrf.mxu2 }
 0x140   :  { %v665_v37 = vadd.f32 %v664_v1, %v5725_v61  ;;  %v1341_v1 = vand.u32 2147483647, %v5772_v32  ;;  %v6856_v61 = vld [vmem:[#allocation50_spill] sm:$0xff] }
 0x142   :  { %v693_v10 = vpop.f32.mrf.mxu3  ;;  %vm5817_vm15 = vcmp.eq.f32.partialorder %v1341_v1, 8.507059e+37 }
 0x143   :  { %v694_v63 = vadd.f32 %v693_v10, %v5728_v30  ;;  %v1362_v10 = vand.u32 2147483648, %v5778_v19  ;;  %v6857_v30 = vld [vmem:[#allocation27_spill] sm:$0xff] }
 0x147   :  { %v1028_v33 = vpop.f32.mrf.mxu2 }
 0x148   :  { %v1047_v53 = vadd.f32 %v1028_v33, %v532_v12  ;;  %v1301_v12 = vsel %vm1298_vm6, %v1300_v41, %v1296_v27  ;;  %v5782_v33 = vpop.eup %4215 }
 0x149   :  { %v1323_v15 = vmul.f32 0.0, %v1301_v12  ;;  %v1333_v55 = vmul.f32 %v5782_v33, %v5772_v32  ;;  %vm1338_vm9 = vweird.f32 %v5782_v33 }
 0x14a   :  { %v1041_v36 = vpop.f32.mrf.mxu3  ;;  %4217 = vtanh.f32 %v1047_v53  ;;  %vm5806_vm12 = vmor %vm1337_vm8, %vm1338_vm9 }
 0x14b   :  { %v1048_v28 = vadd.f32 %v1041_v36, %v561_v60  ;;  %4219 = vrcp.f32 %v5778_v19  ;;  %v1282_v36 = vsel %vm1279_vm7, %v1281_v44, %v1277_v22  ;;  %v1334_v22 = vsub.f32 1.0, %v1333_v55 }
 0x14d   :  { %v3927_v11 = vmul.f32 -1.442695, %v1048_v28  ;;  %v1335_v12 = vmul.f32 %v5782_v33, %v1334_v22 }
 0x14f   :  { %4221 = vpow2.f32 %v3927_v11  ;;  %v1030_v59 = vpop.f32.mrf.mxu2  ;;  %v1336_v55 = vadd.f32 %v5782_v33, %v1335_v12 }
 0x150   :  { %v4218_v60 = vpop.eup %4217 }
 0x151   :  { %v5784_v53 = vpop.eup %4219  ;;  %v1324_v20 = vmul.f32 %v4218_v60, %v1282_v36  ;;  %v1343_v36 = vand.u32 2147483648, %v5772_v32 }
 0x152   :  { %v1043_v39 = vpop.f32.mrf.mxu3  ;;  %v1352_v41 = vmul.f32 %v5784_v53, %v5778_v19  ;;  %vm1357_vm11 = vweird.f32 %v5784_v53 }
 0x153   :  { %v5786_v52 = vadd.f32 %v1324_v20, %v1323_v15  ;;  %v1360_v20 = vand.u32 2147483647, %v5778_v19  ;;  %vm5813_vm13 = vmor %vm1356_vm10, %vm1357_vm11  ;;  %v1340_v19 = vsel %vm5806_vm12, %v5782_v33, %v1336_v55 }
 0x154   :  { %v1353_v39 = vsub.f32 1.0, %v1352_v41 }
 0x155   :  { %v4222_v6 = vpop.eup %4221  ;;  %vm1361_vm1 = vcmp.eq.f32.partialorder %v1360_v20, 8.507059e+37 }
 0x156   :  { %v1307_v50 = vadd.f32 1.0, %v4222_v6  ;;  %v1354_v44 = vmul.f32 %v5784_v53, %v1353_v39 }
 0x157   :  { %v1244_v54 = vpop.f32.mrf.mxu2 }
 0x158   :  { %4223 = vrcp.f32 %v1307_v50  ;;  %v1263_v27 = vadd.f32 %v1244_v54, %v665_v37  ;;  %v1319_v22 = vand.u32 2147483648, %v1307_v50  ;;  %v1363_v37 = vor.u32 1.1754944e-38, %v1362_v10 }
 0x159   :  { %vm1313_vm0 = vweird.f32 %v1307_v50 }
 0x15a   :  { %v1257_v28 = vpop.f32.mrf.mxu3  ;;  %v1320_v10 = vor.u32 1.1754944e-38, %v1319_v22 }
 0x15b   :  { %v1264_v35 = vadd.f32 %v1257_v28, %v694_v63  ;;  %v1355_v63 = vadd.f32 %v5784_v53, %v1354_v44  ;;  %v1317_v28 = vand.u32 2147483647, %v1307_v50 }
 0x15d   :  { %v3930_v15 = vmul.f32 -1.442695, %v1264_v35  ;;  %v1359_v12 = vsel %vm5813_vm13, %v5784_v53, %v1355_v63  ;;  %vm1318_vm3 = vcmp.eq.f32.partialorder %v1317_v28, 8.507059e+37 }
 0x15e   :  { %v4224_v11 = vpop.eup %4223  ;;  %v1364_v20 = vsel %vm1361_vm1, %v1363_v37, %v1359_v12 }
 0x15f   :  { %v1309_v59 = vmul.f32 %v4224_v11, %v1307_v50  ;;  %4225 = vpow2.f32 %v3930_v15  ;;  %v1246_v6 = vpop.f32.mrf.mxu2  ;;  %vm1314_vm14 = vweird.f32 %v4224_v11  ;;  %v1344_v15 = vor.u32 1.1754944e-38, %v1343_v36 }
 0x160   :  { %4227 = vtanh.f32 %v1263_v27  ;;  %vm1315_vm2 = vmor %vm1313_vm0, %vm1314_vm14  ;;  %v1386_v53 = vmul.f32 0.0, %v1364_v20  ;;  %v6838_v20 = vld [vmem:[#allocation12_spill] sm:$0xff] }
 0x161   :  { %v1310_v60 = vsub.f32 1.0, %v1309_v59  ;;  %4229 = vtanh.f32 %v5786_v52  ;;  %v1345_v36 = vsel %vm5817_vm15, %v1344_v15, %v1340_v19 }
 0x162   :  { %v1259_v54 = vpop.f32.mrf.mxu3 }
 0x163   :  { %v1311_v39 = vmul.f32 %v4224_v11, %v1310_v60 }
 0x165   :  { %v4226_v27 = vpop.eup %4225  ;;  %v1312_v44 = vadd.f32 %v4224_v11, %v1311_v39 }
 0x166   :  { %v1370_v59 = vadd.f32 1.0, %v4226_v27  ;;  %v4228_v1 = vpop.eup %4227 }
 0x167   :  { %v1316_v60 = vsel %vm1315_vm2, %v4224_v11, %v1312_v44  ;;  %v4230_v6 = vpop.eup %4229  ;;  %v1387_v33 = vmul.f32 %v4228_v1, %v1345_v36  ;;  %v6833_v1 = vld [vmem:[#allocation7_spill] sm:$0xff] }
 0x168   :  { %4231 = vrcp.f32 %v1370_v59  ;;  %v1321_v50 = vsel %vm1318_vm3, %v1320_v10, %v1316_v60  ;;  %v1382_v39 = vand.u32 2147483648, %v1370_v59  ;;  %v1380_v28 = vand.u32 2147483647, %v1370_v59  ;;  %v6832_v10 = vld [vmem:[#allocation6_spill] sm:$0xff]  ;;  %v6834_v60 = vld [vmem:[#allocation8_spill] sm:$0xff]  ;;  %v6837_v36 = vld [vmem:[#allocation11_spill] sm:$0xff] }
 0x169   :  { %v5829_v54 = vmul.f32 %v4230_v6, %v1321_v50  ;;  %v5833_v63 = vadd.f32 %v1387_v33, %v1386_v53  ;;  %vm1376_vm5 = vweird.f32 %v1370_v59  ;;  %v6835_v6 = vld [vmem:[#allocation9_spill] sm:$0xff]  ;;  %v6836_v50 = vld [vmem:[#allocation10_spill] sm:$0xff]  ;;  %v6841_v53 = vld [vmem:[#allocation15_spill] sm:$0xff] }
 0x16a   :  { %v1383_v35 = vor.u32 1.1754944e-38, %v1382_v39  ;;  %vm1381_vm7 = vcmp.eq.f32.partialorder %v1380_v28, 8.507059e+37  ;;  %v6839_v33 = vld [vmem:[#allocation13_spill] sm:$0xff] }
 0x16b   :  { %6829 = vst [vmem:[#allocation111_spill] sm:$0xff] %v5829_v54  ;;  %v1404_v55 = vpack.c.bf16 %v5829_v54, %v5829_v54  ;;  %4233 = vtanh.f32 %v5833_v63  ;;  %v6845_v39 = vld [vmem:[#allocation21_spill] sm:$0xff] }
 0x16c   :  { %v6847_v28 = vld [vmem:[#allocation41_spill] sm:$0xff] }
 0x16d   :  { %1413 = vmatmul.bf16.vlgmr.msra.gmra.mxu0 %v1404_v55  ;;  %1426 = vmatmul.bf16.vlgmr.msra.gmra.mxu1 %v1404_v55  ;;  %v6855_v54 = vld [vmem:[#allocation49_spill] sm:$0xff] }
 0x16e   :  { %v4232_v41 = vpop.eup %4231  ;;  %1439 = vmatmul.bf16.vlgmr.msrb.gmra.mxu2 %v1404_v55  ;;  %1452 = vmatmul.bf16.vlgmr.msrb.gmra.mxu3 %v1404_v55  ;;  %v6840_v55 = vld [vmem:[#allocation14_spill] sm:$0xff] }
 0x16f   :  { %v1372_v11 = vmul.f32 %v4232_v41, %v1370_v59  ;;  %1659 = vmatpush.bf16.msra.mxu0 %v4875_v46  ;;  %1672 = vmatpush.bf16.msra.mxu1 %v4881_v49  ;;  %vm1377_vm4 = vweird.f32 %v4232_v41  ;;  %v6831_v59 = vld [vmem:[#allocation5_spill] sm:$0xff] }
 0x170   :  { %1685 = vmatpush.bf16.msrb.mxu2 %v5145_v34  ;;  %1698 = vmatpush.bf16.msrb.mxu3 %v5098_v13  ;;  %vm1378_vm6 = vmor %vm1376_vm5, %vm1377_vm4 }
 0x171   :  { %v1373_v22 = vsub.f32 1.0, %v1372_v11  ;;  %v4234_v15 = vpop.eup %4233  ;;  %v6843_v11 = vld [vmem:[#allocation17_spill] sm:$0xff] }
 0x173   :  { %v1374_v32 = vmul.f32 %v4232_v41, %v1373_v22  ;;  %1660 = vmatpush.bf16.msra.mxu0 %v4900_v58  ;;  %1673 = vmatpush.bf16.msra.mxu1 %v4911_v62  ;;  %v6844_v22 = vld [vmem:[#allocation18_spill] sm:$0xff] }
 0x174   :  { %1686 = vmatpush.bf16.msrb.mxu2 %v5210_v3  ;;  %1699 = vmatpush.bf16.msrb.mxu3 %v5125_v25 }
 0x175   :  { %v1375_v37 = vadd.f32 %v4232_v41, %v1374_v32  ;;  %v6846_v32 = vld [vmem:[#allocation22_spill] sm:$0xff] }
 0x177   :  { %v1379_v27 = vsel %vm1378_vm6, %v4232_v41, %v1375_v37  ;;  %1661 = vmatpush.bf16.msra.mxu0 %v4926_v4  ;;  %1674 = vmatpush.bf16.msra.mxu1 %v4935_v8  ;;  %v6842_v41 = vld [vmem:[#allocation16_spill] sm:$0xff]  ;;  %v6848_v37 = vld [vmem:[#allocation42_spill] sm:$0xff] }
 0x178   :  { %v1384_v44 = vsel %vm1381_vm7, %v1383_v35, %v1379_v27  ;;  %1687 = vmatpush.bf16.msrb.mxu2 %v5257_v31  ;;  %1700 = vmatpush.bf16.msrb.mxu3 %v5196_v57  ;;  %v6849_v35 = vld [vmem:[#allocation23_spill] sm:$0xff]  ;;  %v6850_v27 = vld [vmem:[#allocation24_spill] sm:$0xff] }
 0x179   :  { %v5848_v19 = vmul.f32 %v4234_v15, %v1384_v44  ;;  %v6851_v15 = vld [vmem:[#allocation46_spill] sm:$0xff]  ;;  %v6852_v44 = vld [vmem:[#allocation48_spill] sm:$0xff] }
 0x17b   :  { %6830 = vst [vmem:[#allocation112_spill] sm:$0xff] %v5848_v19  ;;  %v1461_v12 = vpack.c.bf16 %v5848_v19, %v5848_v19  ;;  %1662 = vmatpush.bf16.msra.mxu0 %v4950_v14  ;;  %1675 = vmatpush.bf16.msra.mxu1 %v4960_v18  ;;  %v6854_v19 = vld [vmem:[#allocation26_spill] sm:$0xff] }
 0x17c   :  { %1688 = vmatpush.bf16.msrb.mxu2 %v5291_v56  ;;  %1701 = vmatpush.bf16.msrb.mxu3 %v5237_v21 }
 0x17d   :  { %1470 = vmatmul.bf16.vlgmr.msrb.gmra.mxu0 %v1461_v12  ;;  %1483 = vmatmul.bf16.vlgmr.msrb.gmra.mxu1 %v1461_v12 }
 0x17e   :  { %1496 = vmatmul.bf16.vlgmr.msra.gmra.mxu2 %v1461_v12  ;;  %1509 = vmatmul.bf16.vlgmr.msra.gmra.mxu3 %v1461_v12  ;;  %v6853_v12 = vld [vmem:[#allocation25_spill] sm:$0xff] }
 0x17f   :  { %1663 = vmatpush.bf16.msra.mxu0 %v6831_v59  ;;  %1676 = vmatpush.bf16.msra.mxu1 %v6832_v10 }
 0x180   :  { %1689 = vmatpush.bf16.msrb.mxu2 %v5314_v9  ;;  %1702 = vmatpush.bf16.msrb.mxu3 %v5303_v5 }
 0x183   :  { %1664 = vmatpush.bf16.msra.mxu0 %v6833_v1  ;;  %1677 = vmatpush.bf16.msra.mxu1 %v6834_v60 }
 0x184   :  { %1690 = vmatpush.bf16.msrb.mxu2 %v5328_v23  ;;  %1703 = vmatpush.bf16.msrb.mxu3 %v5333_v26 }
 0x187   :  { %1665 = vmatpush.bf16.msra.mxu0 %v6835_v6  ;;  %1678 = vmatpush.bf16.msra.mxu1 %v6836_v50 }
 0x188   :  { %1691 = vmatpush.bf16.msrb.mxu2 %v5347_v40  ;;  %1704 = vmatpush.bf16.msrb.mxu3 %v5353_v45 }
 0x18b   :  { %1666 = vmatpush.bf16.msra.mxu0 %v6837_v36  ;;  %1679 = vmatpush.bf16.msra.mxu1 %v6838_v20 }
 0x18c   :  { %1692 = vmatpush.bf16.msrb.mxu2 %v5368_v2  ;;  %1705 = vmatpush.bf16.msrb.mxu3 %v5382_v16 }
 0x18f   :  { %1716 = vmatpush.bf16.msrb.mxu0 %v6839_v33  ;;  %1729 = vmatpush.bf16.msrb.mxu1 %v6840_v55 }
 0x190   :  { %1742 = vmatpush.bf16.msra.mxu2 %v5384_v17  ;;  %1755 = vmatpush.bf16.msra.mxu3 %v5394_v29 }
 0x193   :  { %1717 = vmatpush.bf16.msrb.mxu0 %v6841_v53  ;;  %1730 = vmatpush.bf16.msrb.mxu1 %v6842_v41 }
 0x194   :  { %1743 = vmatpush.bf16.msra.mxu2 %v5409_v51  ;;  %1756 = vmatpush.bf16.msra.mxu3 %v5415_v0 }
 0x197   :  { %1718 = vmatpush.bf16.msrb.mxu0 %v6843_v11  ;;  %1731 = vmatpush.bf16.msrb.mxu1 %v6844_v22 }
 0x198   :  { %1744 = vmatpush.bf16.msra.mxu2 %v5428_v24  ;;  %1757 = vmatpush.bf16.msra.mxu3 %v5434_v38 }
 0x19b   :  { %1719 = vmatpush.bf16.msrb.mxu0 %v5165_v42  ;;  %1732 = vmatpush.bf16.msrb.mxu1 %v5168_v43  ;;  %v6865_v43 = vld [vmem:[#allocation70_spill] sm:$0xff] }
 0x19c   :  { %1745 = vmatpush.bf16.msra.mxu2 %v5451_v7  ;;  %1758 = vmatpush.bf16.msra.mxu3 %v5464_v47 }
 0x19f   :  { %1720 = vmatpush.bf16.msrb.mxu0 %v6845_v39  ;;  %1733 = vmatpush.bf16.msrb.mxu1 %v6846_v32  ;;  %v6863_v32 = vld [vmem:[#allocation47_spill] sm:$0xff] }
 0x1a0   :  { %1746 = vmatpush.bf16.msra.mxu2 %v6847_v28  ;;  %1759 = vmatpush.bf16.msra.mxu3 %v6848_v37  ;;  %v6858_v28 = vld [vmem:[#allocation28_spill] sm:$0xff]  ;;  %v6859_v37 = vld [vmem:[#allocation53_spill] sm:$0xff] }
 0x1a3   :  { %1721 = vmatpush.bf16.msrb.mxu0 %v6849_v35  ;;  %1734 = vmatpush.bf16.msrb.mxu1 %v6850_v27  ;;  %v6860_v35 = vld [vmem:[#allocation55_spill] sm:$0xff] }
 0x1a4   :  { %1747 = vmatpush.bf16.msra.mxu2 %v6851_v15  ;;  %1760 = vmatpush.bf16.msra.mxu3 %v6852_v44  ;;  %v6861_v15 = vld [vmem:[#allocation45_spill] sm:$0xff]  ;;  %v6862_v44 = vld [vmem:[#allocation40_spill] sm:$0xff] }
 0x1a5   :  { %v476_v27 = vadd.f32 %v6861_v15, %v5467_v48 }
 0x1a7   :  { %1722 = vmatpush.bf16.msrb.mxu0 %v6853_v12  ;;  %1735 = vmatpush.bf16.msrb.mxu1 %v6854_v19  ;;  %v505_v12 = vadd.f32 %v6863_v32, %v6862_v44 }
 0x1a8   :  { %1748 = vmatpush.bf16.msra.mxu2 %v6855_v54  ;;  %1761 = vmatpush.bf16.msra.mxu3 %v6856_v61 }
 0x1ab   :  { %1723 = vmatpush.bf16.msrb.mxu0 %v6857_v30  ;;  %1736 = vmatpush.bf16.msrb.mxu1 %v6858_v28  ;;  %v6864_v30 = vld [vmem:[#allocation74_spill] sm:$0xff] }
 0x1ac   :  { %1749 = vmatpush.bf16.msra.mxu2 %v6859_v37  ;;  %1762 = vmatpush.bf16.msra.mxu3 %v6860_v35  ;;  %v563_v28 = vadd.f32 %v6865_v43, %v6864_v30 }
 0x1ea   :  { %v1414_v39 = vpop.f32.mrf.mxu0  ;;  %v1427_v19 = vpop.f32.mrf.mxu1 }
 0x1eb   :  { %v1457_v47 = vadd.f32 %v1414_v39, %v476_v27  ;;  %v1458_v54 = vadd.f32 %v1427_v19, %v505_v12  ;;  %v6866_v39 = vld [vmem:[#allocation89_spill] sm:$0xff] }
 0x1ed   :  { %v3931_v7 = vmul.f32 -1.442695, %v1457_v47  ;;  %v3932_v61 = vmul.f32 -1.442695, %v1458_v54 }
 0x1ef   :  { %4235 = vpow2.f32 %v3931_v7 }
 0x1f0   :  { %4237 = vpow2.f32 %v3932_v61  ;;  %v6867_v61 = vld [vmem:[#allocation90_spill] sm:$0xff] }
 0x1f1   :  { %v1440_v37 = vpop.f32.mrf.mxu2  ;;  %v1453_v42 = vpop.f32.mrf.mxu3 }
 0x1f2   :  { %v1460_v35 = vadd.f32 %v1453_v42, %v563_v28  ;;  %v1416_v38 = vpop.f32.mrf.mxu0  ;;  %v1429_v24 = vpop.f32.mrf.mxu1  ;;  %v6868_v42 = vld [vmem:[#allocation73_spill] sm:$0xff] }
 0x1f3   :  { %v6869_v38 = vld [vmem:[#allocation69_spill] sm:$0xff] }
 0x1f4   :  { %v3933_v15 = vmul.f32 -1.442695, %v1460_v35  ;;  %v534_v24 = vadd.f32 %v6869_v38, %v6868_v42 }
 0x1f5   :  { %v4236_v48 = vpop.eup %4235 }
 0x1f6   :  { %v4238_v22 = vpop.eup %4237  ;;  %v1521_v32 = vadd.f32 1.0, %v4236_v48  ;;  %4239 = vpow2.f32 %v3933_v15 }
 0x1f7   :  { %v1540_v44 = vadd.f32 1.0, %v4238_v22  ;;  %v1459_v22 = vadd.f32 %v1440_v37, %v534_v24 }
 0x1f8   :  { %4241 = vrcp.f32 %v1521_v32  ;;  %v1533_v0 = vand.u32 2147483648, %v1521_v32  ;;  %vm1527_vm11 = vweird.f32 %v1521_v32 }
 0x1f9   :  { %4243 = vrcp.f32 %v1540_v44  ;;  %v1442_v47 = vpop.f32.mrf.mxu2  ;;  %v1455_v54 = vpop.f32.mrf.mxu3  ;;  %v1552_v42 = vand.u32 2147483648, %v1540_v44  ;;  %v1550_v24 = vand.u32 2147483647, %v1540_v44  ;;  %vm1546_vm10 = vweird.f32 %v1540_v44 }
 0x1fa   :  { %v1471_v7 = vpop.f32.mrf.mxu0  ;;  %v1484_v19 = vpop.f32.mrf.mxu1 }
 0x1fb   :  { %v1514_v43 = vadd.f32 %v1471_v7, %v6866_v39  ;;  %v1515_v27 = vadd.f32 %v1484_v19, %v6867_v61  ;;  %v1531_v7 = vand.u32 2147483647, %v1521_v32  ;;  %vm1551_vm15 = vcmp.eq.f32.partialorder %v1550_v24, 8.507059e+37 }
 0x1fc   :  { %v4240_v12 = vpop.eup %4239 }
 0x1fd   :  { %v5914_v28 = vadd.f32 1.0, %v4240_v12  ;;  %v3934_v35 = vmul.f32 -1.442695, %v1514_v43  ;;  %v3935_v48 = vmul.f32 -1.442695, %v1515_v27  ;;  %v6870_v12 = vld [vmem:[#allocation110_spill] sm:$0xff] }
 0x1fe   :  { %v4242_v15 = vpop.eup %4241  ;;  %vm1532_vm12 = vcmp.eq.f32.partialorder %v1531_v7, 8.507059e+37 }
 0x1ff   :  { %v4244_v30 = vpop.eup %4243  ;;  %v1523_v11 = vmul.f32 %v4242_v15, %v1521_v32  ;;  %4245 = vrcp.f32 %v5914_v28  ;;  %vm1528_vm8 = vweird.f32 %v4242_v15  ;;  %vm1566_vm1 = vweird.f32 %v5914_v28 }
 0x200   :  { %v1542_v47 = vmul.f32 %v4244_v30, %v1540_v44  ;;  %4247 = vpow2.f32 %v3934_v35  ;;  %vm1547_vm9 = vweird.f32 %v4244_v30  ;;  %vm1529_vm13 = vmor %vm1527_vm11, %vm1528_vm8 }
 0x201   :  { %v1524_v54 = vsub.f32 1.0, %v1523_v11  ;;  %4249 = vpow2.f32 %v3935_v48  ;;  %v1497_v19 = vpop.f32.mrf.mxu2  ;;  %v1510_v39 = vpop.f32.mrf.mxu3  ;;  %vm1548_vm14 = vmor %vm1546_vm10, %vm1547_vm9 }
 0x202   :  { %v1543_v61 = vsub.f32 1.0, %v1542_v47  ;;  %4251 = vtanh.f32 %v1459_v22  ;;  %v1517_v38 = vadd.f32 %v1510_v39, %v6870_v12  ;;  %v1473_v43 = vpop.f32.mrf.mxu0  ;;  %v1486_v27 = vpop.f32.mrf.mxu1  ;;  %v1534_v47 = vor.u32 1.1754944e-38, %v1533_v0 }
 0x203   :  { %v1525_v37 = vmul.f32 %v4242_v15, %v1524_v54  ;;  %v1553_v54 = vor.u32 1.1754944e-38, %v1552_v42 }
 0x204   :  { %v1544_v51 = vmul.f32 %v4244_v30, %v1543_v61  ;;  %v3936_v41 = vmul.f32 -1.442695, %v1517_v38 }
 0x205   :  { %v4246_v35 = vpop.eup %4245  ;;  %v1526_v11 = vadd.f32 %v4242_v15, %v1525_v37 }
 0x206   :  { %v4248_v48 = vpop.eup %4247  ;;  %v1545_v22 = vadd.f32 %v4244_v30, %v1544_v51  ;;  %v1562_v39 = vmul.f32 %v4246_v35, %v5914_v28  ;;  %4253 = vpow2.f32 %v3936_v41  ;;  %vm1567_vm0 = vweird.f32 %v4246_v35 }
 0x207   :  { %v4250_v12 = vpop.eup %4249  ;;  %v1530_v43 = vsel %vm1529_vm13, %v4242_v15, %v1526_v11  ;;  %v1584_v61 = vadd.f32 1.0, %v4248_v48  ;;  %vm1568_vm2 = vmor %vm1566_vm1, %vm1567_vm0 }
 0x208   :  { %v4252_v27 = vpop.eup %4251  ;;  %v1535_v38 = vsel %vm1532_vm12, %v1534_v47, %v1530_v43  ;;  %v1549_v53 = vsel %vm1548_vm14, %v4244_v30, %v1545_v22  ;;  %v1563_v44 = vsub.f32 1.0, %v1562_v39  ;;  %v1603_v37 = vadd.f32 1.0, %v4250_v12 }
 0x209   :  { %v1554_v32 = vsel %vm1551_vm15, %v1553_v54, %v1549_v53  ;;  %v1577_v7 = vmul.f32 %v4252_v27, %v1535_v38  ;;  %4255 = vrcp.f32 %v1584_v61  ;;  %v1499_v29 = vpop.f32.mrf.mxu2  ;;  %v1512_v0 = vpop.f32.mrf.mxu3  ;;  %v1570_v30 = vand.u32 2147483647, %v5914_v28 }
 0x20a   :  { %v1576_v51 = vmul.f32 %v1554_v32, %v5786_v52  ;;  %v1564_v17 = vmul.f32 %v4246_v35, %v1563_v44  ;;  %4257 = vrcp.f32 %v1603_v37  ;;  %v1572_v53 = vand.u32 2147483648, %v5914_v28  ;;  %v6871_v29 = vld [vmem:[#allocation109_spill] sm:$0xff] }
 0x20b   :  { %v1516_v52 = vadd.f32 %v1497_v19, %v6871_v29  ;;  %vm1571_vm3 = vcmp.eq.f32.partialorder %v1570_v30, 8.507059e+37  ;;  %v1615_v54 = vand.u32 2147483648, %v1603_v37  ;;  %v1596_v43 = vand.u32 2147483648, %v1584_v61 }
 0x20c   :  { %v4254_v41 = vpop.eup %4253  ;;  %v5920_v55 = vadd.f32 %v1577_v7, %v1576_v51  ;;  %v1565_v42 = vadd.f32 %v4246_v35, %v1564_v17  ;;  %v1573_v39 = vor.u32 1.1754944e-38, %v1572_v53  ;;  %v1594_v28 = vand.u32 2147483647, %v1584_v61 }
 0x20d   :  { %v5923_v15 = vadd.f32 1.0, %v4254_v41  ;;  %v1613_v32 = vand.u32 2147483647, %v1603_v37  ;;  %vm1609_vm6 = vweird.f32 %v1603_v37  ;;  %vm1590_vm7 = vweird.f32 %v1584_v61 }
 0x20e   :  { %4259 = vtanh.f32 %v5920_v55  ;;  %v1569_v47 = vsel %vm1568_vm2, %v4246_v35, %v1565_v42  ;;  %v1597_v51 = vor.u32 1.1754944e-38, %v1596_v43  ;;  %v1616_v53 = vor.u32 1.1754944e-38, %v1615_v54 }
 0x20f   :  { %v4256_v24 = vpop.eup %4255  ;;  %4261 = vrcp.f32 %v5923_v15  ;;  %v1574_v44 = vsel %vm1571_vm3, %v1573_v39, %v1569_v47  ;;  %vm1595_vm10 = vcmp.eq.f32.partialorder %v1594_v28, 8.507059e+37  ;;  %vm1614_vm11 = vcmp.eq.f32.partialorder %v1613_v32, 8.507059e+37  ;;  %v6876_v32 = vld [vmem:[#allocation32_spill] sm:$0xff] }
 0x210   :  { %v4258_v11 = vpop.eup %4257  ;;  %v1586_v48 = vmul.f32 %v4256_v24, %v1584_v61  ;;  %4263 = vtanh.f32 %v1516_v52  ;;  %vm1591_vm4 = vweird.f32 %v4256_v24  ;;  %vm1629_vm13 = vweird.f32 %v5923_v15 }
 0x211   :  { %v1605_v17 = vmul.f32 %v4258_v11, %v1603_v37  ;;  %vm1610_vm5 = vweird.f32 %v4258_v11  ;;  %vm1592_vm8 = vmor %vm1590_vm7, %vm1591_vm4 }
 0x212   :  { %v1587_v22 = vsub.f32 1.0, %v1586_v48  ;;  %vm1611_vm9 = vmor %vm1609_vm6, %vm1610_vm5 }
 0x213   :  { %v1606_v12 = vsub.f32 1.0, %v1605_v17 }
 0x214   :  { %v4260_v27 = vpop.eup %4259  ;;  %v1588_v38 = vmul.f32 %v4256_v24, %v1587_v22 }
 0x215   :  { %v1607_v19 = vmul.f32 %v4258_v11, %v1606_v12  ;;  %v5930_v7 = vmul.f32 %v4260_v27, %v1574_v44  ;;  %v4262_v0 = vpop.eup %4261  ;;  %v1635_v12 = vand.u32 2147483648, %v5923_v15  ;;  %v6874_v44 = vld [vmem:[#allocation14_spill] sm:$0xff] }
 0x216   :  { %v1589_v35 = vadd.f32 %v4256_v24, %v1588_v38  ;;  %v1625_v42 = vmul.f32 %v4262_v0, %v5923_v15  ;;  %v4264_v52 = vpop.eup %4263  ;;  %vm1630_vm12 = vweird.f32 %v4262_v0 }
 0x217   :  { %6872 = vst [vmem:[#allocation5_spill] sm:$0xff] %v5930_v7  ;;  %v1608_v41 = vadd.f32 %v4258_v11, %v1607_v19  ;;  %v1658_v30 = vpack.c.bf16 %v5930_v7, %v5930_v7  ;;  %vm1631_vm14 = vmor %vm1629_vm13, %vm1630_vm12  ;;  %v1636_v43 = vor.u32 1.1754944e-38, %v1635_v12  ;;  %v6875_v19 = vld [vmem:[#allocation31_spill] sm:$0xff]  ;;  %v6894_v12 = vld [vmem:[#allocation24_spill] sm:$0xff] }
 0x218   :  { %v1593_v29 = vsel %vm1592_vm8, %v4256_v24, %v1589_v35  ;;  %v1626_v47 = vsub.f32 1.0, %v1625_v42  ;;  %v6878_v35 = vld [vmem:[#allocation16_spill] sm:$0xff]  ;;  %v6881_v42 = vld [vmem:[#allocation17_spill] sm:$0xff] }
 0x219   :  { %v1598_v48 = vsel %vm1595_vm10, %v1597_v51, %v1593_v29  ;;  %v1612_v17 = vsel %vm1611_vm9, %v4258_v11, %v1608_v41  ;;  %1667 = vmatmul.bf16.vlgmr.msra.gmra.mxu0 %v1658_v30  ;;  %1680 = vmatmul.bf16.vlgmr.msra.gmra.mxu1 %v1658_v30  ;;  %v6879_v51 = vld [vmem:[#allocation33_spill] sm:$0xff]  ;;  %v6880_v41 = vld [vmem:[#allocation34_spill] sm:$0xff]  ;;  %v6884_v29 = vld [vmem:[#allocation36_spill] sm:$0xff] }
 0x21a   :  { %v1617_v61 = vsel %vm1614_vm11, %v1616_v53, %v1612_v17  ;;  %v1640_v37 = vmul.f32 %v4264_v52, %v1598_v48  ;;  %1693 = vmatmul.bf16.vlgmr.msrb.gmra.mxu2 %v1658_v30  ;;  %1706 = vmatmul.bf16.vlgmr.msrb.gmra.mxu3 %v1658_v30  ;;  %v1627_v39 = vmul.f32 %v4262_v0, %v1626_v47  ;;  %v6882_v30 = vld [vmem:[#allocation18_spill] sm:$0xff]  ;;  %v6883_v53 = vld [vmem:[#allocation35_spill] sm:$0xff]  ;;  %v6886_v48 = vld [vmem:[#allocation20_spill] sm:$0xff] }
 0x21b   :  { %v1639_v22 = vmul.f32 %v1617_v61, %v5833_v63  ;;  %1913 = vmatpush.bf16.msra.mxu0 %v4875_v46  ;;  %1926 = vmatpush.bf16.msra.mxu1 %v4881_v49  ;;  %v1633_v63 = vand.u32 2147483647, %v5923_v15  ;;  %v6885_v52 = vld [vmem:[#allocation19_spill] sm:$0xff]  ;;  %v6887_v17 = vld [vmem:[#allocation37_spill] sm:$0xff]  ;;  %v6888_v47 = vld [vmem:[#allocation38_spill] sm:$0xff] }
 0x21c   :  { %1939 = vmatpush.bf16.msrb.mxu2 %v5145_v34  ;;  %1952 = vmatpush.bf16.msrb.mxu3 %v5098_v13  ;;  %v1628_v11 = vadd.f32 %v4262_v0, %v1627_v39  ;;  %v6889_v61 = vld [vmem:[#allocation21_spill] sm:$0xff]  ;;  %v6892_v39 = vld [vmem:[#allocation42_spill] sm:$0xff]  ;;  %v6902_v7 = vld [vmem:[#allocation28_spill] sm:$0xff] }
 0x21d   :  { %v5940_v24 = vadd.f32 %v1640_v37, %v1639_v22  ;;  %vm1634_vm15 = vcmp.eq.f32.partialorder %v1633_v63, 8.507059e+37  ;;  %v6890_v37 = vld [vmem:[#allocation22_spill] sm:$0xff]  ;;  %v6891_v22 = vld [vmem:[#allocation41_spill] sm:$0xff] }
 0x21e   :  { %v1632_v54 = vsel %vm1631_vm14, %v4262_v0, %v1628_v11  ;;  %v6877_v0 = vld [vmem:[#allocation15_spill] sm:$0xff]  ;;  %v6895_v63 = vld [vmem:[#allocation46_spill] sm:$0xff] }
 0x21f   :  { %4265 = vtanh.f32 %v5940_v24  ;;  %1914 = vmatpush.bf16.msra.mxu0 %v4900_v58  ;;  %1927 = vmatpush.bf16.msra.mxu1 %v4911_v62  ;;  %v1637_v38 = vsel %vm1634_vm15, %v1636_v43, %v1632_v54  ;;  %v6893_v11 = vld [vmem:[#allocation23_spill] sm:$0xff]  ;;  %v6896_v54 = vld [vmem:[#allocation48_spill] sm:$0xff]  ;;  %v6897_v43 = vld [vmem:[#allocation25_spill] sm:$0xff] }
 0x220   :  { %1940 = vmatpush.bf16.msrb.mxu2 %v5210_v3  ;;  %1953 = vmatpush.bf16.msrb.mxu3 %v5125_v25 }
 0x223   :  { %1915 = vmatpush.bf16.msra.mxu0 %v4926_v4  ;;  %1928 = vmatpush.bf16.msra.mxu1 %v4935_v8 }
 0x224   :  { %1941 = vmatpush.bf16.msrb.mxu2 %v5257_v31  ;;  %1954 = vmatpush.bf16.msrb.mxu3 %v5196_v57 }
 0x225   :  { %v4266_v27 = vpop.eup %4265 }
 0x226   :  { %v5954_v28 = vmul.f32 %v4266_v27, %v1637_v38  ;;  %v6898_v27 = vld [vmem:[#allocation26_spill] sm:$0xff]  ;;  %v6899_v38 = vld [vmem:[#allocation49_spill] sm:$0xff] }
 0x227   :  { %1916 = vmatpush.bf16.msra.mxu0 %v4950_v14  ;;  %1929 = vmatpush.bf16.msra.mxu1 %v4960_v18 }
 0x228   :  { %6873 = vst [vmem:[#allocation6_spill] sm:$0xff] %v5954_v28  ;;  %v1715_v15 = vpack.c.bf16 %v5954_v28, %v5954_v28  ;;  %1942 = vmatpush.bf16.msrb.mxu2 %v5291_v56  ;;  %1955 = vmatpush.bf16.msrb.mxu3 %v5237_v21  ;;  %v6901_v28 = vld [vmem:[#allocation27_spill] sm:$0xff] }
 0x22a   :  { %1724 = vmatmul.bf16.vlgmr.msrb.gmra.mxu0 %v1715_v15  ;;  %1737 = vmatmul.bf16.vlgmr.msrb.gmra.mxu1 %v1715_v15 }
 0x22b   :  { %1750 = vmatmul.bf16.vlgmr.msra.gmra.mxu2 %v1715_v15  ;;  %1763 = vmatmul.bf16.vlgmr.msra.gmra.mxu3 %v1715_v15  ;;  %v6900_v15 = vld [vmem:[#allocation50_spill] sm:$0xff] }
 0x22c   :  { %1917 = vmatpush.bf16.msra.mxu0 %v6831_v59  ;;  %1930 = vmatpush.bf16.msra.mxu1 %v6832_v10 }
 0x22d   :  { %1943 = vmatpush.bf16.msrb.mxu2 %v5314_v9  ;;  %1956 = vmatpush.bf16.msrb.mxu3 %v5303_v5 }
 0x230   :  { %1918 = vmatpush.bf16.msra.mxu0 %v6833_v1  ;;  %1931 = vmatpush.bf16.msra.mxu1 %v6834_v60 }
 0x231   :  { %1944 = vmatpush.bf16.msrb.mxu2 %v5328_v23  ;;  %1957 = vmatpush.bf16.msrb.mxu3 %v5333_v26 }
 0x234   :  { %1919 = vmatpush.bf16.msra.mxu0 %v6835_v6  ;;  %1932 = vmatpush.bf16.msra.mxu1 %v6836_v50 }
 0x235   :  { %1945 = vmatpush.bf16.msrb.mxu2 %v5347_v40  ;;  %1958 = vmatpush.bf16.msrb.mxu3 %v5353_v45 }
 0x238   :  { %1920 = vmatpush.bf16.msra.mxu0 %v6837_v36  ;;  %1933 = vmatpush.bf16.msra.mxu1 %v6838_v20 }
 0x239   :  { %1946 = vmatpush.bf16.msrb.mxu2 %v5368_v2  ;;  %1959 = vmatpush.bf16.msrb.mxu3 %v5382_v16 }
 0x23c   :  { %1970 = vmatpush.bf16.msrb.mxu0 %v6839_v33  ;;  %1983 = vmatpush.bf16.msrb.mxu1 %v6874_v44 }
 0x23d   :  { %1996 = vmatpush.bf16.msra.mxu2 %v6875_v19  ;;  %2009 = vmatpush.bf16.msra.mxu3 %v6876_v32 }
 0x240   :  { %1971 = vmatpush.bf16.msrb.mxu0 %v6877_v0  ;;  %1984 = vmatpush.bf16.msrb.mxu1 %v6878_v35 }
 0x241   :  { %1997 = vmatpush.bf16.msra.mxu2 %v6879_v51  ;;  %2010 = vmatpush.bf16.msra.mxu3 %v6880_v41 }
 0x244   :  { %1972 = vmatpush.bf16.msrb.mxu0 %v6881_v42  ;;  %1985 = vmatpush.bf16.msrb.mxu1 %v6882_v30 }
 0x245   :  { %1998 = vmatpush.bf16.msra.mxu2 %v6883_v53  ;;  %2011 = vmatpush.bf16.msra.mxu3 %v6884_v29 }
 0x248   :  { %1973 = vmatpush.bf16.msrb.mxu0 %v6885_v52  ;;  %1986 = vmatpush.bf16.msrb.mxu1 %v6886_v48 }
 0x249   :  { %1999 = vmatpush.bf16.msra.mxu2 %v6887_v17  ;;  %2012 = vmatpush.bf16.msra.mxu3 %v6888_v47  ;;  %v6907_v47 = vld [vmem:[#allocation76_spill] sm:$0xff] }
 0x24c   :  { %1974 = vmatpush.bf16.msrb.mxu0 %v6889_v61  ;;  %1987 = vmatpush.bf16.msrb.mxu1 %v6890_v37  ;;  %v6906_v37 = vld [vmem:[#allocation56_spill] sm:$0xff] }
 0x24d   :  { %2000 = vmatpush.bf16.msra.mxu2 %v6891_v22  ;;  %2013 = vmatpush.bf16.msra.mxu3 %v6892_v39  ;;  %v6903_v39 = vld [vmem:[#allocation53_spill] sm:$0xff]  ;;  %v6905_v22 = vld [vmem:[#allocation54_spill] sm:$0xff] }
 0x250   :  { %1975 = vmatpush.bf16.msrb.mxu0 %v6893_v11  ;;  %1988 = vmatpush.bf16.msrb.mxu1 %v6894_v12  ;;  %v6904_v11 = vld [vmem:[#allocation55_spill] sm:$0xff] }
 0x251   :  { %2001 = vmatpush.bf16.msra.mxu2 %v6895_v63  ;;  %2014 = vmatpush.bf16.msra.mxu3 %v6896_v54 }
 0x254   :  { %1976 = vmatpush.bf16.msrb.mxu0 %v6897_v43  ;;  %1989 = vmatpush.bf16.msrb.mxu1 %v6898_v27 }
 0x255   :  { %2002 = vmatpush.bf16.msra.mxu2 %v6899_v38  ;;  %2015 = vmatpush.bf16.msra.mxu3 %v6900_v15 }
 0x258   :  { %1977 = vmatpush.bf16.msrb.mxu0 %v6901_v28  ;;  %1990 = vmatpush.bf16.msrb.mxu1 %v6902_v7 }
 0x259   :  { %2003 = vmatpush.bf16.msra.mxu2 %v6903_v39  ;;  %2016 = vmatpush.bf16.msra.mxu3 %v6904_v11 }
 0x296   :  { %v1668_v12 = vpop.f32.mrf.mxu0  ;;  %v1681_v63 = vpop.f32.mrf.mxu1 }
 0x297   :  { %v1711_v54 = vadd.f32 %v1668_v12, %v6905_v22  ;;  %v1712_v43 = vadd.f32 %v1681_v63, %v6906_v37  ;;  %v6908_v12 = vld [vmem:[#allocation62_spill] sm:$0xff]  ;;  %v6909_v63 = vld [vmem:[#allocation85_spill] sm:$0xff] }
 0x299   :  { %v3937_v61 = vmul.f32 -1.442695, %v1711_v54  ;;  %v3938_v27 = vmul.f32 -1.442695, %v1712_v43  ;;  %v6910_v54 = vld [vmem:[#allocation64_spill] sm:$0xff]  ;;  %v6911_v43 = vld [vmem:[#allocation86_spill] sm:$0xff] }
 0x29b   :  { %4267 = vpow2.f32 %v3937_v61  ;;  %v602_v61 = vadd.f32 %v6909_v63, %v6908_v12  ;;  %v6913_v12 = vld [vmem:[#allocation96_spill] sm:$0xff] }
 0x29c   :  { %4269 = vpow2.f32 %v3938_v27  ;;  %v631_v27 = vadd.f32 %v6911_v43, %v6910_v54  ;;  %v6914_v43 = vld [vmem:[#allocation108_spill] sm:$0xff] }
 0x29d   :  { %v1694_v38 = vpop.f32.mrf.mxu2  ;;  %v1707_v15 = vpop.f32.mrf.mxu3  ;;  %v689_v54 = vadd.f32 %v6914_v43, %v6913_v12 }
 0x29e   :  { %v1714_v28 = vadd.f32 %v1707_v15, %v6907_v47  ;;  %v1670_v17 = vpop.f32.mrf.mxu0  ;;  %v1683_v7 = vpop.f32.mrf.mxu1 }
 0x29f   :  { %v6912_v7 = vld [vmem:[#allocation75_spill] sm:$0xff] }
 0x2a0   :  { %v3939_v48 = vmul.f32 -1.442695, %v1714_v28  ;;  %v1713_v28 = vadd.f32 %v1694_v38, %v6912_v7 }
 0x2a1   :  { %v4268_v39 = vpop.eup %4267 }
 0x2a2   :  { %v4270_v52 = vpop.eup %4269  ;;  %v1775_v11 = vadd.f32 1.0, %v4268_v39  ;;  %4271 = vpow2.f32 %v3939_v48 }
 0x2a3   :  { %v1794_v29 = vadd.f32 1.0, %v4270_v52 }
 0x2a4   :  { %4273 = vrcp.f32 %v1775_v11  ;;  %v1785_v51 = vand.u32 2147483647, %v1775_v11  ;;  %vm1781_vm3 = vweird.f32 %v1775_v11 }
 0x2a5   :  { %4275 = vrcp.f32 %v1794_v29  ;;  %v1696_v22 = vpop.f32.mrf.mxu2  ;;  %v1709_v37 = vpop.f32.mrf.mxu3  ;;  %vm1800_vm2 = vweird.f32 %v1794_v29 }
 0x2a6   :  { %vm1786_vm5 = vcmp.eq.f32.partialorder %v1785_v51, 8.507059e+37 }
 0x2a7   :  { %v1725_v53 = vpop.f32.mrf.mxu0  ;;  %v1738_v47 = vpop.f32.mrf.mxu1 }
 0x2a8   :  { %v4272_v17 = vpop.eup %4271  ;;  %v1768_v15 = vadd.f32 %v1725_v53, %v602_v61  ;;  %v1769_v30 = vadd.f32 %v1738_v47, %v631_v27  ;;  %v1806_v53 = vand.u32 2147483648, %v1794_v29  ;;  %v1787_v61 = vand.u32 2147483648, %v1775_v11 }
 0x2a9   :  { %v6018_v39 = vadd.f32 1.0, %v4272_v17 }
 0x2aa   :  { %v4274_v52 = vpop.eup %4273  ;;  %v3940_v48 = vmul.f32 -1.442695, %v1768_v15  ;;  %v3941_v42 = vmul.f32 -1.442695, %v1769_v30  ;;  %v1804_v30 = vand.u32 2147483647, %v1794_v29 }
 0x2ab   :  { %v4276_v22 = vpop.eup %4275  ;;  %v1777_v37 = vmul.f32 %v4274_v52, %v1775_v11  ;;  %4277 = vrcp.f32 %v6018_v39  ;;  %vm1782_vm0 = vweird.f32 %v4274_v52  ;;  %v1807_v32 = vor.u32 1.1754944e-38, %v1806_v53  ;;  %v6915_v53 = vld [vmem:[#allocation95_spill] sm:$0xff] }
 0x2ac   :  { %v1796_v63 = vmul.f32 %v4276_v22, %v1794_v29  ;;  %4279 = vtanh.f32 %v1713_v28  ;;  %vm1801_vm1 = vweird.f32 %v4276_v22  ;;  %vm1783_vm4 = vmor %vm1781_vm3, %vm1782_vm0  ;;  %vm1805_vm7 = vcmp.eq.f32.partialorder %v1804_v30, 8.507059e+37  ;;  %v6916_v30 = vld [vmem:[#allocation107_spill] sm:$0xff] }
 0x2ad   :  { %v1778_v41 = vsub.f32 1.0, %v1777_v37  ;;  %4281 = vpow2.f32 %v3940_v48  ;;  %vm1802_vm6 = vmor %vm1800_vm2, %vm1801_vm1  ;;  %vm1820_vm9 = vweird.f32 %v6018_v39 }
 0x2ae   :  { %v1797_v38 = vsub.f32 1.0, %v1796_v63  ;;  %4283 = vpow2.f32 %v3941_v42  ;;  %v1751_v27 = vpop.f32.mrf.mxu2  ;;  %v1764_v47 = vpop.f32.mrf.mxu3  ;;  %v1788_v63 = vor.u32 1.1754944e-38, %v1787_v61 }
 0x2af   :  { %v1779_v17 = vmul.f32 %v4274_v52, %v1778_v41  ;;  %v1771_v7 = vadd.f32 %v1764_v47, %v689_v54  ;;  %v1727_v15 = vpop.f32.mrf.mxu0  ;;  %v1740_v35 = vpop.f32.mrf.mxu1 }
 0x2b0   :  { %v1798_v0 = vmul.f32 %v4276_v22, %v1797_v38 }
 0x2b1   :  { %v4278_v28 = vpop.eup %4277  ;;  %v1780_v43 = vadd.f32 %v4274_v52, %v1779_v17  ;;  %v3942_v37 = vmul.f32 -1.442695, %v1771_v7 }
 0x2b2   :  { %v4280_v48 = vpop.eup %4279  ;;  %v1799_v42 = vadd.f32 %v4276_v22, %v1798_v0  ;;  %v1816_v12 = vmul.f32 %v4278_v28, %v6018_v39  ;;  %vm1821_vm8 = vweird.f32 %v4278_v28 }
 0x2b3   :  { %v4282_v41 = vpop.eup %4281  ;;  %v1784_v54 = vsel %vm1783_vm4, %v4274_v52, %v1780_v43  ;;  %4285 = vpow2.f32 %v3942_v37  ;;  %v660_v43 = vadd.f32 %v6916_v30, %v6915_v53  ;;  %vm1822_vm10 = vmor %vm1820_vm9, %vm1821_vm8  ;;  %v6947_v53 = vld [vmem:[#allocation28_spill] sm:$0xff] }
 0x2b4   :  { %v4284_v35 = vpop.eup %4283  ;;  %v1789_v38 = vsel %vm1786_vm5, %v1788_v63, %v1784_v54  ;;  %v1803_v47 = vsel %vm1802_vm6, %v4276_v22, %v1799_v42  ;;  %v1817_v29 = vsub.f32 1.0, %v1816_v12  ;;  %v1838_v17 = vadd.f32 1.0, %v4282_v41 }
 0x2b5   :  { %v1808_v11 = vsel %vm1805_vm7, %v1807_v32, %v1803_v47  ;;  %v1831_v7 = vmul.f32 %v4280_v48, %v1789_v38  ;;  %v1857_v15 = vadd.f32 1.0, %v4284_v35  ;;  %v1826_v32 = vand.u32 2147483648, %v6018_v39 }
 0x2b6   :  { %v1830_v51 = vmul.f32 %v1808_v11, %v5920_v55  ;;  %v1818_v61 = vmul.f32 %v4278_v28, %v1817_v29  ;;  %4287 = vrcp.f32 %v1838_v17  ;;  %v1753_v0 = vpop.f32.mrf.mxu2  ;;  %v1766_v19 = vpop.f32.mrf.mxu3  ;;  %v1824_v55 = vand.u32 2147483647, %v6018_v39 }
 0x2b7   :  { %4289 = vrcp.f32 %v1857_v15  ;;  %v1770_v19 = vadd.f32 %v1751_v27, %v660_v43  ;;  %v1827_v41 = vor.u32 1.1754944e-38, %v1826_v32  ;;  %v1869_v29 = vand.u32 2147483648, %v1857_v15 }
 0x2b8   :  { %v6025_v44 = vadd.f32 %v1831_v7, %v1830_v51  ;;  %v1819_v37 = vadd.f32 %v4278_v28, %v1818_v61  ;;  %vm1825_vm11 = vcmp.eq.f32.partialorder %v1824_v55, 8.507059e+37  ;;  %v1850_v11 = vand.u32 2147483648, %v1838_v17 }
 0x2b9   :  { %v4286_v52 = vpop.eup %4285  ;;  %v1848_v39 = vand.u32 2147483647, %v1838_v17  ;;  %vm1844_vm14 = vweird.f32 %v1838_v17  ;;  %vm1863_vm15 = vweird.f32 %v1857_v15 }
 0x2ba   :  { %4291 = vtanh.f32 %v6025_v44  ;;  %v6031_v12 = vadd.f32 1.0, %v4286_v52  ;;  %v1823_v42 = vsel %vm1822_vm10, %v4278_v28, %v1819_v37  ;;  %v1867_v52 = vand.u32 2147483647, %v1857_v15 }
 0x2bb   :  { %v1828_v7 = vsel %vm1825_vm11, %v1827_v41, %v1823_v42  ;;  %v1851_v37 = vor.u32 1.1754944e-38, %v1850_v11  ;;  %vm1849_vm2 = vcmp.eq.f32.partialorder %v1848_v39, 8.507059e+37 }
 0x2bc   :  { %v4288_v22 = vpop.eup %4287  ;;  %4293 = vrcp.f32 %v6031_v12  ;;  %vm1868_vm3 = vcmp.eq.f32.partialorder %v1867_v52, 8.507059e+37  ;;  %vm1883_vm5 = vweird.f32 %v6031_v12  ;;  %v6921_v52 = vld [vmem:[#allocation32_spill] sm:$0xff] }
 0x2bd   :  { %v4290_v48 = vpop.eup %4289  ;;  %v1840_v63 = vmul.f32 %v4288_v22, %v1838_v17  ;;  %4295 = vtanh.f32 %v1770_v19  ;;  %vm1845_vm12 = vweird.f32 %v4288_v22  ;;  %v1870_v19 = vor.u32 1.1754944e-38, %v1869_v29 }
 0x2be   :  { %v1859_v54 = vmul.f32 %v4290_v48, %v1857_v15  ;;  %vm1864_vm13 = vweird.f32 %v4290_v48  ;;  %vm1846_vm0 = vmor %vm1844_vm14, %vm1845_vm12 }
 0x2bf   :  { %v1841_v35 = vsub.f32 1.0, %v1840_v63  ;;  %vm1865_vm1 = vmor %vm1863_vm15, %vm1864_vm13 }
 0x2c0   :  { %v4292_v38 = vpop.eup %4291  ;;  %v1860_v47 = vsub.f32 1.0, %v1859_v54 }
 0x2c1   :  { %v1842_v51 = vmul.f32 %v4288_v22, %v1841_v35  ;;  %v6036_v27 = vmul.f32 %v4292_v38, %v1828_v7 }
 0x2c2   :  { %v4294_v61 = vpop.eup %4293  ;;  %v1861_v0 = vmul.f32 %v4290_v48, %v1860_v47 }
 0x2c3   :  { %6917 = vst [vmem:[#allocation7_spill] sm:$0xff] %v6036_v27  ;;  %v1843_v28 = vadd.f32 %v4288_v22, %v1842_v51  ;;  %v1879_v30 = vmul.f32 %v4294_v61, %v6031_v12  ;;  %v1912_v43 = vpack.c.bf16 %v6036_v27, %v6036_v27  ;;  %v4296_v55 = vpop.eup %4295  ;;  %vm1884_vm4 = vweird.f32 %v4294_v61  ;;  %v6946_v27 = vld [vmem:[#allocation27_spill] sm:$0xff] }
 0x2c4   :  { %v1862_v32 = vadd.f32 %v4290_v48, %v1861_v0  ;;  %vm1885_vm6 = vmor %vm1883_vm5, %vm1884_vm4  ;;  %v6920_v0 = vld [vmem:[#allocation31_spill] sm:$0xff] }
 0x2c5   :  { %v1847_v63 = vsel %vm1846_vm0, %v4288_v22, %v1843_v28  ;;  %v1880_v42 = vsub.f32 1.0, %v1879_v30  ;;  %1921 = vmatmul.bf16.vlgmr.msra.gmra.mxu0 %v1912_v43  ;;  %1934 = vmatmul.bf16.vlgmr.msra.gmra.mxu1 %v1912_v43  ;;  %v6922_v28 = vld [vmem:[#allocation15_spill] sm:$0xff]  ;;  %v6923_v30 = vld [vmem:[#allocation16_spill] sm:$0xff] }
 0x2c6   :  { %v1852_v41 = vsel %vm1849_vm2, %v1851_v37, %v1847_v63  ;;  %v1866_v54 = vsel %vm1865_vm1, %v4290_v48, %v1862_v32  ;;  %1947 = vmatmul.bf16.vlgmr.msrb.gmra.mxu2 %v1912_v43  ;;  %1960 = vmatmul.bf16.vlgmr.msrb.gmra.mxu3 %v1912_v43  ;;  %v1889_v48 = vand.u32 2147483648, %v6031_v12  ;;  %v6924_v43 = vld [vmem:[#allocation33_spill] sm:$0xff]  ;;  %v6925_v37 = vld [vmem:[#allocation34_spill] sm:$0xff]  ;;  %v6929_v63 = vld [vmem:[#allocation36_spill] sm:$0xff] }
 0x2c7   :  { %v1871_v17 = vsel %vm1868_vm3, %v1870_v19, %v1866_v54  ;;  %v1894_v35 = vmul.f32 %v4296_v55, %v1852_v41  ;;  %v1881_v38 = vmul.f32 %v4294_v61, %v1880_v42  ;;  %2165 = vmatpush.bf16.msra.mxu0 %v4875_v46  ;;  %2178 = vmatpush.bf16.msra.mxu1 %v4881_v49  ;;  %v6926_v32 = vld [vmem:[#allocation17_spill] sm:$0xff]  ;;  %v6927_v55 = vld [vmem:[#allocation18_spill] sm:$0xff]  ;;  %v6928_v19 = vld [vmem:[#allocation35_spill] sm:$0xff] }
 0x2c8   :  { %v1893_v15 = vmul.f32 %v1871_v17, %v5940_v24  ;;  %2191 = vmatpush.bf16.msrb.mxu2 %v5145_v34  ;;  %2204 = vmatpush.bf16.msrb.mxu3 %v5098_v13  ;;  %v1887_v24 = vand.u32 2147483647, %v6031_v12  ;;  %v1890_v11 = vor.u32 1.1754944e-38, %v1889_v48  ;;  %v6930_v42 = vld [vmem:[#allocation19_spill] sm:$0xff]  ;;  %v6931_v41 = vld [vmem:[#allocation20_spill] sm:$0xff]  ;;  %v6932_v54 = vld [vmem:[#allocation37_spill] sm:$0xff] }
 0x2c9   :  { %v1882_v47 = vadd.f32 %v4294_v61, %v1881_v38  ;;  %v6933_v17 = vld [vmem:[#allocation38_spill] sm:$0xff]  ;;  %v6938_v48 = vld [vmem:[#allocation23_spill] sm:$0xff] }
 0x2ca   :  { %v6046_v22 = vadd.f32 %v1894_v35, %v1893_v15  ;;  %vm1888_vm7 = vcmp.eq.f32.partialorder %v1887_v24, 8.507059e+37  ;;  %v6934_v35 = vld [vmem:[#allocation21_spill] sm:$0xff]  ;;  %v6935_v38 = vld [vmem:[#allocation22_spill] sm:$0xff]  ;;  %v6939_v24 = vld [vmem:[#allocation24_spill] sm:$0xff] }
 0x2cb   :  { %2166 = vmatpush.bf16.msra.mxu0 %v4900_v58  ;;  %2179 = vmatpush.bf16.msra.mxu1 %v4911_v62  ;;  %v1886_v29 = vsel %vm1885_vm6, %v4294_v61, %v1882_v47  ;;  %v6919_v61 = vld [vmem:[#allocation14_spill] sm:$0xff]  ;;  %v6936_v15 = vld [vmem:[#allocation41_spill] sm:$0xff] }
 0x2cc   :  { %4297 = vtanh.f32 %v6046_v22  ;;  %2192 = vmatpush.bf16.msrb.mxu2 %v5210_v3  ;;  %2205 = vmatpush.bf16.msrb.mxu3 %v5125_v25  ;;  %v1891_v51 = vsel %vm1888_vm7, %v1890_v11, %v1886_v29  ;;  %v6937_v47 = vld [vmem:[#allocation42_spill] sm:$0xff]  ;;  %v6941_v11 = vld [vmem:[#allocation48_spill] sm:$0xff] }
 0x2cd   :  { %v6940_v29 = vld [vmem:[#allocation46_spill] sm:$0xff] }
 0x2cf   :  { %2167 = vmatpush.bf16.msra.mxu0 %v4926_v4  ;;  %2180 = vmatpush.bf16.msra.mxu1 %v4935_v8 }
 0x2d0   :  { %2193 = vmatpush.bf16.msrb.mxu2 %v5257_v31  ;;  %2206 = vmatpush.bf16.msrb.mxu3 %v5196_v57 }
 0x2d2   :  { %v4298_v7 = vpop.eup %4297 }
 0x2d3   :  { %v6060_v39 = vmul.f32 %v4298_v7, %v1891_v51  ;;  %2168 = vmatpush.bf16.msra.mxu0 %v4950_v14  ;;  %2181 = vmatpush.bf16.msra.mxu1 %v4960_v18  ;;  %v6942_v7 = vld [vmem:[#allocation25_spill] sm:$0xff]  ;;  %v6943_v51 = vld [vmem:[#allocation26_spill] sm:$0xff] }
 0x2d4   :  { %2194 = vmatpush.bf16.msrb.mxu2 %v5291_v56  ;;  %2207 = vmatpush.bf16.msrb.mxu3 %v5237_v21 }
 0x2d5   :  { %6918 = vst [vmem:[#allocation8_spill] sm:$0xff] %v6060_v39  ;;  %v1969_v12 = vpack.c.bf16 %v6060_v39, %v6060_v39  ;;  %v6945_v39 = vld [vmem:[#allocation50_spill] sm:$0xff] }
 0x2d7   :  { %1978 = vmatmul.bf16.vlgmr.msrb.gmra.mxu0 %v1969_v12  ;;  %1991 = vmatmul.bf16.vlgmr.msrb.gmra.mxu1 %v1969_v12 }
 0x2d8   :  { %2004 = vmatmul.bf16.vlgmr.msra.gmra.mxu2 %v1969_v12  ;;  %2017 = vmatmul.bf16.vlgmr.msra.gmra.mxu3 %v1969_v12  ;;  %v6944_v12 = vld [vmem:[#allocation49_spill] sm:$0xff] }
 0x2d9   :  { %2169 = vmatpush.bf16.msra.mxu0 %v6831_v59  ;;  %2182 = vmatpush.bf16.msra.mxu1 %v6832_v10 }
 0x2da   :  { %2195 = vmatpush.bf16.msrb.mxu2 %v5314_v9  ;;  %2208 = vmatpush.bf16.msrb.mxu3 %v5303_v5 }
 0x2dd   :  { %2170 = vmatpush.bf16.msra.mxu0 %v6833_v1  ;;  %2183 = vmatpush.bf16.msra.mxu1 %v6834_v60 }
 0x2de   :  { %2196 = vmatpush.bf16.msrb.mxu2 %v5328_v23  ;;  %2209 = vmatpush.bf16.msrb.mxu3 %v5333_v26 }
 0x2e1   :  { %2171 = vmatpush.bf16.msra.mxu0 %v6835_v6  ;;  %2184 = vmatpush.bf16.msra.mxu1 %v6836_v50 }
 0x2e2   :  { %2197 = vmatpush.bf16.msrb.mxu2 %v5347_v40  ;;  %2210 = vmatpush.bf16.msrb.mxu3 %v5353_v45 }
 0x2e5   :  { %2172 = vmatpush.bf16.msra.mxu0 %v6837_v36  ;;  %2185 = vmatpush.bf16.msra.mxu1 %v6838_v20 }
 0x2e6   :  { %2198 = vmatpush.bf16.msrb.mxu2 %v5368_v2  ;;  %2211 = vmatpush.bf16.msrb.mxu3 %v5382_v16 }
 0x2e9   :  { %2222 = vmatpush.bf16.msrb.mxu0 %v6839_v33  ;;  %2235 = vmatpush.bf16.msrb.mxu1 %v6919_v61 }
 0x2ea   :  { %2248 = vmatpush.bf16.msra.mxu2 %v6920_v0  ;;  %2261 = vmatpush.bf16.msra.mxu3 %v6921_v52 }
 0x2ed   :  { %2223 = vmatpush.bf16.msrb.mxu0 %v6922_v28  ;;  %2236 = vmatpush.bf16.msrb.mxu1 %v6923_v30 }
 0x2ee   :  { %2249 = vmatpush.bf16.msra.mxu2 %v6924_v43  ;;  %2262 = vmatpush.bf16.msra.mxu3 %v6925_v37 }
 0x2f1   :  { %2224 = vmatpush.bf16.msrb.mxu0 %v6926_v32  ;;  %2237 = vmatpush.bf16.msrb.mxu1 %v6927_v55 }
 0x2f2   :  { %2250 = vmatpush.bf16.msra.mxu2 %v6928_v19  ;;  %2263 = vmatpush.bf16.msra.mxu3 %v6929_v63 }
 0x2f5   :  { %2225 = vmatpush.bf16.msrb.mxu0 %v6930_v42  ;;  %2238 = vmatpush.bf16.msrb.mxu1 %v6931_v41  ;;  %v6955_v41 = vld [vmem:[#allocation80_spill] sm:$0xff] }
 0x2f6   :  { %2251 = vmatpush.bf16.msra.mxu2 %v6932_v54  ;;  %2264 = vmatpush.bf16.msra.mxu3 %v6933_v17 }
 0x2f9   :  { %2226 = vmatpush.bf16.msrb.mxu0 %v6934_v35  ;;  %2239 = vmatpush.bf16.msrb.mxu1 %v6935_v38  ;;  %v6953_v38 = vld [vmem:[#allocation60_spill] sm:$0xff] }
 0x2fa   :  { %2252 = vmatpush.bf16.msra.mxu2 %v6936_v15  ;;  %2265 = vmatpush.bf16.msra.mxu3 %v6937_v47  ;;  %v6948_v47 = vld [vmem:[#allocation53_spill] sm:$0xff] }
 0x2fd   :  { %2227 = vmatpush.bf16.msrb.mxu0 %v6938_v48  ;;  %2240 = vmatpush.bf16.msrb.mxu1 %v6939_v24  ;;  %v6949_v48 = vld [vmem:[#allocation55_spill] sm:$0xff] }
 0x2fe   :  { %2253 = vmatpush.bf16.msra.mxu2 %v6940_v29  ;;  %2266 = vmatpush.bf16.msra.mxu3 %v6941_v11  ;;  %v6950_v24 = vld [vmem:[#allocation39_spill] sm:$0xff]  ;;  %v6952_v11 = vld [vmem:[#allocation40_spill] sm:$0xff] }
 0x2ff   :  { %v6951_v29 = vld [vmem:[#allocation59_spill] sm:$0xff] }
 0x300   :  { %v481_v15 = vadd.f32 %v6951_v29, %v6950_v24 }
 0x301   :  { %2228 = vmatpush.bf16.msrb.mxu0 %v6942_v7  ;;  %2241 = vmatpush.bf16.msrb.mxu1 %v6943_v51  ;;  %v510_v7 = vadd.f32 %v6953_v38, %v6952_v11 }
 0x302   :  { %2254 = vmatpush.bf16.msra.mxu2 %v6944_v12  ;;  %2267 = vmatpush.bf16.msra.mxu3 %v6945_v39 }
 0x305   :  { %2229 = vmatpush.bf16.msrb.mxu0 %v6946_v27  ;;  %2242 = vmatpush.bf16.msrb.mxu1 %v6947_v53  ;;  %v6954_v27 = vld [vmem:[#allocation74_spill] sm:$0xff] }
 0x306   :  { %2255 = vmatpush.bf16.msra.mxu2 %v6948_v47  ;;  %2268 = vmatpush.bf16.msra.mxu3 %v6949_v48  ;;  %v568_v53 = vadd.f32 %v6955_v41, %v6954_v27 }
 0x342   :  { %v1922_v35 = vpop.f32.mrf.mxu0  ;;  %v1935_v51 = vpop.f32.mrf.mxu1 }
 0x343   :  { %v1965_v17 = vadd.f32 %v1922_v35, %v481_v15  ;;  %v1966_v12 = vadd.f32 %v1935_v51, %v510_v7  ;;  %v6957_v15 = vld [vmem:[#allocation79_spill] sm:$0xff] }
 0x345   :  { %v3943_v54 = vmul.f32 -1.442695, %v1965_v17  ;;  %v3944_v39 = vmul.f32 -1.442695, %v1966_v12 }
 0x347   :  { %4299 = vpow2.f32 %v3943_v54  ;;  %v6956_v54 = vld [vmem:[#allocation73_spill] sm:$0xff] }
 0x348   :  { %4301 = vpow2.f32 %v3944_v39  ;;  %v539_v7 = vadd.f32 %v6957_v15, %v6956_v54 }
 0x349   :  { %v1948_v47 = vpop.f32.mrf.mxu2  ;;  %v1961_v42 = vpop.f32.mrf.mxu3 }
 0x34a   :  { %v1968_v48 = vadd.f32 %v1961_v42, %v568_v53  ;;  %v1924_v63 = vpop.f32.mrf.mxu0  ;;  %v1937_v19 = vpop.f32.mrf.mxu1  ;;  %v1967_v12 = vadd.f32 %v1948_v47, %v539_v7  ;;  %v6959_v42 = vld [vmem:[#allocation82_spill] sm:$0xff] }
 0x34b   :  { %v6958_v19 = vld [vmem:[#allocation81_spill] sm:$0xff] }
 0x34c   :  { %v3945_v29 = vmul.f32 -1.442695, %v1968_v48 }
 0x34d   :  { %v4300_v24 = vpop.eup %4299 }
 0x34e   :  { %v4302_v55 = vpop.eup %4301  ;;  %v2029_v38 = vadd.f32 1.0, %v4300_v24  ;;  %4303 = vpow2.f32 %v3945_v29 }
 0x34f   :  { %v2048_v11 = vadd.f32 1.0, %v4302_v55 }
 0x350   :  { %4305 = vrcp.f32 %v2029_v38  ;;  %v2039_v37 = vand.u32 2147483647, %v2029_v38  ;;  %v2041_v47 = vand.u32 2147483648, %v2029_v38  ;;  %vm2035_vm10 = vweird.f32 %v2029_v38 }
 0x351   :  { %4307 = vrcp.f32 %v2048_v11  ;;  %v1950_v17 = vpop.f32.mrf.mxu2  ;;  %v1963_v35 = vpop.f32.mrf.mxu3  ;;  %v2060_v32 = vand.u32 2147483648, %v2048_v11  ;;  %vm2054_vm11 = vweird.f32 %v2048_v11 }
 0x352   :  { %vm2040_vm14 = vcmp.eq.f32.partialorder %v2039_v37, 8.507059e+37 }
 0x353   :  { %v2061_v28 = vor.u32 1.1754944e-38, %v2060_v32 }
 0x354   :  { %v4304_v41 = vpop.eup %4303  ;;  %v1979_v39 = vpop.f32.mrf.mxu0 }
 0x355   :  { %v1992_v51 = vpop.f32.mrf.mxu1  ;;  %v6124_v53 = vadd.f32 1.0, %v4304_v41  ;;  %v2022_v63 = vadd.f32 %v1979_v39, %v6958_v19  ;;  %v2058_v41 = vand.u32 2147483647, %v2048_v11 }
 0x356   :  { %v2023_v48 = vadd.f32 %v1992_v51, %v6959_v42  ;;  %v4306_v24 = vpop.eup %4305  ;;  %v6960_v42 = vld [vmem:[#allocation106_spill] sm:$0xff] }
 0x357   :  { %v4308_v29 = vpop.eup %4307  ;;  %v2031_v55 = vmul.f32 %v4306_v24, %v2029_v38  ;;  %4309 = vrcp.f32 %v6124_v53  ;;  %v3946_v27 = vmul.f32 -1.442695, %v2022_v63  ;;  %vm2036_vm8 = vweird.f32 %v4306_v24 }
 0x358   :  { %v2050_v17 = vmul.f32 %v4308_v29, %v2048_v11  ;;  %4311 = vtanh.f32 %v1967_v12  ;;  %v3947_v15 = vmul.f32 -1.442695, %v2023_v48  ;;  %vm2055_vm9 = vweird.f32 %v4308_v29  ;;  %vm2037_vm12 = vmor %vm2035_vm10, %vm2036_vm8 }
 0x359   :  { %v2032_v35 = vsub.f32 1.0, %v2031_v55  ;;  %4313 = vpow2.f32 %v3946_v27  ;;  %v2042_v48 = vor.u32 1.1754944e-38, %v2041_v47  ;;  %vm2056_vm13 = vmor %vm2054_vm11, %vm2055_vm9  ;;  %vm2059_vm15 = vcmp.eq.f32.partialorder %v2058_v41, 8.507059e+37 }
 0x35a   :  { %v2051_v54 = vsub.f32 1.0, %v2050_v17  ;;  %4315 = vpow2.f32 %v3947_v15  ;;  %vm2074_vm1 = vweird.f32 %v6124_v53 }
 0x35b   :  { %v2033_v7 = vmul.f32 %v4306_v24, %v2032_v35  ;;  %v2005_v39 = vpop.f32.mrf.mxu2  ;;  %v2018_v51 = vpop.f32.mrf.mxu3 }
 0x35c   :  { %v2052_v19 = vmul.f32 %v4308_v29, %v2051_v54  ;;  %v2025_v43 = vadd.f32 %v2018_v51, %v6960_v42  ;;  %v1981_v30 = vpop.f32.mrf.mxu0 }
 0x35d   :  { %v1994_v55 = vpop.f32.mrf.mxu1  ;;  %v4310_v12 = vpop.eup %4309  ;;  %v2034_v63 = vadd.f32 %v4306_v24, %v2033_v7 }
 0x35e   :  { %v2053_v17 = vadd.f32 %v4308_v29, %v2052_v19  ;;  %v2070_v35 = vmul.f32 %v4310_v12, %v6124_v53  ;;  %v4312_v27 = vpop.eup %4311  ;;  %v3948_v15 = vmul.f32 -1.442695, %v2025_v43  ;;  %vm2075_vm0 = vweird.f32 %v4310_v12 }
 0x35f   :  { %v2038_v54 = vsel %vm2037_vm12, %v4306_v24, %v2034_v63  ;;  %v4314_v42 = vpop.eup %4313  ;;  %vm2076_vm2 = vmor %vm2074_vm1, %vm2075_vm0 }
 0x360   :  { %v2043_v52 = vsel %vm2040_vm14, %v2042_v48, %v2038_v54  ;;  %v2057_v51 = vsel %vm2056_vm13, %v4308_v29, %v2053_v17  ;;  %v2071_v30 = vsub.f32 1.0, %v2070_v35  ;;  %4317 = vpow2.f32 %v3948_v15  ;;  %v4316_v11 = vpop.eup %4315  ;;  %v6961_v29 = vld [vmem:[#allocation105_spill] sm:$0xff] }
 0x361   :  { %v2062_v7 = vsel %vm2059_vm15, %v2061_v28, %v2057_v51  ;;  %v2085_v38 = vmul.f32 %v4312_v27, %v2043_v52  ;;  %v2092_v55 = vadd.f32 1.0, %v4314_v42  ;;  %v2111_v0 = vadd.f32 1.0, %v4316_v11 }
 0x362   :  { %v2084_v47 = vmul.f32 %v2062_v7, %v6025_v44  ;;  %v2072_v19 = vmul.f32 %v4310_v12, %v2071_v30  ;;  %v2080_v28 = vand.u32 2147483648, %v6124_v53  ;;  %v2078_v44 = vand.u32 2147483647, %v6124_v53 }
 0x363   :  { %v2007_v61 = vpop.f32.mrf.mxu2  ;;  %v2020_v33 = vpop.f32.mrf.mxu3  ;;  %4319 = vrcp.f32 %v2092_v55  ;;  %v2024_v41 = vadd.f32 %v2005_v39, %v6961_v29  ;;  %v2123_v51 = vand.u32 2147483648, %v2111_v0  ;;  %v2104_v30 = vand.u32 2147483648, %v2092_v55 }
 0x364   :  { %v6133_v32 = vadd.f32 %v2085_v38, %v2084_v47  ;;  %v2073_v43 = vadd.f32 %v4310_v12, %v2072_v19  ;;  %4321 = vrcp.f32 %v2111_v0  ;;  %v2081_v24 = vor.u32 1.1754944e-38, %v2080_v28 }
 0x365   :  { %vm2079_vm3 = vcmp.eq.f32.partialorder %v2078_v44, 8.507059e+37  ;;  %v2102_v42 = vand.u32 2147483647, %v2092_v55  ;;  %v2121_v11 = vand.u32 2147483647, %v2111_v0  ;;  %vm2098_vm6 = vweird.f32 %v2092_v55 }
 0x366   :  { %4323 = vtanh.f32 %v6133_v32  ;;  %v4318_v52 = vpop.eup %4317  ;;  %v2077_v61 = vsel %vm2076_vm2, %v4310_v12, %v2073_v43  ;;  %vm2117_vm7 = vweird.f32 %v2111_v0  ;;  %v2105_v43 = vor.u32 1.1754944e-38, %v2104_v30 }
 0x367   :  { %v6139_v37 = vadd.f32 1.0, %v4318_v52  ;;  %v2082_v27 = vsel %vm2079_vm3, %v2081_v24, %v2077_v61  ;;  %v2124_v52 = vor.u32 1.1754944e-38, %v2123_v51  ;;  %vm2103_vm10 = vcmp.eq.f32.partialorder %v2102_v42, 8.507059e+37  ;;  %v6965_v42 = vld [vmem:[#allocation14_spill] sm:$0xff] }
 0x368   :  { %vm2122_vm11 = vcmp.eq.f32.partialorder %v2121_v11, 8.507059e+37  ;;  %v6969_v11 = vld [vmem:[#allocation16_spill] sm:$0xff] }
 0x369   :  { %v4320_v33 = vpop.eup %4319  ;;  %4325 = vrcp.f32 %v6139_v37  ;;  %vm2137_vm13 = vweird.f32 %v6139_v37 }
 0x36a   :  { %v4322_v63 = vpop.eup %4321  ;;  %v2094_v48 = vmul.f32 %v4320_v33, %v2092_v55  ;;  %4327 = vtanh.f32 %v2024_v41  ;;  %vm2099_vm4 = vweird.f32 %v4320_v33 }
 0x36b   :  { %v2113_v35 = vmul.f32 %v4322_v63, %v2111_v0  ;;  %vm2118_vm5 = vweird.f32 %v4322_v63  ;;  %vm2100_vm8 = vmor %vm2098_vm6, %vm2099_vm4 }
 0x36c   :  { %v4324_v17 = vpop.eup %4323  ;;  %v2095_v54 = vsub.f32 1.0, %v2094_v48  ;;  %vm2119_vm9 = vmor %vm2117_vm7, %vm2118_vm5 }
 0x36d   :  { %v6143_v15 = vmul.f32 %v4324_v17, %v2082_v27  ;;  %v2114_v53 = vsub.f32 1.0, %v2113_v35  ;;  %v2143_v35 = vand.u32 2147483648, %v6139_v37 }
 0x36e   :  { %v2096_v12 = vmul.f32 %v4320_v33, %v2095_v54 }
 0x36f   :  { %6962 = vst [vmem:[#allocation9_spill] sm:$0xff] %v6143_v15  ;;  %v2164_v39 = vpack.c.bf16 %v6143_v15, %v6143_v15  ;;  %v4326_v7 = vpop.eup %4325  ;;  %v2115_v38 = vmul.f32 %v4322_v63, %v2114_v53  ;;  %v2144_v54 = vor.u32 1.1754944e-38, %v2143_v35  ;;  %v6985_v35 = vld [vmem:[#allocation24_spill] sm:$0xff] }
 0x370   :  { %v2097_v47 = vadd.f32 %v4320_v33, %v2096_v12  ;;  %v2133_v19 = vmul.f32 %v4326_v7, %v6139_v37  ;;  %v4328_v55 = vpop.eup %4327  ;;  %vm2138_vm12 = vweird.f32 %v4326_v7  ;;  %v6964_v12 = vld [vmem:[#allocation13_spill] sm:$0xff]  ;;  %v6993_v15 = vld [vmem:[#allocation28_spill] sm:$0xff] }
 0x371   :  { %2173 = vmatmul.bf16.vlgmr.msra.gmra.mxu0 %v2164_v39  ;;  %2186 = vmatmul.bf16.vlgmr.msra.gmra.mxu1 %v2164_v39  ;;  %v2116_v28 = vadd.f32 %v4322_v63, %v2115_v38  ;;  %vm2139_vm14 = vmor %vm2137_vm13, %vm2138_vm12  ;;  %v6968_v38 = vld [vmem:[#allocation15_spill] sm:$0xff] }
 0x372   :  { %2199 = vmatmul.bf16.vlgmr.msrb.gmra.mxu2 %v2164_v39  ;;  %2212 = vmatmul.bf16.vlgmr.msrb.gmra.mxu3 %v2164_v39  ;;  %v2101_v44 = vsel %vm2100_vm8, %v4320_v33, %v2097_v47  ;;  %v2134_v61 = vsub.f32 1.0, %v2133_v19  ;;  %v6966_v39 = vld [vmem:[#allocation31_spill] sm:$0xff]  ;;  %v6970_v47 = vld [vmem:[#allocation33_spill] sm:$0xff]  ;;  %v6971_v19 = vld [vmem:[#allocation34_spill] sm:$0xff] }
 0x373   :  { %2417 = vmatpush.bf16.msra.mxu0 %v4875_v46  ;;  %2430 = vmatpush.bf16.msra.mxu1 %v4881_v49  ;;  %v2106_v24 = vsel %vm2103_vm10, %v2105_v43, %v2101_v44  ;;  %v2120_v29 = vsel %vm2119_vm9, %v4322_v63, %v2116_v28  ;;  %v6972_v43 = vld [vmem:[#allocation17_spill] sm:$0xff]  ;;  %v6973_v28 = vld [vmem:[#allocation18_spill] sm:$0xff]  ;;  %v6975_v44 = vld [vmem:[#allocation36_spill] sm:$0xff] }
 0x374   :  { %2443 = vmatpush.bf16.msrb.mxu2 %v5145_v34  ;;  %2456 = vmatpush.bf16.msrb.mxu3 %v5098_v13  ;;  %v2125_v0 = vsel %vm2122_vm11, %v2124_v52, %v2120_v29  ;;  %v2148_v41 = vmul.f32 %v4328_v55, %v2106_v24  ;;  %v2135_v48 = vmul.f32 %v4326_v7, %v2134_v61  ;;  %v6974_v52 = vld [vmem:[#allocation35_spill] sm:$0xff]  ;;  %v6977_v55 = vld [vmem:[#allocation20_spill] sm:$0xff]  ;;  %v6978_v24 = vld [vmem:[#allocation37_spill] sm:$0xff] }
 0x375   :  { %v2147_v17 = vmul.f32 %v2125_v0, %v6046_v22  ;;  %v2141_v22 = vand.u32 2147483647, %v6139_v37  ;;  %v6976_v61 = vld [vmem:[#allocation19_spill] sm:$0xff]  ;;  %v6979_v29 = vld [vmem:[#allocation38_spill] sm:$0xff]  ;;  %v6980_v0 = vld [vmem:[#allocation21_spill] sm:$0xff] }
 0x376   :  { %v2136_v63 = vadd.f32 %v4326_v7, %v2135_v48  ;;  %v6982_v48 = vld [vmem:[#allocation41_spill] sm:$0xff] }
 0x377   :  { %2418 = vmatpush.bf16.msra.mxu0 %v4900_v58  ;;  %2431 = vmatpush.bf16.msra.mxu1 %v4911_v62  ;;  %v6155_v33 = vadd.f32 %v2148_v41, %v2147_v17  ;;  %vm2142_vm15 = vcmp.eq.f32.partialorder %v2141_v22, 8.507059e+37  ;;  %v6981_v41 = vld [vmem:[#allocation22_spill] sm:$0xff] }
 0x378   :  { %2444 = vmatpush.bf16.msrb.mxu2 %v5210_v3  ;;  %2457 = vmatpush.bf16.msrb.mxu3 %v5125_v25  ;;  %v2140_v27 = vsel %vm2139_vm14, %v4326_v7, %v2136_v63  ;;  %v6967_v7 = vld [vmem:[#allocation32_spill] sm:$0xff]  ;;  %v6983_v17 = vld [vmem:[#allocation42_spill] sm:$0xff]  ;;  %v6984_v63 = vld [vmem:[#allocation23_spill] sm:$0xff] }
 0x379   :  { %4329 = vtanh.f32 %v6155_v33  ;;  %v2145_v51 = vsel %vm2142_vm15, %v2144_v54, %v2140_v27  ;;  %v6986_v22 = vld [vmem:[#allocation46_spill] sm:$0xff]  ;;  %v6987_v27 = vld [vmem:[#allocation48_spill] sm:$0xff]  ;;  %v6988_v54 = vld [vmem:[#allocation25_spill] sm:$0xff] }
 0x37b   :  { %2419 = vmatpush.bf16.msra.mxu0 %v4926_v4  ;;  %2432 = vmatpush.bf16.msra.mxu1 %v4935_v8 }
 0x37c   :  { %2445 = vmatpush.bf16.msrb.mxu2 %v5257_v31  ;;  %2458 = vmatpush.bf16.msrb.mxu3 %v5196_v57 }
 0x37f   :  { %2420 = vmatpush.bf16.msra.mxu0 %v4950_v14  ;;  %2433 = vmatpush.bf16.msra.mxu1 %v4960_v18  ;;  %v4330_v53 = vpop.eup %4329 }
 0x380   :  { %2446 = vmatpush.bf16.msrb.mxu2 %v5291_v56  ;;  %2459 = vmatpush.bf16.msrb.mxu3 %v5237_v21  ;;  %v6171_v37 = vmul.f32 %v4330_v53, %v2145_v51  ;;  %v6989_v53 = vld [vmem:[#allocation26_spill] sm:$0xff]  ;;  %v6990_v51 = vld [vmem:[#allocation49_spill] sm:$0xff] }
 0x382   :  { %6963 = vst [vmem:[#allocation10_spill] sm:$0xff] %v6171_v37  ;;  %v2221_v30 = vpack.c.bf16 %v6171_v37, %v6171_v37  ;;  %v6992_v37 = vld [vmem:[#allocation27_spill] sm:$0xff] }
 0x383   :  { %2421 = vmatpush.bf16.msra.mxu0 %v6831_v59  ;;  %2434 = vmatpush.bf16.msra.mxu1 %v6832_v10 }
 0x384   :  { %2447 = vmatpush.bf16.msrb.mxu2 %v5314_v9  ;;  %2460 = vmatpush.bf16.msrb.mxu3 %v5303_v5 }
 0x385   :  { %2230 = vmatmul.bf16.vlgmr.msrb.gmra.mxu0 %v2221_v30  ;;  %2243 = vmatmul.bf16.vlgmr.msrb.gmra.mxu1 %v2221_v30 }
 0x386   :  { %2256 = vmatmul.bf16.vlgmr.msra.gmra.mxu2 %v2221_v30  ;;  %2269 = vmatmul.bf16.vlgmr.msra.gmra.mxu3 %v2221_v30  ;;  %v6991_v30 = vld [vmem:[#allocation50_spill] sm:$0xff] }
 0x387   :  { %2422 = vmatpush.bf16.msra.mxu0 %v6833_v1  ;;  %2435 = vmatpush.bf16.msra.mxu1 %v6834_v60 }
 0x388   :  { %2448 = vmatpush.bf16.msrb.mxu2 %v5328_v23  ;;  %2461 = vmatpush.bf16.msrb.mxu3 %v5333_v26 }
 0x38b   :  { %2423 = vmatpush.bf16.msra.mxu0 %v6835_v6  ;;  %2436 = vmatpush.bf16.msra.mxu1 %v6836_v50 }
 0x38c   :  { %2449 = vmatpush.bf16.msrb.mxu2 %v5347_v40  ;;  %2462 = vmatpush.bf16.msrb.mxu3 %v5353_v45 }
 0x38f   :  { %2424 = vmatpush.bf16.msra.mxu0 %v6837_v36  ;;  %2437 = vmatpush.bf16.msra.mxu1 %v6838_v20 }
 0x390   :  { %2450 = vmatpush.bf16.msrb.mxu2 %v5368_v2  ;;  %2463 = vmatpush.bf16.msrb.mxu3 %v5382_v16 }
 0x393   :  { %2474 = vmatpush.bf16.msrb.mxu0 %v6964_v12  ;;  %2487 = vmatpush.bf16.msrb.mxu1 %v6965_v42 }
 0x394   :  { %2500 = vmatpush.bf16.msra.mxu2 %v6966_v39  ;;  %2513 = vmatpush.bf16.msra.mxu3 %v6967_v7 }
 0x397   :  { %2475 = vmatpush.bf16.msrb.mxu0 %v6968_v38  ;;  %2488 = vmatpush.bf16.msrb.mxu1 %v6969_v11 }
 0x398   :  { %2501 = vmatpush.bf16.msra.mxu2 %v6970_v47  ;;  %2514 = vmatpush.bf16.msra.mxu3 %v6971_v19 }
 0x39b   :  { %2476 = vmatpush.bf16.msrb.mxu0 %v6972_v43  ;;  %2489 = vmatpush.bf16.msrb.mxu1 %v6973_v28 }
 0x39c   :  { %2502 = vmatpush.bf16.msra.mxu2 %v6974_v52  ;;  %2515 = vmatpush.bf16.msra.mxu3 %v6975_v44  ;;  %v7002_v52 = vld [vmem:[#allocation64_spill] sm:$0xff] }
 0x39f   :  { %2477 = vmatpush.bf16.msrb.mxu0 %v6976_v61  ;;  %2490 = vmatpush.bf16.msrb.mxu1 %v6977_v55 }
 0x3a0   :  { %2503 = vmatpush.bf16.msra.mxu2 %v6978_v24  ;;  %2516 = vmatpush.bf16.msra.mxu3 %v6979_v29  ;;  %v6998_v29 = vld [vmem:[#allocation84_spill] sm:$0xff] }
 0x3a3   :  { %2478 = vmatpush.bf16.msrb.mxu0 %v6980_v0  ;;  %2491 = vmatpush.bf16.msrb.mxu1 %v6981_v41  ;;  %v6997_v41 = vld [vmem:[#allocation44_spill] sm:$0xff] }
 0x3a4   :  { %2504 = vmatpush.bf16.msra.mxu2 %v6982_v48  ;;  %2517 = vmatpush.bf16.msra.mxu3 %v6983_v17  ;;  %v6994_v17 = vld [vmem:[#allocation53_spill] sm:$0xff]  ;;  %v6996_v48 = vld [vmem:[#allocation43_spill] sm:$0xff] }
 0x3a7   :  { %2479 = vmatpush.bf16.msrb.mxu0 %v6984_v63  ;;  %2492 = vmatpush.bf16.msrb.mxu1 %v6985_v35  ;;  %v6995_v63 = vld [vmem:[#allocation55_spill] sm:$0xff] }
 0x3a8   :  { %2505 = vmatpush.bf16.msra.mxu2 %v6986_v22  ;;  %2518 = vmatpush.bf16.msra.mxu3 %v6987_v27 }
 0x3ab   :  { %2480 = vmatpush.bf16.msrb.mxu0 %v6988_v54  ;;  %2493 = vmatpush.bf16.msrb.mxu1 %v6989_v53 }
 0x3ac   :  { %2506 = vmatpush.bf16.msra.mxu2 %v6990_v51  ;;  %2519 = vmatpush.bf16.msra.mxu3 %v6991_v30 }
 0x3af   :  { %2481 = vmatpush.bf16.msrb.mxu0 %v6992_v37  ;;  %2494 = vmatpush.bf16.msrb.mxu1 %v6993_v15 }
 0x3b0   :  { %2507 = vmatpush.bf16.msra.mxu2 %v6994_v17  ;;  %2520 = vmatpush.bf16.msra.mxu3 %v6995_v63 }
 0x3ee   :  { %v2174_v35 = vpop.f32.mrf.mxu0  ;;  %v2187_v22 = vpop.f32.mrf.mxu1 }
 0x3ef   :  { %v2217_v27 = vadd.f32 %v2174_v35, %v6996_v48  ;;  %v2218_v54 = vadd.f32 %v2187_v22, %v6997_v41  ;;  %v6999_v22 = vld [vmem:[#allocation83_spill] sm:$0xff] }
 0x3f1   :  { %v3949_v0 = vmul.f32 -1.442695, %v2217_v27  ;;  %v3950_v53 = vmul.f32 -1.442695, %v2218_v54 }
 0x3f3   :  { %4331 = vpow2.f32 %v3949_v0 }
 0x3f4   :  { %4333 = vpow2.f32 %v3950_v53 }
 0x3f5   :  { %v2200_v51 = vpop.f32.mrf.mxu2  ;;  %v2213_v30 = vpop.f32.mrf.mxu3 }
 0x3f6   :  { %v2220_v37 = vadd.f32 %v2213_v30, %v6998_v29  ;;  %v2176_v24 = vpop.f32.mrf.mxu0  ;;  %v2189_v15 = vpop.f32.mrf.mxu1  ;;  %v2219_v0 = vadd.f32 %v2200_v51, %v6999_v22 }
 0x3f7   :  { %v7000_v15 = vld [vmem:[#allocation62_spill] sm:$0xff] }
 0x3f8   :  { %v3951_v55 = vmul.f32 -1.442695, %v2220_v37  ;;  %v7001_v37 = vld [vmem:[#allocation77_spill] sm:$0xff] }
 0x3f9   :  { %v4332_v17 = vpop.eup %4331  ;;  %v597_v30 = vadd.f32 %v7001_v37, %v7000_v15  ;;  %v7004_v37 = vld [vmem:[#allocation96_spill] sm:$0xff] }
 0x3fa   :  { %v4334_v61 = vpop.eup %4333  ;;  %v2281_v63 = vadd.f32 1.0, %v4332_v17  ;;  %4335 = vpow2.f32 %v3951_v55  ;;  %v7003_v17 = vld [vmem:[#allocation78_spill] sm:$0xff]  ;;  %v7005_v15 = vld [vmem:[#allocation104_spill] sm:$0xff] }
 0x3fb   :  { %v2300_v44 = vadd.f32 1.0, %v4334_v61  ;;  %v626_v55 = vadd.f32 %v7003_v17, %v7002_v52  ;;  %v684_v7 = vadd.f32 %v7005_v15, %v7004_v37 }
 0x3fc   :  { %4337 = vrcp.f32 %v2281_v63  ;;  %v2291_v43 = vand.u32 2147483647, %v2281_v63  ;;  %v2293_v19 = vand.u32 2147483648, %v2281_v63  ;;  %vm2287_vm3 = vweird.f32 %v2281_v63 }
 0x3fd   :  { %4339 = vrcp.f32 %v2300_v44  ;;  %v2202_v48 = vpop.f32.mrf.mxu2  ;;  %v2215_v41 = vpop.f32.mrf.mxu3  ;;  %v2312_v22 = vand.u32 2147483648, %v2300_v44  ;;  %v2310_v52 = vand.u32 2147483647, %v2300_v44  ;;  %vm2306_vm2 = vweird.f32 %v2300_v44 }
 0x3fe   :  { %vm2292_vm6 = vcmp.eq.f32.partialorder %v2291_v43, 8.507059e+37 }
 0x3ff   :  { %v2313_v15 = vor.u32 1.1754944e-38, %v2312_v22  ;;  %vm2311_vm7 = vcmp.eq.f32.partialorder %v2310_v52, 8.507059e+37 }
 0x400   :  { %v4336_v35 = vpop.eup %4335 }
 0x401   :  { %v6227_v27 = vadd.f32 1.0, %v4336_v35 }
 0x402   :  { %v4338_v54 = vpop.eup %4337  ;;  %v2231_v53 = vpop.f32.mrf.mxu0 }
 0x403   :  { %v2244_v29 = vpop.f32.mrf.mxu1  ;;  %v4340_v24 = vpop.eup %4339  ;;  %v2283_v61 = vmul.f32 %v4338_v54, %v2281_v63  ;;  %4341 = vrcp.f32 %v6227_v27  ;;  %v2274_v28 = vadd.f32 %v2231_v53, %v597_v30  ;;  %vm2288_vm0 = vweird.f32 %v4338_v54 }
 0x404   :  { %v2302_v48 = vmul.f32 %v4340_v24, %v2300_v44  ;;  %4343 = vtanh.f32 %v2219_v0  ;;  %v2275_v51 = vadd.f32 %v2244_v29, %v626_v55  ;;  %vm2307_vm1 = vweird.f32 %v4340_v24  ;;  %vm2289_vm4 = vmor %vm2287_vm3, %vm2288_vm0 }
 0x405   :  { %v2284_v41 = vsub.f32 1.0, %v2283_v61  ;;  %v3952_v11 = vmul.f32 -1.442695, %v2274_v28  ;;  %v2294_v29 = vor.u32 1.1754944e-38, %v2293_v19  ;;  %vm2308_vm5 = vmor %vm2306_vm2, %vm2307_vm1  ;;  %v2332_v52 = vand.u32 2147483648, %v6227_v27 }
 0x406   :  { %v2303_v35 = vsub.f32 1.0, %v2302_v48  ;;  %v3953_v38 = vmul.f32 -1.442695, %v2275_v51  ;;  %vm2326_vm9 = vweird.f32 %v6227_v27 }
 0x407   :  { %v2285_v47 = vmul.f32 %v4338_v54, %v2284_v41  ;;  %4345 = vpow2.f32 %v3952_v11 }
 0x408   :  { %v2304_v17 = vmul.f32 %v4340_v24, %v2303_v35  ;;  %4347 = vpow2.f32 %v3953_v38 }
 0x409   :  { %v4342_v39 = vpop.eup %4341  ;;  %v2286_v61 = vadd.f32 %v4338_v54, %v2285_v47  ;;  %v2257_v0 = vpop.f32.mrf.mxu2 }
 0x40a   :  { %v2270_v53 = vpop.f32.mrf.mxu3  ;;  %v2305_v30 = vadd.f32 %v4340_v24, %v2304_v17  ;;  %v2322_v55 = vmul.f32 %v4342_v39, %v6227_v27  ;;  %v2233_v28 = vpop.f32.mrf.mxu0  ;;  %vm2327_vm8 = vweird.f32 %v4342_v39 }
 0x40b   :  { %v2246_v48 = vpop.f32.mrf.mxu1  ;;  %v4344_v41 = vpop.eup %4343  ;;  %v2290_v51 = vsel %vm2289_vm4, %v4338_v54, %v2286_v61  ;;  %v2277_v44 = vadd.f32 %v2270_v53, %v684_v7  ;;  %vm2328_vm10 = vmor %vm2326_vm9, %vm2327_vm8  ;;  %v2333_v61 = vor.u32 1.1754944e-38, %v2332_v52 }
 0x40c   :  { %v2295_v47 = vsel %vm2292_vm6, %v2294_v29, %v2290_v51  ;;  %v2309_v63 = vsel %vm2308_vm5, %v4340_v24, %v2305_v30  ;;  %v2323_v11 = vsub.f32 1.0, %v2322_v55  ;;  %v7007_v29 = vld [vmem:[#allocation103_spill] sm:$0xff] }
 0x40d   :  { %v2314_v35 = vsel %vm2311_vm7, %v2313_v15, %v2309_v63  ;;  %v2337_v37 = vmul.f32 %v4344_v41, %v2295_v47  ;;  %v3954_v19 = vmul.f32 -1.442695, %v2277_v44  ;;  %v4346_v38 = vpop.eup %4345 }
 0x40e   :  { %v2336_v17 = vmul.f32 %v2314_v35, %v6133_v32  ;;  %v2324_v16 = vmul.f32 %v4342_v39, %v2323_v11  ;;  %v4348_v28 = vpop.eup %4347  ;;  %v2344_v2 = vadd.f32 1.0, %v4346_v38  ;;  %v2330_v32 = vand.u32 2147483647, %v6227_v27 }
 0x40f   :  { %4349 = vpow2.f32 %v3954_v19  ;;  %v2363_v43 = vadd.f32 1.0, %v4348_v28 }
 0x410   :  { %v6239_v48 = vadd.f32 %v2337_v37, %v2336_v17  ;;  %v2325_v22 = vadd.f32 %v4342_v39, %v2324_v16  ;;  %v7006_v16 = vld [vmem:[#allocation95_spill] sm:$0xff]  ;;  %vm2331_vm11 = vcmp.eq.f32.partialorder %v2330_v32, 8.507059e+37  ;;  %v2356_v19 = vand.u32 2147483648, %v2344_v2 }
 0x411   :  { %v2259_v7 = vpop.f32.mrf.mxu2  ;;  %v655_v30 = vadd.f32 %v7007_v29, %v7006_v16  ;;  %v2375_v38 = vand.u32 2147483648, %v2363_v43  ;;  %vm2350_vm14 = vweird.f32 %v2344_v2  ;;  %vm2369_vm15 = vweird.f32 %v2363_v43  ;;  %v7039_v16 = vld [vmem:[#allocation28_spill] sm:$0xff] }
 0x412   :  { %v2272_v54 = vpop.f32.mrf.mxu3  ;;  %4351 = vtanh.f32 %v6239_v48  ;;  %v2329_v37 = vsel %vm2328_vm10, %v4342_v39, %v2325_v22  ;;  %v2354_v22 = vand.u32 2147483647, %v2344_v2  ;;  %v2373_v7 = vand.u32 2147483647, %v2363_v43 }
 0x413   :  { %4353 = vrcp.f32 %v2344_v2  ;;  %v2334_v41 = vsel %vm2331_vm11, %v2333_v61, %v2329_v37  ;;  %v2276_v51 = vadd.f32 %v2257_v0, %v655_v30  ;;  %v2357_v32 = vor.u32 1.1754944e-38, %v2356_v19 }
 0x414   :  { %4355 = vrcp.f32 %v2363_v43  ;;  %v2376_v61 = vor.u32 1.1754944e-38, %v2375_v38  ;;  %vm2355_vm2 = vcmp.eq.f32.partialorder %v2354_v22, 8.507059e+37  ;;  %vm2374_vm3 = vcmp.eq.f32.partialorder %v2373_v7, 8.507059e+37  ;;  %v7012_v22 = vld [vmem:[#allocation31_spill] sm:$0xff] }
 0x415   :  { %v4350_v24 = vpop.eup %4349  ;;  %v7014_v7 = vld [vmem:[#allocation15_spill] sm:$0xff] }
 0x416   :  { %v6245_v53 = vadd.f32 1.0, %v4350_v24 }
 0x418   :  { %v4352_v55 = vpop.eup %4351  ;;  %4357 = vrcp.f32 %v6245_v53  ;;  %vm2389_vm5 = vweird.f32 %v6245_v53 }
 0x419   :  { %v4354_v15 = vpop.eup %4353  ;;  %v6250_v44 = vmul.f32 %v4352_v55, %v2334_v41  ;;  %4359 = vtanh.f32 %v2276_v51 }
 0x41a   :  { %v4356_v27 = vpop.eup %4355  ;;  %v2346_v47 = vmul.f32 %v4354_v15, %v2344_v2  ;;  %vm2351_vm12 = vweird.f32 %v4354_v15 }
 0x41b   :  { %7008 = vst [vmem:[#allocation11_spill] sm:$0xff] %v6250_v44  ;;  %v2365_v63 = vmul.f32 %v4356_v27, %v2363_v43  ;;  %v2416_v39 = vpack.c.bf16 %v6250_v44, %v6250_v44  ;;  %vm2370_vm13 = vweird.f32 %v4356_v27  ;;  %vm2352_vm0 = vmor %vm2350_vm14, %vm2351_vm12  ;;  %v7038_v44 = vld [vmem:[#allocation27_spill] sm:$0xff] }
 0x41c   :  { %v2347_v11 = vsub.f32 1.0, %v2346_v47  ;;  %vm2371_vm1 = vmor %vm2369_vm15, %vm2370_vm13 }
 0x41d   :  { %v2366_v35 = vsub.f32 1.0, %v2365_v63  ;;  %2425 = vmatmul.bf16.vlgmr.msra.gmra.mxu0 %v2416_v39  ;;  %2438 = vmatmul.bf16.vlgmr.msra.gmra.mxu1 %v2416_v39 }
 0x41e   :  { %v4358_v17 = vpop.eup %4357  ;;  %v2348_v28 = vmul.f32 %v4354_v15, %v2347_v11  ;;  %2451 = vmatmul.bf16.vlgmr.msrb.gmra.mxu2 %v2416_v39  ;;  %2464 = vmatmul.bf16.vlgmr.msrb.gmra.mxu3 %v2416_v39 }
 0x41f   :  { %v2367_v0 = vmul.f32 %v4356_v27, %v2366_v35  ;;  %v2385_v54 = vmul.f32 %v4358_v17, %v6245_v53  ;;  %2669 = vmatpush.bf16.msra.mxu0 %v4875_v46  ;;  %2682 = vmatpush.bf16.msra.mxu1 %v4881_v49  ;;  %v4360_v30 = vpop.eup %4359  ;;  %vm2390_vm4 = vweird.f32 %v4358_v17 }
 0x420   :  { %v2349_v52 = vadd.f32 %v4354_v15, %v2348_v28  ;;  %2695 = vmatpush.bf16.msrb.mxu2 %v5145_v34  ;;  %2708 = vmatpush.bf16.msrb.mxu3 %v5098_v13  ;;  %vm2391_vm6 = vmor %vm2389_vm5, %vm2390_vm4  ;;  %v7011_v28 = vld [vmem:[#allocation30_spill] sm:$0xff] }
 0x421   :  { %v2368_v24 = vadd.f32 %v4356_v27, %v2367_v0  ;;  %v2386_v37 = vsub.f32 1.0, %v2385_v54  ;;  %v7013_v0 = vld [vmem:[#allocation32_spill] sm:$0xff] }
 0x422   :  { %v2353_v29 = vsel %vm2352_vm0, %v4354_v15, %v2349_v52  ;;  %v7015_v54 = vld [vmem:[#allocation16_spill] sm:$0xff]  ;;  %v7016_v52 = vld [vmem:[#allocation33_spill] sm:$0xff] }
 0x423   :  { %v2358_v55 = vsel %vm2355_vm2, %v2357_v32, %v2353_v29  ;;  %v2372_v41 = vsel %vm2371_vm1, %v4356_v27, %v2368_v24  ;;  %2670 = vmatpush.bf16.msra.mxu0 %v4900_v58  ;;  %2683 = vmatpush.bf16.msra.mxu1 %v4911_v62  ;;  %v2387_v43 = vmul.f32 %v4358_v17, %v2386_v37  ;;  %v2395_v27 = vand.u32 2147483648, %v6245_v53  ;;  %v7017_v32 = vld [vmem:[#allocation34_spill] sm:$0xff]  ;;  %v7018_v24 = vld [vmem:[#allocation17_spill] sm:$0xff]  ;;  %v7021_v29 = vld [vmem:[#allocation36_spill] sm:$0xff] }
 0x424   :  { %v2377_v2 = vsel %vm2374_vm3, %v2376_v61, %v2372_v41  ;;  %v2400_v51 = vmul.f32 %v4360_v30, %v2358_v55  ;;  %2696 = vmatpush.bf16.msrb.mxu2 %v5210_v3  ;;  %2709 = vmatpush.bf16.msrb.mxu3 %v5125_v25  ;;  %v7019_v37 = vld [vmem:[#allocation18_spill] sm:$0xff]  ;;  %v7020_v61 = vld [vmem:[#allocation35_spill] sm:$0xff]  ;;  %v7023_v55 = vld [vmem:[#allocation20_spill] sm:$0xff] }
 0x425   :  { %v2399_v47 = vmul.f32 %v2377_v2, %v6155_v33  ;;  %v2388_v15 = vadd.f32 %v4358_v17, %v2387_v43  ;;  %v2393_v33 = vand.u32 2147483647, %v6245_v53  ;;  %v2396_v11 = vor.u32 1.1754944e-38, %v2395_v27  ;;  %v7022_v30 = vld [vmem:[#allocation19_spill] sm:$0xff]  ;;  %v7024_v41 = vld [vmem:[#allocation37_spill] sm:$0xff]  ;;  %v7025_v2 = vld [vmem:[#allocation38_spill] sm:$0xff] }
 0x426   :  { %v7027_v43 = vld [vmem:[#allocation22_spill] sm:$0xff]  ;;  %v7030_v27 = vld [vmem:[#allocation23_spill] sm:$0xff] }
 0x427   :  { %v6265_v63 = vadd.f32 %v2400_v51, %v2399_v47  ;;  %2671 = vmatpush.bf16.msra.mxu0 %v4926_v4  ;;  %2684 = vmatpush.bf16.msra.mxu1 %v4935_v8  ;;  %v2392_v39 = vsel %vm2391_vm6, %v4358_v17, %v2388_v15  ;;  %vm2394_vm7 = vcmp.eq.f32.partialorder %v2393_v33, 8.507059e+37  ;;  %v7010_v17 = vld [vmem:[#allocation29_spill] sm:$0xff]  ;;  %v7029_v15 = vld [vmem:[#allocation42_spill] sm:$0xff]  ;;  %v7031_v33 = vld [vmem:[#allocation24_spill] sm:$0xff] }
 0x428   :  { %2697 = vmatpush.bf16.msrb.mxu2 %v5257_v31  ;;  %2710 = vmatpush.bf16.msrb.mxu3 %v5196_v57  ;;  %v2397_v19 = vsel %vm2394_vm7, %v2396_v11, %v2392_v39  ;;  %v7026_v51 = vld [vmem:[#allocation21_spill] sm:$0xff]  ;;  %v7032_v39 = vld [vmem:[#allocation46_spill] sm:$0xff]  ;;  %v7033_v11 = vld [vmem:[#allocation48_spill] sm:$0xff] }
 0x429   :  { %4361 = vtanh.f32 %v6265_v63  ;;  %v7028_v47 = vld [vmem:[#allocation41_spill] sm:$0xff] }
 0x42b   :  { %2672 = vmatpush.bf16.msra.mxu0 %v4950_v14  ;;  %2685 = vmatpush.bf16.msra.mxu1 %v4960_v18 }
 0x42c   :  { %2698 = vmatpush.bf16.msrb.mxu2 %v5291_v56  ;;  %2711 = vmatpush.bf16.msrb.mxu3 %v5237_v21 }
 0x42f   :  { %v4362_v35 = vpop.eup %4361  ;;  %2673 = vmatpush.bf16.msra.mxu0 %v6831_v59  ;;  %2686 = vmatpush.bf16.msra.mxu1 %v6832_v10 }
 0x430   :  { %v6281_v38 = vmul.f32 %v4362_v35, %v2397_v19  ;;  %2699 = vmatpush.bf16.msrb.mxu2 %v5314_v9  ;;  %2712 = vmatpush.bf16.msrb.mxu3 %v5303_v5  ;;  %v7034_v35 = vld [vmem:[#allocation25_spill] sm:$0xff]  ;;  %v7035_v19 = vld [vmem:[#allocation26_spill] sm:$0xff] }
 0x432   :  { %7009 = vst [vmem:[#allocation12_spill] sm:$0xff] %v6281_v38  ;;  %v2473_v53 = vpack.c.bf16 %v6281_v38, %v6281_v38  ;;  %v7037_v38 = vld [vmem:[#allocation50_spill] sm:$0xff] }
 0x433   :  { %2674 = vmatpush.bf16.msra.mxu0 %v6833_v1  ;;  %2687 = vmatpush.bf16.msra.mxu1 %v6834_v60 }
 0x434   :  { %2482 = vmatmul.bf16.vlgmr.msrb.gmra.mxu0 %v2473_v53  ;;  %2495 = vmatmul.bf16.vlgmr.msrb.gmra.mxu1 %v2473_v53 }
 0x435   :  { %2508 = vmatmul.bf16.vlgmr.msra.gmra.mxu2 %v2473_v53  ;;  %2521 = vmatmul.bf16.vlgmr.msra.gmra.mxu3 %v2473_v53  ;;  %v7036_v53 = vld [vmem:[#allocation49_spill] sm:$0xff] }
 0x436   :  { %2700 = vmatpush.bf16.msrb.mxu2 %v5328_v23  ;;  %2713 = vmatpush.bf16.msrb.mxu3 %v5333_v26 }
 0x437   :  { %2675 = vmatpush.bf16.msra.mxu0 %v6835_v6  ;;  %2688 = vmatpush.bf16.msra.mxu1 %v6836_v50 }
 0x43a   :  { %2701 = vmatpush.bf16.msrb.mxu2 %v5347_v40  ;;  %2714 = vmatpush.bf16.msrb.mxu3 %v5353_v45 }
 0x43b   :  { %2676 = vmatpush.bf16.msra.mxu0 %v6837_v36  ;;  %2689 = vmatpush.bf16.msra.mxu1 %v6838_v20 }
 0x43e   :  { %2702 = vmatpush.bf16.msrb.mxu2 %v7010_v17  ;;  %2715 = vmatpush.bf16.msrb.mxu3 %v7011_v28 }
 0x43f   :  { %2726 = vmatpush.bf16.msrb.mxu0 %v6964_v12  ;;  %2739 = vmatpush.bf16.msrb.mxu1 %v6965_v42 }
 0x442   :  { %2752 = vmatpush.bf16.msra.mxu2 %v7012_v22  ;;  %2765 = vmatpush.bf16.msra.mxu3 %v7013_v0 }
 0x443   :  { %2727 = vmatpush.bf16.msrb.mxu0 %v7014_v7  ;;  %2740 = vmatpush.bf16.msrb.mxu1 %v7015_v54 }
 0x446   :  { %2753 = vmatpush.bf16.msra.mxu2 %v7016_v52  ;;  %2766 = vmatpush.bf16.msra.mxu3 %v7017_v32 }
 0x447   :  { %2728 = vmatpush.bf16.msrb.mxu0 %v7018_v24  ;;  %2741 = vmatpush.bf16.msrb.mxu1 %v7019_v37 }
 0x44a   :  { %2754 = vmatpush.bf16.msra.mxu2 %v7020_v61  ;;  %2767 = vmatpush.bf16.msra.mxu3 %v7021_v29 }
 0x44b   :  { %2729 = vmatpush.bf16.msrb.mxu0 %v7022_v30  ;;  %2742 = vmatpush.bf16.msrb.mxu1 %v7023_v55  ;;  %v7047_v30 = vld [vmem:[#allocation88_spill] sm:$0xff] }
 0x44e   :  { %2755 = vmatpush.bf16.msra.mxu2 %v7024_v41  ;;  %2768 = vmatpush.bf16.msra.mxu3 %v7025_v2 }
 0x44f   :  { %2730 = vmatpush.bf16.msrb.mxu0 %v7026_v51  ;;  %2743 = vmatpush.bf16.msrb.mxu1 %v7027_v43  ;;  %v7045_v51 = vld [vmem:[#allocation52_spill] sm:$0xff] }
 0x452   :  { %2756 = vmatpush.bf16.msra.mxu2 %v7028_v47  ;;  %2769 = vmatpush.bf16.msra.mxu3 %v7029_v15  ;;  %v7040_v15 = vld [vmem:[#allocation53_spill] sm:$0xff] }
 0x453   :  { %2731 = vmatpush.bf16.msrb.mxu0 %v7030_v27  ;;  %2744 = vmatpush.bf16.msrb.mxu1 %v7031_v33  ;;  %v7041_v27 = vld [vmem:[#allocation55_spill] sm:$0xff] }
 0x454   :  { %v7042_v33 = vld [vmem:[#allocation39_spill] sm:$0xff] }
 0x456   :  { %2757 = vmatpush.bf16.msra.mxu2 %v7032_v39  ;;  %2770 = vmatpush.bf16.msra.mxu3 %v7033_v11  ;;  %v7043_v39 = vld [vmem:[#allocation51_spill] sm:$0xff]  ;;  %v7044_v11 = vld [vmem:[#allocation40_spill] sm:$0xff] }
 0x457   :  { %2732 = vmatpush.bf16.msrb.mxu0 %v7034_v35  ;;  %2745 = vmatpush.bf16.msrb.mxu1 %v7035_v19  ;;  %v486_v47 = vadd.f32 %v7043_v39, %v7042_v33  ;;  %v515_v35 = vadd.f32 %v7045_v51, %v7044_v11 }
 0x45a   :  { %2758 = vmatpush.bf16.msra.mxu2 %v7036_v53  ;;  %2771 = vmatpush.bf16.msra.mxu3 %v7037_v38 }
 0x45b   :  { %2733 = vmatpush.bf16.msrb.mxu0 %v7038_v44  ;;  %2746 = vmatpush.bf16.msrb.mxu1 %v7039_v16  ;;  %v7046_v44 = vld [vmem:[#allocation74_spill] sm:$0xff] }
 0x45c   :  { %v573_v16 = vadd.f32 %v7047_v30, %v7046_v44 }
 0x45e   :  { %2759 = vmatpush.bf16.msra.mxu2 %v7040_v15  ;;  %2772 = vmatpush.bf16.msra.mxu3 %v7041_v27 }
 0x49a   :  { %v2426_v43 = vpop.f32.mrf.mxu0  ;;  %v2439_v19 = vpop.f32.mrf.mxu1 }
 0x49b   :  { %v2469_v2 = vadd.f32 %v2426_v43, %v486_v47  ;;  %v2470_v53 = vadd.f32 %v2439_v19, %v515_v35  ;;  %v7049_v47 = vld [vmem:[#allocation87_spill] sm:$0xff] }
 0x49d   :  { %v3955_v41 = vmul.f32 -1.442695, %v2469_v2  ;;  %v3956_v38 = vmul.f32 -1.442695, %v2470_v53 }
 0x49f   :  { %4363 = vpow2.f32 %v3955_v41  ;;  %v7048_v41 = vld [vmem:[#allocation73_spill] sm:$0xff] }
 0x4a0   :  { %4365 = vpow2.f32 %v3956_v38  ;;  %v544_v35 = vadd.f32 %v7049_v47, %v7048_v41 }
 0x4a1   :  { %v2452_v15 = vpop.f32.mrf.mxu2  ;;  %v2465_v55 = vpop.f32.mrf.mxu3 }
 0x4a2   :  { %v2472_v27 = vadd.f32 %v2465_v55, %v573_v16  ;;  %v2428_v29 = vpop.f32.mrf.mxu0  ;;  %v2441_v61 = vpop.f32.mrf.mxu1  ;;  %v2471_v38 = vadd.f32 %v2452_v15, %v544_v35  ;;  %v7051_v15 = vld [vmem:[#allocation72_spill] sm:$0xff] }
 0x4a4   :  { %v3957_v39 = vmul.f32 -1.442695, %v2472_v27 }
 0x4a5   :  { %v4364_v33 = vpop.eup %4363 }
 0x4a6   :  { %v4366_v24 = vpop.eup %4365  ;;  %v2533_v51 = vadd.f32 1.0, %v4364_v33  ;;  %4367 = vpow2.f32 %v3957_v39 }
 0x4a7   :  { %v2552_v11 = vadd.f32 1.0, %v4366_v24 }
 0x4a8   :  { %4369 = vrcp.f32 %v2533_v51  ;;  %v2543_v39 = vand.u32 2147483647, %v2533_v51  ;;  %vm2539_vm11 = vweird.f32 %v2533_v51 }
 0x4a9   :  { %4371 = vrcp.f32 %v2552_v11  ;;  %v2454_v2 = vpop.f32.mrf.mxu2  ;;  %v2467_v43 = vpop.f32.mrf.mxu3  ;;  %v2564_v47 = vand.u32 2147483648, %v2552_v11  ;;  %v2562_v37 = vand.u32 2147483647, %v2552_v11  ;;  %vm2558_vm10 = vweird.f32 %v2552_v11 }
 0x4aa   :  { %v2545_v2 = vand.u32 2147483648, %v2533_v51  ;;  %v7050_v43 = vld [vmem:[#allocation71_spill] sm:$0xff]  ;;  %vm2544_vm14 = vcmp.eq.f32.partialorder %v2543_v39, 8.507059e+37 }
 0x4ab   :  { %vm2563_vm15 = vcmp.eq.f32.partialorder %v2562_v37, 8.507059e+37 }
 0x4ac   :  { %v4368_v30 = vpop.eup %4367 }
 0x4ad   :  { %v6339_v19 = vadd.f32 1.0, %v4368_v30 }
 0x4ae   :  { %v4370_v16 = vpop.eup %4369 }
 0x4af   :  { %v4372_v29 = vpop.eup %4371  ;;  %v2535_v61 = vmul.f32 %v4370_v16, %v2533_v51  ;;  %4373 = vrcp.f32 %v6339_v19  ;;  %vm2540_vm8 = vweird.f32 %v4370_v16  ;;  %vm2578_vm1 = vweird.f32 %v6339_v19 }
 0x4b0   :  { %v2554_v55 = vmul.f32 %v4372_v29, %v2552_v11  ;;  %4375 = vtanh.f32 %v2471_v38  ;;  %vm2559_vm9 = vweird.f32 %v4372_v29  ;;  %vm2541_vm12 = vmor %vm2539_vm11, %vm2540_vm8 }
 0x4b1   :  { %v2536_v27 = vsub.f32 1.0, %v2535_v61  ;;  %v2483_v24 = vpop.f32.mrf.mxu0  ;;  %v2496_v33 = vpop.f32.mrf.mxu1  ;;  %vm2560_vm13 = vmor %vm2558_vm10, %vm2559_vm9 }
 0x4b2   :  { %v2555_v53 = vsub.f32 1.0, %v2554_v55  ;;  %v2526_v44 = vadd.f32 %v2483_v24, %v7050_v43  ;;  %v2527_v35 = vadd.f32 %v2496_v33, %v7051_v15  ;;  %v2546_v55 = vor.u32 1.1754944e-38, %v2545_v2 }
 0x4b3   :  { %v2537_v41 = vmul.f32 %v4370_v16, %v2536_v27  ;;  %v2565_v27 = vor.u32 1.1754944e-38, %v2564_v47 }
 0x4b4   :  { %v2556_v30 = vmul.f32 %v4372_v29, %v2555_v53  ;;  %v3958_v32 = vmul.f32 -1.442695, %v2526_v44  ;;  %v3959_v38 = vmul.f32 -1.442695, %v2527_v35  ;;  %v7052_v35 = vld [vmem:[#allocation102_spill] sm:$0xff] }
 0x4b5   :  { %v4374_v52 = vpop.eup %4373  ;;  %v2538_v61 = vadd.f32 %v4370_v16, %v2537_v41 }
 0x4b6   :  { %v2557_v7 = vadd.f32 %v4372_v29, %v2556_v30  ;;  %v2574_v54 = vmul.f32 %v4374_v52, %v6339_v19  ;;  %4377 = vpow2.f32 %v3958_v32  ;;  %v4376_v24 = vpop.eup %4375  ;;  %vm2579_vm0 = vweird.f32 %v4374_v52 }
 0x4b7   :  { %v2542_v43 = vsel %vm2541_vm12, %v4370_v16, %v2538_v61  ;;  %4379 = vpow2.f32 %v3959_v38  ;;  %vm2580_vm2 = vmor %vm2578_vm1, %vm2579_vm0 }
 0x4b8   :  { %v2547_v33 = vsel %vm2544_vm14, %v2546_v55, %v2542_v43  ;;  %v2561_v53 = vsel %vm2560_vm13, %v4372_v29, %v2557_v7  ;;  %v2575_v44 = vsub.f32 1.0, %v2574_v54  ;;  %v2509_v11 = vpop.f32.mrf.mxu2  ;;  %v2522_v41 = vpop.f32.mrf.mxu3  ;;  %v2584_v54 = vand.u32 2147483648, %v6339_v19 }
 0x4b9   :  { %v2566_v51 = vsel %vm2563_vm15, %v2565_v27, %v2561_v53  ;;  %v2589_v15 = vmul.f32 %v4376_v24, %v2547_v33  ;;  %v2529_v2 = vadd.f32 %v2522_v41, %v7052_v35  ;;  %v2485_v30 = vpop.f32.mrf.mxu0  ;;  %v2498_v0 = vpop.f32.mrf.mxu1  ;;  %v7053_v33 = vld [vmem:[#allocation101_spill] sm:$0xff] }
 0x4ba   :  { %v2588_v32 = vmul.f32 %v2566_v51, %v6239_v48  ;;  %v2576_v22 = vmul.f32 %v4374_v52, %v2575_v44  ;;  %v2582_v0 = vand.u32 2147483647, %v6339_v19  ;;  %v2585_v55 = vor.u32 1.1754944e-38, %v2584_v54 }
 0x4bb   :  { %v3960_v12 = vmul.f32 -1.442695, %v2529_v2  ;;  %v2528_v53 = vadd.f32 %v2509_v11, %v7053_v33  ;;  %v7077_v33 = vld [vmem:[#allocation26_spill] sm:$0xff] }
 0x4bc   :  { %v4378_v47 = vpop.eup %4377  ;;  %v6347_v16 = vadd.f32 %v2589_v15, %v2588_v32  ;;  %v2577_v61 = vadd.f32 %v4374_v52, %v2576_v22  ;;  %vm2583_vm3 = vcmp.eq.f32.partialorder %v2582_v0, 8.507059e+37 }
 0x4bd   :  { %v4380_v39 = vpop.eup %4379  ;;  %v2596_v7 = vadd.f32 1.0, %v4378_v47  ;;  %4381 = vpow2.f32 %v3960_v12 }
 0x4be   :  { %4383 = vtanh.f32 %v6347_v16  ;;  %v2615_v37 = vadd.f32 1.0, %v4380_v39  ;;  %v2581_v38 = vsel %vm2580_vm2, %v4374_v52, %v2577_v61 }
 0x4bf   :  { %4385 = vrcp.f32 %v2596_v7  ;;  %v2586_v27 = vsel %vm2583_vm3, %v2585_v55, %v2581_v38  ;;  %v2608_v2 = vand.u32 2147483648, %v2596_v7  ;;  %v2606_v47 = vand.u32 2147483647, %v2596_v7 }
 0x4c0   :  { %4387 = vrcp.f32 %v2615_v37  ;;  %v2511_v48 = vpop.f32.mrf.mxu2  ;;  %v2524_v29 = vpop.f32.mrf.mxu3  ;;  %v2627_v30 = vand.u32 2147483648, %v2615_v37  ;;  %v2625_v39 = vand.u32 2147483647, %v2615_v37  ;;  %vm2602_vm6 = vweird.f32 %v2596_v7 }
 0x4c1   :  { %vm2621_vm7 = vweird.f32 %v2615_v37  ;;  %v2609_v0 = vor.u32 1.1754944e-38, %v2608_v2  ;;  %vm2607_vm10 = vcmp.eq.f32.partialorder %v2606_v47, 8.507059e+37 }
 0x4c2   :  { %v2628_v38 = vor.u32 1.1754944e-38, %v2627_v30  ;;  %vm2626_vm11 = vcmp.eq.f32.partialorder %v2625_v39, 8.507059e+37 }
 0x4c3   :  { %v4382_v22 = vpop.eup %4381 }
 0x4c4   :  { %v4384_v24 = vpop.eup %4383  ;;  %v6353_v12 = vadd.f32 1.0, %v4382_v22 }
 0x4c5   :  { %v4386_v43 = vpop.eup %4385  ;;  %v6356_v44 = vmul.f32 %v4384_v24, %v2586_v27 }
 0x4c6   :  { %v4388_v41 = vpop.eup %4387  ;;  %v2598_v19 = vmul.f32 %v4386_v43, %v2596_v7  ;;  %4389 = vrcp.f32 %v6353_v12  ;;  %vm2603_vm4 = vweird.f32 %v4386_v43  ;;  %vm2641_vm13 = vweird.f32 %v6353_v12 }
 0x4c7   :  { %v2617_v51 = vmul.f32 %v4388_v41, %v2615_v37  ;;  %v2668_v52 = vpack.c.bf16 %v6356_v44, %v6356_v44  ;;  %4391 = vtanh.f32 %v2528_v53  ;;  %vm2622_vm5 = vweird.f32 %v4388_v41  ;;  %vm2604_vm8 = vmor %vm2602_vm6, %vm2603_vm4  ;;  %v7078_v53 = vld [vmem:[#allocation25_spill] sm:$0xff] }
 0x4c8   :  { %v2599_v15 = vsub.f32 1.0, %v2598_v19  ;;  %vm2623_vm9 = vmor %vm2621_vm7, %vm2622_vm5  ;;  %v7080_v19 = vld [vmem:[#allocation50_spill] sm:$0xff] }
 0x4c9   :  { %v2618_v35 = vsub.f32 1.0, %v2617_v51  ;;  %2677 = vmatmul.bf16.vlgmr.msra.gmra.mxu0 %v2668_v52  ;;  %2690 = vmatmul.bf16.vlgmr.msra.gmra.mxu1 %v2668_v52  ;;  %v7081_v51 = vld [vmem:[#allocation28_spill] sm:$0xff] }
 0x4ca   :  { %v2600_v32 = vmul.f32 %v4386_v43, %v2599_v15  ;;  %2703 = vmatmul.bf16.vlgmr.msrb.gmra.mxu2 %v2668_v52  ;;  %2716 = vmatmul.bf16.vlgmr.msrb.gmra.mxu3 %v2668_v52  ;;  %v7082_v15 = vld [vmem:[#allocation27_spill] sm:$0xff]  ;;  %v7083_v52 = vld [vmem:[#allocation53_spill] sm:$0xff] }
 0x4cb   :  { %v2619_v11 = vmul.f32 %v4388_v41, %v2618_v35  ;;  %2934 = vmatpush.bf16.msra.mxu1 %v4881_v49  ;;  %2921 = vmatpush.bf16.msra.mxu0 %v4875_v46  ;;  %v7084_v35 = vld [vmem:[#allocation55_spill] sm:$0xff] }
 0x4cc   :  { %v4390_v61 = vpop.eup %4389  ;;  %v2601_v54 = vadd.f32 %v4386_v43, %v2600_v32  ;;  %2947 = vmatpush.bf16.msrb.mxu2 %v5145_v34  ;;  %2960 = vmatpush.bf16.msrb.mxu3 %v5098_v13  ;;  %v7085_v32 = vld [vmem:[#allocation57_spill] sm:$0xff] }
 0x4cd   :  { %v2620_v48 = vadd.f32 %v4388_v41, %v2619_v11  ;;  %v2637_v29 = vmul.f32 %v4390_v61, %v6353_v12  ;;  %v4392_v7 = vpop.eup %4391  ;;  %vm2642_vm12 = vweird.f32 %v4390_v61  ;;  %v7086_v11 = vld [vmem:[#allocation58_spill] sm:$0xff] }
 0x4ce   :  { %v2605_v55 = vsel %vm2604_vm8, %v4386_v43, %v2601_v54  ;;  %vm2643_vm14 = vmor %vm2641_vm13, %vm2642_vm12 }
 0x4cf   :  { %v2610_v49 = vsel %vm2607_vm10, %v2609_v0, %v2605_v55  ;;  %v2624_v22 = vsel %vm2623_vm9, %v4388_v41, %v2620_v48  ;;  %v2638_v46 = vsub.f32 1.0, %v2637_v29  ;;  %2935 = vmatpush.bf16.msra.mxu1 %v4911_v62  ;;  %2922 = vmatpush.bf16.msra.mxu0 %v4900_v58  ;;  %v2647_v62 = vand.u32 2147483648, %v6353_v12  ;;  %v7079_v41 = vld [vmem:[#allocation49_spill] sm:$0xff]  ;;  %v7087_v29 = vld [vmem:[#allocation92_spill] sm:$0xff] }
 0x4d0   :  { %v2629_v37 = vsel %vm2626_vm11, %v2628_v38, %v2624_v22  ;;  %v2652_v24 = vmul.f32 %v4392_v7, %v2610_v49  ;;  %2948 = vmatpush.bf16.msrb.mxu2 %v5210_v3  ;;  %2961 = vmatpush.bf16.msrb.mxu3 %v5125_v25  ;;  %v2645_v58 = vand.u32 2147483647, %v6353_v12  ;;  %v7076_v12 = vld [vmem:[#allocation48_spill] sm:$0xff] }
 0x4d1   :  { %v2651_v34 = vmul.f32 %v2629_v37, %v6265_v63  ;;  %v2639_v27 = vmul.f32 %v4390_v61, %v2638_v46  ;;  %v7073_v63 = vld [vmem:[#allocation24_spill] sm:$0xff] }
 0x4d2   :  { %vm2646_vm15 = vcmp.eq.f32.partialorder %v2645_v58, 8.507059e+37 }
 0x4d3   :  { %v6373_v13 = vadd.f32 %v2652_v24, %v2651_v34  ;;  %v2640_v43 = vadd.f32 %v4390_v61, %v2639_v27  ;;  %2936 = vmatpush.bf16.msra.mxu1 %v4935_v8  ;;  %2923 = vmatpush.bf16.msra.mxu0 %v4926_v4  ;;  %v2648_v8 = vor.u32 1.1754944e-38, %v2647_v62  ;;  %v7088_v62 = vld [vmem:[#allocation91_spill] sm:$0xff] }
 0x4d4   :  { %2949 = vmatpush.bf16.msrb.mxu2 %v5257_v31  ;;  %2962 = vmatpush.bf16.msrb.mxu3 %v5196_v57  ;;  %v7055_v57 = vld [vmem:[#allocation31_spill] sm:$0xff] }
 0x4d5   :  { %4393 = vtanh.f32 %v6373_v13  ;;  %v2644_v25 = vsel %vm2643_vm14, %v4390_v61, %v2640_v43 }
 0x4d6   :  { %v2649_v3 = vsel %vm2646_vm15, %v2648_v8, %v2644_v25 }
 0x4d7   :  { %2937 = vmatpush.bf16.msra.mxu1 %v4960_v18  ;;  %2924 = vmatpush.bf16.msra.mxu0 %v4950_v14  ;;  %v7054_v18 = vld [vmem:[#allocation13_spill] sm:$0xff] }
 0x4d8   :  { %2950 = vmatpush.bf16.msrb.mxu2 %v5291_v56  ;;  %2963 = vmatpush.bf16.msrb.mxu3 %v5237_v21  ;;  %v7056_v21 = vld [vmem:[#allocation32_spill] sm:$0xff] }
 0x4d9   :  { %v7057_v56 = vld [vmem:[#allocation16_spill] sm:$0xff] }
 0x4db   :  { %v4394_v4 = vpop.eup %4393  ;;  %2938 = vmatpush.bf16.msra.mxu1 %v6832_v10  ;;  %2925 = vmatpush.bf16.msra.mxu0 %v6831_v59  ;;  %v7064_v59 = vld [vmem:[#allocation36_spill] sm:$0xff] }
 0x4dc   :  { %v6387_v31 = vmul.f32 %v4394_v4, %v2649_v3  ;;  %2951 = vmatpush.bf16.msrb.mxu2 %v5314_v9  ;;  %2964 = vmatpush.bf16.msrb.mxu3 %v5303_v5  ;;  %v7058_v5 = vld [vmem:[#allocation15_spill] sm:$0xff]  ;;  %v7059_v9 = vld [vmem:[#allocation33_spill] sm:$0xff]  ;;  %v7065_v10 = vld [vmem:[#allocation20_spill] sm:$0xff] }
 0x4dd   :  { %v7089_v3 = vld [vmem:[#allocation62_spill] sm:$0xff] }
 0x4de   :  { %v2725_v14 = vpack.c.bf16 %v6387_v31, %v6387_v31 }
 0x4df   :  { %2939 = vmatpush.bf16.msra.mxu1 %v6834_v60  ;;  %2926 = vmatpush.bf16.msra.mxu0 %v6833_v1  ;;  %v7066_v1 = vld [vmem:[#allocation19_spill] sm:$0xff]  ;;  %v7067_v60 = vld [vmem:[#allocation37_spill] sm:$0xff] }
 0x4e0   :  { %2734 = vmatmul.bf16.vlgmr.msrb.gmra.mxu0 %v2725_v14  ;;  %2747 = vmatmul.bf16.vlgmr.msrb.gmra.mxu1 %v2725_v14 }
 0x4e1   :  { %2760 = vmatmul.bf16.vlgmr.msra.gmra.mxu2 %v2725_v14  ;;  %2773 = vmatmul.bf16.vlgmr.msra.gmra.mxu3 %v2725_v14  ;;  %v7090_v14 = vld [vmem:[#allocation67_spill] sm:$0xff] }
 0x4e2   :  { %2952 = vmatpush.bf16.msrb.mxu2 %v5328_v23  ;;  %2965 = vmatpush.bf16.msrb.mxu3 %v5333_v26  ;;  %v7060_v23 = vld [vmem:[#allocation34_spill] sm:$0xff] }
 0x4e3   :  { %2940 = vmatpush.bf16.msra.mxu1 %v6836_v50  ;;  %2927 = vmatpush.bf16.msra.mxu0 %v6835_v6  ;;  %v7061_v26 = vld [vmem:[#allocation18_spill] sm:$0xff] }
 0x4e4   :  { %v7068_v6 = vld [vmem:[#allocation38_spill] sm:$0xff] }
 0x4e5   :  { %v7069_v50 = vld [vmem:[#allocation22_spill] sm:$0xff] }
 0x4e6   :  { %2953 = vmatpush.bf16.msrb.mxu2 %v5347_v40  ;;  %2966 = vmatpush.bf16.msrb.mxu3 %v5353_v45  ;;  %v7062_v40 = vld [vmem:[#allocation17_spill] sm:$0xff]  ;;  %v7063_v45 = vld [vmem:[#allocation35_spill] sm:$0xff] }
 0x4e7   :  { %2941 = vmatpush.bf16.msra.mxu1 %v6838_v20  ;;  %2928 = vmatpush.bf16.msra.mxu0 %v6837_v36  ;;  %v7070_v36 = vld [vmem:[#allocation21_spill] sm:$0xff] }
 0x4e8   :  { %v7071_v20 = vld [vmem:[#allocation41_spill] sm:$0xff] }
 0x4ea   :  { %2954 = vmatpush.bf16.msrb.mxu2 %v7010_v17  ;;  %2967 = vmatpush.bf16.msrb.mxu3 %v7011_v28  ;;  %v7074_v17 = vld [vmem:[#allocation23_spill] sm:$0xff]  ;;  %v7075_v28 = vld [vmem:[#allocation46_spill] sm:$0xff] }
 0x4eb   :  { %2991 = vmatpush.bf16.msrb.mxu1 %v6965_v42  ;;  %2978 = vmatpush.bf16.msrb.mxu0 %v7054_v18  ;;  %v7072_v42 = vld [vmem:[#allocation42_spill] sm:$0xff]  ;;  %v592_v18 = vadd.f32 %v7090_v14, %v7089_v3  ;;  %v7096_v3 = vld [vmem:[#allocation99_spill] sm:$0xff] }
 0x4ee   :  { %3004 = vmatpush.bf16.msra.mxu2 %v7055_v57  ;;  %3017 = vmatpush.bf16.msra.mxu3 %v7056_v21  ;;  %v7091_v57 = vld [vmem:[#allocation64_spill] sm:$0xff] }
 0x4ef   :  { %2992 = vmatpush.bf16.msrb.mxu1 %v7057_v56  ;;  %2979 = vmatpush.bf16.msrb.mxu0 %v7058_v5  ;;  %v7092_v21 = vld [vmem:[#allocation68_spill] sm:$0xff] }
 0x4f0   :  { %v621_v56 = vadd.f32 %v7092_v21, %v7091_v57 }
 0x4f2   :  { %3005 = vmatpush.bf16.msra.mxu2 %v7059_v9  ;;  %3018 = vmatpush.bf16.msra.mxu3 %v7060_v23 }
 0x4f3   :  { %2993 = vmatpush.bf16.msrb.mxu1 %v7061_v26  ;;  %2980 = vmatpush.bf16.msrb.mxu0 %v7062_v40 }
 0x4f6   :  { %3006 = vmatpush.bf16.msra.mxu2 %v7063_v45  ;;  %3019 = vmatpush.bf16.msra.mxu3 %v7064_v59 }
 0x4f7   :  { %2994 = vmatpush.bf16.msrb.mxu1 %v7065_v10  ;;  %2981 = vmatpush.bf16.msrb.mxu0 %v7066_v1 }
 0x4fa   :  { %3007 = vmatpush.bf16.msra.mxu2 %v7067_v60  ;;  %3020 = vmatpush.bf16.msra.mxu3 %v7068_v6 }
 0x4fb   :  { %2995 = vmatpush.bf16.msrb.mxu1 %v7069_v50  ;;  %2982 = vmatpush.bf16.msrb.mxu0 %v7070_v36 }
 0x4fe   :  { %3008 = vmatpush.bf16.msra.mxu2 %v7071_v20  ;;  %3021 = vmatpush.bf16.msra.mxu3 %v7072_v42 }
 0x4ff   :  { %2996 = vmatpush.bf16.msrb.mxu1 %v7073_v63  ;;  %2983 = vmatpush.bf16.msrb.mxu0 %v7074_v17 }
 0x502   :  { %3009 = vmatpush.bf16.msra.mxu2 %v7075_v28  ;;  %3022 = vmatpush.bf16.msra.mxu3 %v7076_v12 }
 0x503   :  { %2997 = vmatpush.bf16.msrb.mxu1 %v7077_v33  ;;  %2984 = vmatpush.bf16.msrb.mxu0 %v7078_v53 }
 0x506   :  { %3010 = vmatpush.bf16.msra.mxu2 %v7079_v41  ;;  %3023 = vmatpush.bf16.msra.mxu3 %v7080_v19  ;;  %v7093_v19 = vld [vmem:[#allocation96_spill] sm:$0xff] }
 0x507   :  { %2998 = vmatpush.bf16.msrb.mxu1 %v7081_v51  ;;  %2985 = vmatpush.bf16.msrb.mxu0 %v7082_v15  ;;  %v7094_v51 = vld [vmem:[#allocation100_spill] sm:$0xff] }
 0x508   :  { %v679_v15 = vadd.f32 %v7094_v51, %v7093_v19 }
 0x50a   :  { %3011 = vmatpush.bf16.msra.mxu2 %v7083_v52  ;;  %3024 = vmatpush.bf16.msra.mxu3 %v7084_v35 }
 0x546   :  { %v2678_v2 = vpop.f32.mrf.mxu0  ;;  %v2691_v30 = vpop.f32.mrf.mxu1 }
 0x547   :  { %v2721_v47 = vadd.f32 %v2678_v2, %v7085_v32  ;;  %v2722_v39 = vadd.f32 %v2691_v30, %v7086_v11 }
 0x549   :  { %v3961_v61 = vmul.f32 -1.442695, %v2721_v47  ;;  %v3962_v54 = vmul.f32 -1.442695, %v2722_v39 }
 0x54b   :  { %4395 = vpow2.f32 %v3961_v61 }
 0x54c   :  { %4397 = vpow2.f32 %v3962_v54 }
 0x54d   :  { %v2704_v0 = vpop.f32.mrf.mxu2  ;;  %v2717_v48 = vpop.f32.mrf.mxu3 }
 0x54e   :  { %v2724_v38 = vadd.f32 %v2717_v48, %v7087_v29  ;;  %v2680_v55 = vpop.f32.mrf.mxu0  ;;  %v2693_v7 = vpop.f32.mrf.mxu1  ;;  %v2723_v58 = vadd.f32 %v2704_v0, %v7088_v62 }
 0x550   :  { %v3963_v49 = vmul.f32 -1.442695, %v2724_v38 }
 0x551   :  { %v4396_v22 = vpop.eup %4395 }
 0x552   :  { %v4398_v46 = vpop.eup %4397  ;;  %v2785_v37 = vadd.f32 1.0, %v4396_v22  ;;  %4399 = vpow2.f32 %v3963_v49 }
 0x553   :  { %v2804_v24 = vadd.f32 1.0, %v4398_v46 }
 0x554   :  { %4401 = vrcp.f32 %v2785_v37  ;;  %v2795_v60 = vand.u32 2147483647, %v2785_v37  ;;  %v2797_v6 = vand.u32 2147483648, %v2785_v37  ;;  %vm2791_vm3 = vweird.f32 %v2785_v37 }
 0x555   :  { %4403 = vrcp.f32 %v2804_v24  ;;  %v2706_v34 = vpop.f32.mrf.mxu2  ;;  %v2719_v27 = vpop.f32.mrf.mxu3  ;;  %v2816_v1 = vand.u32 2147483648, %v2804_v24  ;;  %v2814_v63 = vand.u32 2147483647, %v2804_v24  ;;  %vm2810_vm2 = vweird.f32 %v2804_v24 }
 0x556   :  { %v2798_v12 = vor.u32 1.1754944e-38, %v2797_v6  ;;  %vm2796_vm6 = vcmp.eq.f32.partialorder %v2795_v60, 8.507059e+37 }
 0x557   :  { %v2817_v52 = vor.u32 1.1754944e-38, %v2816_v1  ;;  %vm2815_vm7 = vcmp.eq.f32.partialorder %v2814_v63, 8.507059e+37 }
 0x558   :  { %v4400_v43 = vpop.eup %4399 }
 0x559   :  { %v6443_v25 = vadd.f32 1.0, %v4400_v43 }
 0x55a   :  { %v4402_v8 = vpop.eup %4401 }
 0x55b   :  { %v4404_v4 = vpop.eup %4403  ;;  %v2787_v5 = vmul.f32 %v4402_v8, %v2785_v37  ;;  %4405 = vrcp.f32 %v6443_v25  ;;  %vm2792_vm0 = vweird.f32 %v4402_v8  ;;  %v2836_v34 = vand.u32 2147483648, %v6443_v25 }
 0x55c   :  { %v2806_v9 = vmul.f32 %v4404_v4, %v2804_v24  ;;  %4407 = vtanh.f32 %v2723_v58  ;;  %vm2811_vm1 = vweird.f32 %v4404_v4  ;;  %vm2793_vm4 = vmor %vm2791_vm3, %vm2792_vm0  ;;  %vm2830_vm9 = vweird.f32 %v6443_v25 }
 0x55d   :  { %v2735_v23 = vpop.f32.mrf.mxu0  ;;  %v2748_v26 = vpop.f32.mrf.mxu1  ;;  %v2788_v40 = vsub.f32 1.0, %v2787_v5  ;;  %vm2812_vm5 = vmor %vm2810_vm2, %vm2811_vm1  ;;  %v2834_v27 = vand.u32 2147483647, %v6443_v25  ;;  %v2837_v58 = vor.u32 1.1754944e-38, %v2836_v34  ;;  %v7097_v34 = vld [vmem:[#allocation111_spill] sm:$0xff] }
 0x55e   :  { %v2778_v45 = vadd.f32 %v2735_v23, %v592_v18  ;;  %v2779_v59 = vadd.f32 %v2748_v26, %v621_v56  ;;  %v2807_v10 = vsub.f32 1.0, %v2806_v9 }
 0x55f   :  { %v2789_v50 = vmul.f32 %v4402_v8, %v2788_v40  ;;  %vm2835_vm11 = vcmp.eq.f32.partialorder %v2834_v27, 8.507059e+37  ;;  %v7098_v27 = vld [vmem:[#allocation5_spill] sm:$0xff] }
 0x560   :  { %v3964_v36 = vmul.f32 -1.442695, %v2778_v45  ;;  %v3965_v20 = vmul.f32 -1.442695, %v2779_v59  ;;  %v2808_v42 = vmul.f32 %v4404_v4, %v2807_v10  ;;  %v4176_v59 = vld [vmem:[%s6598_s5 + $0x38] sm:$0xff] }
 0x561   :  { %v4406_v17 = vpop.eup %4405  ;;  %v2790_v28 = vadd.f32 %v4402_v8, %v2789_v50 }
 0x562   :  { %4409 = vpow2.f32 %v3964_v36  ;;  %v2809_v33 = vadd.f32 %v4404_v4, %v2808_v42  ;;  %v2826_v53 = vmul.f32 %v4406_v17, %v6443_v25  ;;  %v4408_v41 = vpop.eup %4407  ;;  %vm2831_vm8 = vweird.f32 %v4406_v17 }
 0x563   :  { %4411 = vpow2.f32 %v3965_v20  ;;  %v2794_v35 = vsel %vm2793_vm4, %v4402_v8, %v2790_v28  ;;  %vm2832_vm10 = vmor %vm2830_vm9, %vm2831_vm8 }
 0x564   :  { %v2761_v2 = vpop.f32.mrf.mxu2  ;;  %v2774_v30 = vpop.f32.mrf.mxu3  ;;  %v2799_v32 = vsel %vm2796_vm6, %v2798_v12, %v2794_v35  ;;  %v2813_v47 = vsel %vm2812_vm5, %v4404_v4, %v2809_v33  ;;  %v2827_v11 = vsub.f32 1.0, %v2826_v53  ;;  %v7095_v4 = vld [vmem:[#allocation95_spill] sm:$0xff] }
 0x565   :  { %v2737_v39 = vpop.f32.mrf.mxu0  ;;  %v2750_v61 = vpop.f32.mrf.mxu1  ;;  %v2818_v54 = vsel %vm2815_vm7, %v2817_v52, %v2813_v47  ;;  %v2841_v0 = vmul.f32 %v4408_v41, %v2799_v32  ;;  %v2781_v48 = vadd.f32 %v2774_v30, %v679_v15  ;;  %v650_v14 = vadd.f32 %v7096_v3, %v7095_v4  ;;  %v4174_v30 = vld [vmem:[%s6598_s5 + $0x28] sm:$0xff]  ;;  %v7102_v3 = vld [vmem:[#allocation39_spill] sm:$0xff] }
 0x566   :  { %v2840_v29 = vmul.f32 %v2818_v54, %v6347_v16  ;;  %v2828_v38 = vmul.f32 %v4406_v17, %v2827_v11  ;;  %v4173_v61 = vld [vmem:[%s6598_s5 + $0x20] sm:$0xff] }
 0x567   :  { %v3966_v7 = vmul.f32 -1.442695, %v2781_v48  ;;  %v2780_v5 = vadd.f32 %v2761_v2, %v650_v14  ;;  %v4172_v48 = vld [vmem:[%s6598_s5 + $0x18] sm:$0xff]  ;;  %v7103_v14 = vld [vmem:[#allocation61_spill] sm:$0xff] }
 0x568   :  { %v4410_v55 = vpop.eup %4409  ;;  %v6454_v22 = vadd.f32 %v2841_v0, %v2840_v29  ;;  %v2829_v37 = vadd.f32 %v4406_v17, %v2828_v38 }
 0x569   :  { %v4412_v49 = vpop.eup %4411  ;;  %v2848_v46 = vadd.f32 1.0, %v4410_v55  ;;  %4413 = vpow2.f32 %v3966_v7 }
 0x56a   :  { %v2867_v24 = vadd.f32 1.0, %v4412_v49  ;;  %4415 = vtanh.f32 %v6454_v22  ;;  %v2833_v62 = vsel %vm2832_vm10, %v4406_v17, %v2829_v37  ;;  %v4175_v17 = vld [vmem:[%s6598_s5 + $0x30] sm:$0xff]  ;;  %v4170_v37 = vld [vmem:[%s6598_s5 + $0x8] sm:$0xff] }
 0x56b   :  { %4417 = vrcp.f32 %v2848_v46  ;;  %v2838_v21 = vsel %vm2835_vm11, %v2837_v58, %v2833_v62  ;;  %v2860_v1 = vand.u32 2147483648, %v2848_v46  ;;  %v2858_v50 = vand.u32 2147483647, %v2848_v46  ;;  %v7100_v62 = vld [vmem:[#allocation9_spill] sm:$0xff] }
 0x56c   :  { %v2763_v16 = vpop.f32.mrf.mxu2  ;;  %v2776_v43 = vpop.f32.mrf.mxu3  ;;  %4419 = vrcp.f32 %v2867_v24  ;;  %v2879_v60 = vand.u32 2147483648, %v2867_v24  ;;  %v2877_v20 = vand.u32 2147483647, %v2867_v24  ;;  %vm2854_vm14 = vweird.f32 %v2848_v46 }
 0x56d   :  { %vm2873_vm15 = vweird.f32 %v2867_v24  ;;  %v2861_v28 = vor.u32 1.1754944e-38, %v2860_v1  ;;  %vm2859_vm2 = vcmp.eq.f32.partialorder %v2858_v50, 8.507059e+37  ;;  %v3171_v16 = vpack.c.bf16 %v7098_v27, %v7097_v34  ;;  %v7099_v43 = vld [vmem:[#allocation7_spill] sm:$0xff] }
 0x56e   :  { %v2880_v53 = vor.u32 1.1754944e-38, %v2879_v60  ;;  %vm2878_vm3 = vcmp.eq.f32.partialorder %v2877_v20, 8.507059e+37  ;;  %v3172_v58 = vpack.c.bf16 %v7100_v62, %v7099_v43 }
 0x56f   :  { %v4414_v8 = vpop.eup %4413 }
 0x570   :  { %v4416_v18 = vpop.eup %4415  ;;  %v6462_v57 = vadd.f32 1.0, %v4414_v8  ;;  %v7101_v8 = vld [vmem:[#allocation11_spill] sm:$0xff] }
 0x571   :  { %v4418_v56 = vpop.eup %4417  ;;  %v6464_v9 = vmul.f32 %v4416_v18, %v2838_v21  ;;  %v3173_v4 = vpack.c.bf16 %v6356_v44, %v7101_v8  ;;  %v491_v18 = vadd.f32 %v7103_v14, %v7102_v3  ;;  %v7105_v21 = vld [vmem:[#allocation63_spill] sm:$0xff]  ;;  %v4184_v44 = vld [vmem:[%s6599_s6 + $0x38] sm:$0xff] }
 0x572   :  { %v4420_v25 = vpop.eup %4419  ;;  %v2850_v23 = vmul.f32 %v4418_v56, %v2848_v46  ;;  %4421 = vrcp.f32 %v6462_v57  ;;  %vm2855_vm12 = vweird.f32 %v4418_v56  ;;  %v2899_v54 = vand.u32 2147483648, %v6462_v57  ;;  %v4171_v46 = vld [vmem:[%s6598_s5 + $0x10] sm:$0xff] }
 0x573   :  { %v2869_v26 = vmul.f32 %v4420_v25, %v2867_v24  ;;  %v2920_v45 = vpack.c.bf16 %v6464_v9, %v6464_v9  ;;  %4423 = vtanh.f32 %v2780_v5  ;;  %vm2874_vm13 = vweird.f32 %v4420_v25  ;;  %vm2856_vm0 = vmor %vm2854_vm14, %vm2855_vm12  ;;  %v4169_v24 = vld [vmem:[%s6598_s5] sm:$0xff] }
 0x574   :  { %v2851_v40 = vsub.f32 1.0, %v2850_v23  ;;  %vm2875_vm1 = vmor %vm2873_vm15, %vm2874_vm13  ;;  %vm2893_vm5 = vweird.f32 %v6462_v57  ;;  %v2897_v0 = vand.u32 2147483647, %v6462_v57  ;;  %v2900_v29 = vor.u32 1.1754944e-38, %v2899_v54 }
 0x575   :  { %v2870_v10 = vsub.f32 1.0, %v2869_v26  ;;  %2929 = vmatmul.bf16.vlgmr.msra.gmra.mxu0 %v2920_v45  ;;  %2942 = vmatmul.bf16.vlgmr.msra.gmra.mxu1 %v2920_v45 }
 0x576   :  { %v2852_v6 = vmul.f32 %v4418_v56, %v2851_v40  ;;  %2955 = vmatmul.bf16.vlgmr.msrb.gmra.mxu2 %v2920_v45  ;;  %2968 = vmatmul.bf16.vlgmr.msrb.gmra.mxu3 %v2920_v45  ;;  %vm2898_vm7 = vcmp.eq.f32.partialorder %v2897_v0, 8.507059e+37 }
 0x577   :  { %v2871_v36 = vmul.f32 %v4420_v25, %v2870_v10  ;;  %3344 = vmatpush.bf16.msra.mxu1 %v4176_v59  ;;  %v7106_v59 = vld [vmem:[#allocation74_spill] sm:$0xff]  ;;  %3267 = vmatpush.bf16.msra.mxu0 %v4184_v44 }
 0x578   :  { %v4422_v42 = vpop.eup %4421  ;;  %v2853_v63 = vadd.f32 %v4418_v56, %v2852_v6  ;;  %v7107_v10 = vld [vmem:[#allocation94_spill] sm:$0xff] }
 0x579   :  { %v2872_v12 = vadd.f32 %v4420_v25, %v2871_v36  ;;  %v2889_v33 = vmul.f32 %v4422_v42, %v6462_v57  ;;  %v4424_v19 = vpop.eup %4423  ;;  %vm2894_vm4 = vweird.f32 %v4422_v42  ;;  %v7104_v57 = vld [vmem:[#allocation40_spill] sm:$0xff]  ;;  %v578_v1 = vadd.f32 %v7107_v10, %v7106_v59 }
 0x57a   :  { %v2857_v41 = vsel %vm2856_vm0, %v4418_v56, %v2853_v63  ;;  %vm2895_vm6 = vmor %vm2893_vm5, %vm2894_vm4  ;;  %v520_v56 = vadd.f32 %v7105_v21, %v7104_v57  ;;  %v4183_v63 = vld [vmem:[%s6599_s6 + $0x30] sm:$0xff] }
 0x57b   :  { %v2862_v51 = vsel %vm2859_vm2, %v2861_v28, %v2857_v41  ;;  %v2876_v15 = vsel %vm2875_vm1, %v4420_v25, %v2872_v12  ;;  %v2890_v52 = vsub.f32 1.0, %v2889_v33  ;;  %3345 = vmatpush.bf16.msra.mxu1 %v4175_v17  ;;  %3268 = vmatpush.bf16.msra.mxu0 %v4183_v63  ;;  %v4177_v63 = vld [vmem:[%s6599_s6] sm:$0xff] }
 0x57c   :  { %v2881_v35 = vsel %vm2878_vm3, %v2880_v53, %v2876_v15  ;;  %v2904_v2 = vmul.f32 %v4424_v19, %v2862_v51  ;;  %v4182_v53 = vld [vmem:[%s6599_s6 + $0x28] sm:$0xff]  ;;  %v7108_v51 = vld [vmem:[#allocation73_spill] sm:$0xff] }
 0x57d   :  { %v2903_v32 = vmul.f32 %v2881_v35, %v6373_v13  ;;  %v2891_v47 = vmul.f32 %v4422_v42, %v2890_v52  ;;  %v7109_v15 = vld [vmem:[#allocation93_spill] sm:$0xff] }
 0x57e   :  { %v549_v52 = vadd.f32 %v7109_v15, %v7108_v51 }
 0x57f   :  { %v6481_v11 = vadd.f32 %v2904_v2, %v2903_v32  ;;  %v2892_v39 = vadd.f32 %v4422_v42, %v2891_v47  ;;  %3346 = vmatpush.bf16.msra.mxu1 %v4174_v30  ;;  %3269 = vmatpush.bf16.msra.mxu0 %v4182_v53  ;;  %v4181_v2 = vld [vmem:[%s6599_s6 + $0x20] sm:$0xff] }
 0x581   :  { %4425 = vtanh.f32 %v6481_v11  ;;  %v2896_v13 = vsel %vm2895_vm6, %v4422_v42, %v2892_v39 }
 0x582   :  { %v2901_v55 = vsel %vm2898_vm7, %v2900_v29, %v2896_v13 }
 0x583   :  { %3347 = vmatpush.bf16.msra.mxu1 %v4173_v61  ;;  %3270 = vmatpush.bf16.msra.mxu0 %v4181_v2 }
 0x587   :  { %v4426_v38 = vpop.eup %4425  ;;  %3348 = vmatpush.bf16.msra.mxu1 %v4172_v48  ;;  %v4180_v48 = vld [vmem:[%s6599_s6 + $0x18] sm:$0xff] }
 0x588   :  { %v6493_v7 = vmul.f32 %v4426_v38, %v2901_v55  ;;  %v7110_v38 = vld [vmem:[#allocation65_spill] sm:$0xff]  ;;  %3271 = vmatpush.bf16.msra.mxu0 %v4180_v48 }
 0x58a   :  { %v2977_v49 = vpack.c.bf16 %v6493_v7, %v6493_v7 }
 0x58b   :  { %3349 = vmatpush.bf16.msra.mxu1 %v4171_v46 }
 0x58c   :  { %2986 = vmatmul.bf16.vlgmr.msrb.gmra.mxu0 %v2977_v49  ;;  %2999 = vmatmul.bf16.vlgmr.msrb.gmra.mxu1 %v2977_v49 }
 0x58d   :  { %3012 = vmatmul.bf16.vlgmr.msra.gmra.mxu2 %v2977_v49  ;;  %3025 = vmatmul.bf16.vlgmr.msra.gmra.mxu3 %v2977_v49  ;;  %v7111_v49 = vld [vmem:[#allocation66_spill] sm:$0xff] }
 0x58f   :  { %3350 = vmatpush.bf16.msra.mxu1 %v4170_v37 }
 0x593   :  { %3351 = vmatpush.bf16.msra.mxu1 %v4169_v24 }
 0x59c   :  { %3352 = vmatmul.bf16.vlgmr.msra.gmra.mxu1 %v3171_v16 }
 0x5ac   :  { %3357 = vmatmul.bf16.gmra.mxu1 %v3172_v58 }
 0x5bc   :  { %3362 = vmatmul.bf16.gmra.mxu1 %v3173_v4  ;;  %v4179_v4 = vld [vmem:[%s6599_s6 + $0x10] sm:$0xff] }
 0x5bd   :  { %3272 = vmatpush.bf16.msra.mxu0 %v4179_v4 }
 0x5f2   :  { %v2930_v5 = vpop.f32.mrf.mxu0  ;;  %v2943_v25 = vpop.f32.mrf.mxu1 }
 0x5f3   :  { %v2973_v23 = vadd.f32 %v2930_v5, %v491_v18  ;;  %v2974_v26 = vadd.f32 %v2943_v25, %v520_v56  ;;  %v4178_v56 = vld [vmem:[%s6599_s6 + $0x8] sm:$0xff] }
 0x5f4   :  { %3273 = vmatpush.bf16.msra.mxu0 %v4178_v56 }
 0x5f5   :  { %v3967_v40 = vmul.f32 -1.442695, %v2973_v23  ;;  %v3968_v45 = vmul.f32 -1.442695, %v2974_v26 }
 0x5f7   :  { %4427 = vpow2.f32 %v3967_v40 }
 0x5f8   :  { %4429 = vpow2.f32 %v3968_v45  ;;  %3274 = vmatpush.bf16.msra.mxu0 %v4177_v63  ;;  %v7116_v63 = vld [vmem:[#allocation8_spill] sm:$0xff] }
 0x5f9   :  { %v2956_v60 = vpop.f32.mrf.mxu2  ;;  %v2969_v6 = vpop.f32.mrf.mxu3 }
 0x5fa   :  { %v2976_v50 = vadd.f32 %v2969_v6, %v578_v1  ;;  %v2932_v36 = vpop.f32.mrf.mxu0  ;;  %v2945_v20 = vpop.f32.mrf.mxu1  ;;  %v2975_v30 = vadd.f32 %v2956_v60, %v549_v52 }
 0x5fc   :  { %v3969_v42 = vmul.f32 -1.442695, %v2976_v50  ;;  %v7112_v50 = vld [vmem:[#allocation98_spill] sm:$0xff] }
 0x5fd   :  { %v4428_v17 = vpop.eup %4427 }
 0x5fe   :  { %v4430_v28 = vpop.eup %4429  ;;  %v3037_v12 = vadd.f32 1.0, %v4428_v17  ;;  %4431 = vpow2.f32 %v3969_v42 }
 0x5ff   :  { %v3056_v33 = vadd.f32 1.0, %v4430_v28 }
 0x600   :  { %4433 = vrcp.f32 %v3037_v12  ;;  %v3047_v34 = vand.u32 2147483647, %v3037_v12  ;;  %v3049_v27 = vand.u32 2147483648, %v3037_v12  ;;  %vm3043_vm11 = vweird.f32 %v3037_v12 }
 0x601   :  { %4435 = vrcp.f32 %v3056_v33  ;;  %v2958_v41 = vpop.f32.mrf.mxu2  ;;  %v2971_v19 = vpop.f32.mrf.mxu3  ;;  %v3068_v24 = vand.u32 2147483648, %v3056_v33  ;;  %v3066_v8 = vand.u32 2147483647, %v3056_v33  ;;  %vm3062_vm10 = vweird.f32 %v3056_v33 }
 0x602   :  { %v3050_v18 = vor.u32 1.1754944e-38, %v3049_v27  ;;  %vm3048_vm14 = vcmp.eq.f32.partialorder %v3047_v34, 8.507059e+37 }
 0x603   :  { %v3069_v25 = vor.u32 1.1754944e-38, %v3068_v24  ;;  %vm3067_vm15 = vcmp.eq.f32.partialorder %v3066_v8, 8.507059e+37 }
 0x604   :  { %v4432_v35 = vpop.eup %4431 }
 0x605   :  { %v6532_v32 = vadd.f32 1.0, %v4432_v35 }
 0x606   :  { %v4434_v47 = vpop.eup %4433 }
 0x607   :  { %v4436_v39 = vpop.eup %4435  ;;  %v3039_v61 = vmul.f32 %v4434_v47, %v3037_v12  ;;  %4437 = vrcp.f32 %v6532_v32  ;;  %vm3044_vm8 = vweird.f32 %v4434_v47  ;;  %v3088_v51 = vand.u32 2147483648, %v6532_v32 }
 0x608   :  { %v3058_v54 = vmul.f32 %v4436_v39, %v3056_v33  ;;  %4439 = vtanh.f32 %v2975_v30  ;;  %vm3063_vm9 = vweird.f32 %v4436_v39  ;;  %vm3045_vm12 = vmor %vm3043_vm11, %vm3044_vm8  ;;  %vm3082_vm1 = vweird.f32 %v6532_v32 }
 0x609   :  { %v2987_v0 = vpop.f32.mrf.mxu0  ;;  %v3000_v13 = vpop.f32.mrf.mxu1  ;;  %v3040_v29 = vsub.f32 1.0, %v3039_v61  ;;  %vm3064_vm13 = vmor %vm3062_vm10, %vm3063_vm9  ;;  %v3086_v52 = vand.u32 2147483647, %v6532_v32  ;;  %v3089_v2 = vor.u32 1.1754944e-38, %v3088_v51 }
 0x60a   :  { %v3030_v55 = vadd.f32 %v2987_v0, %v7110_v38  ;;  %v3031_v46 = vadd.f32 %v3000_v13, %v7111_v49  ;;  %v3059_v37 = vsub.f32 1.0, %v3058_v54  ;;  %v7113_v0 = vld [vmem:[#allocation97_spill] sm:$0xff] }
 0x60b   :  { %v3041_v16 = vmul.f32 %v4434_v47, %v3040_v29  ;;  %vm3087_vm3 = vcmp.eq.f32.partialorder %v3086_v52, 8.507059e+37 }
 0x60c   :  { %v3970_v43 = vmul.f32 -1.442695, %v3030_v55  ;;  %v3971_v62 = vmul.f32 -1.442695, %v3031_v46  ;;  %v3060_v58 = vmul.f32 %v4436_v39, %v3059_v37 }
 0x60d   :  { %v4438_v3 = vpop.eup %4437  ;;  %v3042_v14 = vadd.f32 %v4434_v47, %v3041_v16 }
 0x60e   :  { %4441 = vpow2.f32 %v3970_v43  ;;  %v3061_v57 = vadd.f32 %v4436_v39, %v3060_v58  ;;  %v3078_v21 = vmul.f32 %v4438_v3, %v6532_v32  ;;  %v4440_v5 = vpop.eup %4439  ;;  %vm3083_vm0 = vweird.f32 %v4438_v3 }
 0x60f   :  { %4443 = vpow2.f32 %v3971_v62  ;;  %v3046_v23 = vsel %vm3045_vm12, %v4434_v47, %v3042_v14  ;;  %vm3084_vm2 = vmor %vm3082_vm1, %vm3083_vm0 }
 0x610   :  { %v3013_v26 = vpop.f32.mrf.mxu2  ;;  %v3026_v40 = vpop.f32.mrf.mxu3  ;;  %v3051_v45 = vsel %vm3048_vm14, %v3050_v18, %v3046_v23  ;;  %v3065_v59 = vsel %vm3064_vm13, %v4436_v39, %v3061_v57  ;;  %v3079_v10 = vsub.f32 1.0, %v3078_v21 }
 0x611   :  { %v2989_v1 = vpop.f32.mrf.mxu0  ;;  %v3002_v44 = vpop.f32.mrf.mxu1  ;;  %v3070_v60 = vsel %vm3067_vm15, %v3069_v25, %v3065_v59  ;;  %v3093_v6 = vmul.f32 %v4440_v5, %v3051_v45  ;;  %v3033_v36 = vadd.f32 %v3026_v40, %v7112_v50  ;;  %v3032_v13 = vadd.f32 %v3013_v26, %v7113_v0 }
 0x612   :  { %v3092_v20 = vmul.f32 %v3070_v60, %v6454_v22  ;;  %v3080_v42 = vmul.f32 %v4438_v3, %v3079_v10 }
 0x613   :  { %v3972_v28 = vmul.f32 -1.442695, %v3033_v36 }
 0x614   :  { %v4442_v17 = vpop.eup %4441  ;;  %v3094_v33 = vadd.f32 %v3093_v6, %v3092_v20  ;;  %v3081_v19 = vadd.f32 %v4438_v3, %v3080_v42  ;;  %v7115_v42 = vld [vmem:[#allocation10_spill] sm:$0xff] }
 0x615   :  { %v4444_v12 = vpop.eup %4443  ;;  %v3100_v53 = vadd.f32 1.0, %v4442_v17  ;;  %4445 = vpow2.f32 %v3972_v28  ;;  %v3185_v17 = vpack.c.bf16 %v7116_v63, %v7115_v42  ;;  %v7117_v28 = vld [vmem:[#allocation6_spill] sm:$0xff] }
 0x616   :  { %v3119_v41 = vadd.f32 1.0, %v4444_v12  ;;  %4447 = vtanh.f32 %v3094_v33  ;;  %v3085_v35 = vsel %vm3084_vm2, %v4438_v3, %v3081_v19  ;;  %v7118_v12 = vld [vmem:[#allocation112_spill] sm:$0xff]  ;;  %v4202_v19 = vld [vmem:[%s6600_s7] ss:$0 sm:$0xff] }
 0x617   :  { %4449 = vrcp.f32 %v3100_v53  ;;  %v3090_v61 = vsel %vm3087_vm3, %v3089_v2, %v3085_v35  ;;  %v3112_v37 = vand.u32 2147483648, %v3100_v53  ;;  %v3110_v27 = vand.u32 2147483647, %v3100_v53 }
 0x618   :  { %v3015_v22 = vpop.f32.mrf.mxu2  ;;  %v3028_v15 = vpop.f32.mrf.mxu3  ;;  %4451 = vrcp.f32 %v3119_v41  ;;  %v3131_v24 = vand.u32 2147483648, %v3119_v41  ;;  %v3129_v43 = vand.u32 2147483647, %v3119_v41  ;;  %vm3106_vm6 = vweird.f32 %v3100_v53 }
 0x619   :  { %vm3125_vm7 = vweird.f32 %v3119_v41  ;;  %v3113_v8 = vor.u32 1.1754944e-38, %v3112_v37  ;;  %vm3111_vm10 = vcmp.eq.f32.partialorder %v3110_v27, 8.507059e+37  ;;  %v3186_v33 = vpack.c.bf16 %v7118_v12, %v7117_v28 }
 0x61a   :  { %vm3130_vm11 = vcmp.eq.f32.partialorder %v3129_v43, 8.507059e+37 }
 0x61b   :  { %v4446_v30 = vpop.eup %4445 }
 0x61c   :  { %v4448_v47 = vpop.eup %4447  ;;  %v3139_v39 = vadd.f32 1.0, %v4446_v30 }
 0x61d   :  { %v4450_v54 = vpop.eup %4449  ;;  %v3096_v48 = vmul.f32 %v4448_v47, %v3090_v61 }
 0x61e   :  { %v4452_v29 = vpop.eup %4451  ;;  %v3102_v38 = vmul.f32 %v4450_v54, %v3100_v53  ;;  %4453 = vrcp.f32 %v3139_v39  ;;  %vm3107_vm4 = vweird.f32 %v4450_v54  ;;  %v3151_v59 = vand.u32 2147483648, %v3139_v39  ;;  %v3353_v53 = vpop.f32.mrf.mxu1 }
 0x61f   :  { %v3121_v55 = vmul.f32 %v4452_v29, %v3119_v41  ;;  %v3174_v32 = vpack.c.bf16 %v3096_v48, %v6464_v9  ;;  %4455 = vtanh.f32 %v3032_v13  ;;  %vm3126_vm5 = vweird.f32 %v4452_v29  ;;  %vm3108_vm8 = vmor %vm3106_vm6, %vm3107_vm4 }
 0x620   :  { %v3103_v49 = vsub.f32 1.0, %v3102_v38  ;;  %vm3127_vm9 = vmor %vm3125_vm7, %vm3126_vm5  ;;  %v3132_v9 = vor.u32 1.1754944e-38, %v3131_v24  ;;  %vm3145_vm13 = vweird.f32 %v3139_v39  ;;  %v3149_v10 = vand.u32 2147483647, %v3139_v39 }
 0x621   :  { %v3122_v46 = vsub.f32 1.0, %v3121_v55  ;;  %3367 = vmatmul.bf16.gmra.mxu1 %v3174_v32  ;;  %v3152_v44 = vor.u32 1.1754944e-38, %v3151_v59 }
 0x622   :  { %v3104_v34 = vmul.f32 %v4450_v54, %v3103_v49  ;;  %vm3150_vm15 = vcmp.eq.f32.partialorder %v3149_v10, 8.507059e+37 }
 0x623   :  { %v3123_v16 = vmul.f32 %v4452_v29, %v3122_v46 }
 0x624   :  { %v4454_v62 = vpop.eup %4453  ;;  %v3105_v58 = vadd.f32 %v4450_v54, %v3104_v34 }
 0x625   :  { %v3124_v4 = vadd.f32 %v4452_v29, %v3123_v16  ;;  %v3141_v3 = vmul.f32 %v4454_v62, %v3139_v39  ;;  %v4456_v18 = vpop.eup %4455  ;;  %vm3146_vm12 = vweird.f32 %v4454_v62 }
 0x626   :  { %v3109_v14 = vsel %vm3108_vm8, %v4450_v54, %v3105_v58  ;;  %vm3147_vm14 = vmor %vm3145_vm13, %vm3146_vm12  ;;  %v3355_v41 = vpop.f32.mrf.mxu1 }
 0x627   :  { %v3114_v57 = vsel %vm3111_vm10, %v3113_v8, %v3109_v14  ;;  %v3128_v21 = vsel %vm3127_vm9, %v4452_v29, %v3124_v4  ;;  %v3142_v56 = vsub.f32 1.0, %v3141_v3 }
 0x628   :  { %v3133_v5 = vsel %vm3130_vm11, %v3132_v9, %v3128_v21  ;;  %v3156_v25 = vmul.f32 %v4456_v18, %v3114_v57 }
 0x629   :  { %v3155_v23 = vmul.f32 %v3133_v5, %v6481_v11  ;;  %v3143_v26 = vmul.f32 %v4454_v62, %v3142_v56  ;;  %v7114_v11 = vld [vmem:[#allocation12_spill] sm:$0xff] }
 0x62a   :  { %v3184_v20 = vpack.c.bf16 %v7114_v11, %v6387_v31 }
 0x62b   :  { %v3157_v40 = vadd.f32 %v3156_v25, %v3155_v23  ;;  %v3144_v45 = vadd.f32 %v4454_v62, %v3143_v26 }
 0x62d   :  { %4457 = vtanh.f32 %v3157_v40  ;;  %v3148_v1 = vsel %vm3147_vm14, %v4454_v62, %v3144_v45 }
 0x62e   :  { %v3153_v6 = vsel %vm3150_vm15, %v3152_v44, %v3148_v1  ;;  %v3358_v31 = vpop.f32.mrf.mxu1 }
 0x633   :  { %v4458_v60 = vpop.eup %4457 }
 0x634   :  { %v3159_v50 = vmul.f32 %v4458_v60, %v3153_v6 }
 0x636   :  { %v3183_v36 = vpack.c.bf16 %v6493_v7, %v3159_v50  ;;  %v3360_v47 = vpop.f32.mrf.mxu1 }
 0x638   :  { %3275 = vmatmul.bf16.vlgmr.msra.gmra.mxu0 %v3183_v36 }
 0x63e   :  { %v3363_v13 = vpop.f32.mrf.mxu1 }
 0x646   :  { %v3365_v55 = vpop.f32.mrf.mxu1 }
 0x648   :  { %3280 = vmatmul.bf16.gmra.mxu0 %v3184_v20 }
 0x658   :  { %3285 = vmatmul.bf16.gmra.mxu0 %v3185_v17 }
 0x668   :  { %3290 = vmatmul.bf16.gmra.mxu0 %v3186_v33 }
 0x69e   :  { %v3368_v37 = vpop.f32.mrf.mxu1 }
 0x6a6   :  { %v3370_v16 = vpop.f32.mrf.mxu1 }
 0x6b5   :  { %v3276_v7 = vpop.f32.mrf.mxu0 }
 0x6b6   :  { %v3354_v51 = vadd.f32 %v3353_v53, %v3276_v7 }
 0x6b8   :  { %v3377_v22 = vadd.f32 %v4202_v19, %v3354_v51 }
 0x6ba   :  { %3385 = vst [vmem:[%s6601_s8] sm:$0xff] %v3377_v22 }
 0x6bd   :  { %v3278_v15 = vpop.f32.mrf.mxu0 }
 0x6be   :  { %v3356_v52 = vadd.f32 %v3355_v41, %v3278_v15 }
 0x6c0   :  { %v3378_v35 = vadd.f32 %v4202_v19, %v3356_v52 }
 0x6c2   :  { %3386 = vst [vmem:[%s6601_s8 + $0x8] sm:$0xff] %v3378_v35 }
 0x6c5   :  { %v3281_v2 = vpop.f32.mrf.mxu0 }
 0x6c6   :  { %v3359_v30 = vadd.f32 %v3358_v31, %v3281_v2 }
 0x6c8   :  { %v3379_v39 = vadd.f32 %v4202_v19, %v3359_v30 }
 0x6ca   :  { %3387 = vst [vmem:[%s6601_s8 + $0x10] sm:$0xff] %v3379_v39 }
 0x6cd   :  { %v3283_v61 = vpop.f32.mrf.mxu0 }
 0x6ce   :  { %v3361_v54 = vadd.f32 %v3360_v47, %v3283_v61 }
 0x6d0   :  { %v3380_v0 = vadd.f32 %v4202_v19, %v3361_v54 }
 0x6d2   :  { %3388 = vst [vmem:[%s6601_s8 + $0x18] sm:$0xff] %v3380_v0 }
 0x6d5   :  { %v3286_v48 = vpop.f32.mrf.mxu0 }
 0x6d6   :  { %v3364_v29 = vadd.f32 %v3363_v13, %v3286_v48 }
 0x6d8   :  { %v3381_v38 = vadd.f32 %v4202_v19, %v3364_v29 }
 0x6da   :  { %3389 = vst [vmem:[%s6601_s8 + $0x20] sm:$0xff] %v3381_v38 }
 0x6dd   :  { %v3288_v49 = vpop.f32.mrf.mxu0 }
 0x6de   :  { %v3366_v32 = vadd.f32 %v3365_v55, %v3288_v49 }
 0x6e0   :  { %v3382_v46 = vadd.f32 %v4202_v19, %v3366_v32 }
 0x6e2   :  { %3390 = vst [vmem:[%s6601_s8 + $0x28] sm:$0xff] %v3382_v46 }
 0x6e5   :  { %v3291_v24 = vpop.f32.mrf.mxu0 }
 0x6e6   :  { %v3369_v34 = vadd.f32 %v3368_v37, %v3291_v24 }
 0x6e8   :  { %v3383_v27 = vadd.f32 %v4202_v19, %v3369_v34 }
 0x6ea   :  { %3391 = vst [vmem:[%s6601_s8 + $0x30] sm:$0xff] %v3383_v27 }
 0x6ed   :  { %v3293_v43 = vpop.f32.mrf.mxu0 }
 0x6ee   :  { %v3371_v62 = vadd.f32 %v3370_v16, %v3293_v43 }
 0x6f0   :  { %v3384_v58 = vadd.f32 %v4202_v19, %v3371_v62 }
 0x6f2   :  { %3392 = vst [vmem:[%s6601_s8 + $0x38] sm:$0xff] %v3384_v58 }

</bundles_post_ra>
